<compile_context>
chip_gen: v5e
topology: v5e:2x2
jax: 0.10.0
libtpu: 0.0.40
codegen_flags: <defaults>
</compile_context>

<pallas_src>
import numpy as np

import jax
import jax.numpy as jnp
from jax.experimental import pallas as pl
from jax.experimental.pallas import tpu as pltpu

# Padded / valid per-sample sequence lengths entering residual blocks 1..3, and after pool3.
L_PAD = (32, 16, 8)
L_VALID = (31, 15, 7)
L_PAD_FLAT = 4          # padded length after the last pool (3 valid positions + 1 pad row)
N_LANES = 128           # width of the lane-packed activation slab

# Fixed lane offsets of every channel chunk inside the 128-lane slab.
LANES = {
    "emb":  list(range(0, 21)),    # embedding (21)          = residual of block 1
    "r1c1": list(range(21, 31)),   # res1.conv1 out (intermediate only)
    "r1c2": list(range(31, 41)),   # res1.conv2 out          = "o1" residual chunk
    "r2c1": list(range(41, 51)),
    "r2c2": list(range(51, 61)),   # "o2"
    "r3c1": list(range(61, 71)),
    "r3c2": list(range(71, 81)),   # "o3"
}


# ----------------------------------------------------------------------------
# The single fused kernel
# ----------------------------------------------------------------------------
def fused_forward_kernel(
        slab0_ref, x_ann_ref,
        v1_ref, v2_ref, v3_ref,
        p1_ref, p2_ref, p3_ref, rsel_ref,
        conv_w_ref, conv_b_ref,
        w_fcc_ref, b_fcc_ref,
        w_fc1_ref, b_fc1_ref, w_fc2_ref, b_fc2_ref,
        w_cmb_conv_ref, w_cmb_ann_ref, b_cmb_ref,
        w_out_ref, b_out_ref,
        out_ref):

    bf16 = jnp.bfloat16

    def dot(a, b):
        return jnp.dot(a, b, preferred_element_type=jnp.float32)

    def conv_add(slab, idx, vmask):
        """ReLU(Conv1d(k=3, pad=1)) on the lane-packed slab, added into its reserved out lanes.

        Rows are b*L_pad + l with zero pad rows, so roll(+-1) along the row axis supplies the
        conv zero padding for free.  conv_w[idx] is (3*128, 128): rows = (tap, input lane),
        cols = output lane (zero elsewhere) -> one MXU matmul per conv (taps stacked along K).
        """
        rows = slab.shape[0]
        x_prev = pltpu.roll(slab, 1, 0)            # row r <- row r-1
        x_next = pltpu.roll(slab, rows - 1, 0)     # row r <- row r+1
        x_cat = jnp.concatenate([x_prev, slab, x_next], axis=1).astype(bf16)   # (rows, 384)
        y = dot(x_cat, conv_w_ref[idx]) + conv_b_ref[idx]
        return slab + jnp.maximum(y, 0.0) * vmask  # vmask re-zeroes the pad rows

    def maxpool2(slab, p_ref):
        rows = slab.shape[0]
        m = jnp.maximum(slab, pltpu.roll(slab, rows - 1, 0))   # m[r] = max(x[r], x[r+1])
        return dot(p_ref[...], m)   # even-row compaction; all-zero selector rows keep pads at 0

    # -------- conv path on a (B*L_pad, 128) slab, fully resident in VMEM/vregs --------
    s = slab0_ref[...]
    s = conv_add(s, 0, v1_ref[...])
    s = conv_add(s, 1, v1_ref[...])
    s = maxpool2(s, p1_ref)                        # L_pad: 32 -> 16
    s = conv_add(s, 2, v2_ref[...])
    s = conv_add(s, 3, v2_ref[...])
    s = maxpool2(s, p2_ref)                        # 16 -> 8
    s = conv_add(s, 4, v3_ref[...])
    s = conv_add(s, 5, v3_ref[...])
    s = maxpool2(s, p3_ref)                        # 8 -> 4   (3 valid positions)

    # -------- fc_conv1 (+folded bn_conv1) + ReLU; Flatten() is baked into the weight rows ----
    pos = [dot(rsel_ref[l], s) for l in range(3)]                 # 3 x (B, 128)
    x_flat = jnp.concatenate(pos, axis=1).astype(bf16)            # (B, 384)
    x_conv = jnp.maximum(dot(x_flat, w_fcc_ref[...]) + b_fcc_ref[...], 0.0)   # (B, 32)

    # -------- annotation branch: fc1 / fc2 with folded BN, ReLU (dropout = eval identity) ----
    xa = jnp.maximum(dot(x_ann_ref[...].astype(bf16), w_fc1_ref[...]) + b_fc1_ref[...], 0.0)
    xa = jnp.maximum(dot(xa.astype(bf16), w_fc2_ref[...]) + b_fc2_ref[...], 0.0)   # (B, 256)

    # fc_combined1 over concat([x_conv, xa], dim=1), expressed as a weight split (no concat).
    xc = jnp.maximum(dot(x_conv.astype(bf16), w_cmb_conv_ref[...]) +
                     dot(xa.astype(bf16), w_cmb_ann_ref[...]) + b_cmb_ref[...], 0.0)  # (B, 128)

    # fc_output + sigmoid; lane-dense (B, 128) store, real logit in lane 0.
    logit = dot(xc.astype(bf16), w_out_ref[...]) + b_out_ref[...]
    out_ref[...] = 1.0 / (1.0 + jnp.exp(-logit))


# ----------------------------------------------------------------------------
# Wrapper: one pallas_call, whole arrays as single VMEM blocks
# ----------------------------------------------------------------------------
def _full_spec(a):
    nd = a.ndim
    return pl.BlockSpec(a.shape, lambda i, _nd=nd: (0,) * _nd)


def forward(prep, aux, x):
    B = x.shape[0]
    ids = x[:, -31:].astype(jnp.int32)                     # (B, 31) token ids
    x_ann = x[:, :-31].astype(jnp.float32)                 # (B, input_size - 31)

    # Embedding gather (tiny) stays in XLA; pad 31 -> 32 rows and 21 -> 128 lanes so the
    # conv kernel's zero-pad-row invariant holds from the start.
    emb = jnp.take(prep["embedding"], ids, axis=0)                           # (B, 31, 21)
    emb = jnp.pad(emb, ((0, 0), (0, L_PAD[0] - 31), (0, N_LANES - 21)))      # (B, 32, 128)
    slab0 = emb.reshape(B * L_PAD[0], N_LANES)

    args = [slab0, x_ann,
            aux["v1"], aux["v2"], aux["v3"],
            aux["p1"], aux["p2"], aux["p3"], aux["r"],
            prep["conv_w"], prep["conv_b"],
            prep["fc_conv1"]["w"], prep["fc_conv1"]["b"],
            prep["fc1"]["w"], prep["fc1"]["b"],
            prep["fc2"]["w"], prep["fc2"]["b"],
            prep["fc_comb"]["w_conv"], prep["fc_comb"]["w_ann"], prep["fc_comb"]["b"],
            prep["fc_out"]["w"], prep["fc_out"]["b"]]

    out = pl.pallas_call(
        fused_forward_kernel,
        grid=(1,),
        in_specs=[_full_spec(a) for a in args],
        out_specs=pl.BlockSpec((B, N_LANES), lambda i: (0, 0)),
        out_shape=jax.ShapeDtypeStruct((B, N_LANES), jnp.float32),
        compiler_params=pltpu.CompilerParams(dimension_semantics=("arbitrary",)),
    )(*args)
    return out[:, :1]


# ----------------------------------------------------------------------------
# Constant helper arrays (valid-row masks, pool compaction selectors, position gathers)
# ----------------------------------------------------------------------------
def build_aux(batch):
    aux = {}
    for i, (lp, lv) in enumerate(zip(L_PAD, L_VALID), start=1):
        v = np.zeros((batch * lp, 1), np.float32)
        for b in range(batch):
            v[b * lp: b * lp + lv, 0] = 1.0
        aux[f"v{i}"] = jnp.asarray(v)

        lpo, lvo = lp // 2, lv // 2
        P = np.zeros((batch * lpo, batch * lp), np.float32)
        for b in range(batch):
            for k in range(lvo):
                P[b * lpo + k, b * lp + 2 * k] = 1.0   # row 2k is already max'd with 2k+1 in-kernel
        aux[f"p{i}"] = jnp.asarray(P)

    r = np.zeros((3, batch, batch * L_PAD_FLAT), np.float32)
    for l in range(3):
        for b in range(batch):
            r[l, b, b * L_PAD_FLAT + l] = 1.0
    aux["r"] = jnp.asarray(r)
    return aux


# ----------------------------------------------------------------------------
# Parameter construction (deterministic, synthetic, PyTorch layout) + kernel prep
# ----------------------------------------------------------------------------
def _normal(key, shape, std=0.1):
    return std * jax.random.normal(key, shape, dtype=jnp.float32)


def make_params(input_size, key):
    ks = iter(jax.random.split(key, 64))
    p = {}
    p["embedding"] = _normal(next(ks), (21, 21), std=1.0)

    def res_params(cin, filt=10):
        return {"w1": _normal(next(ks), (filt, cin, 3)), "b1": _normal(next(ks), (filt,)),
                "w2": _normal(next(ks), (filt, filt, 3)), "b2": _normal(next(ks), (filt,))}

    p["res1"] = res_params(21)
    p["res2"] = res_params(31)
    p["res3"] = res_params(41)

    def lin(cin, cout):
        return {"w": _normal(next(ks), (cin, cout)), "b": _normal(next(ks), (cout,))}

    def bn(n):
        return {"gamma": 1.0 + _normal(next(ks), (n,)),
                "beta": _normal(next(ks), (n,)),
                "mean": _normal(next(ks), (n,)),
                "var": 1.0 + 0.1 * jnp.abs(jax.random.normal(next(ks), (n,), jnp.float32))}

    p["fc_conv1"] = lin(51 * 3, 32);          p["bn_conv1"] = bn(32)
    p["fc1"] = lin(input_size - 31, 512);     p["bn1"] = bn(512)
    p["fc2"] = lin(512, 256);                 p["bn2"] = bn(256)
    p["fc_combined1"] = lin(256 + 32, 128);   p["bn_combined1"] = bn(128)
    p["fc_output"] = lin(128, 1)
    return p


def _bn_fold(bn, eps=1e-5):
    g = np.asarray(bn["gamma"], np.float32)
    b = np.asarray(bn["beta"], np.float32)
    m = np.asarray(bn["mean"], np.float32)
    v = np.asarray(bn["var"], np.float32)
    scale = g / np.sqrt(v + eps)
    return scale, b - m * scale


def _conv_slab_weight(w_pt, b_pt, in_lanes, out_lanes):
    """(Cout, Cin, 3) PyTorch conv weight -> (3*128, 128) slab weight + (1, 128) bias."""
    w = np.asarray(w_pt, np.float32)
    b = np.asarray(b_pt, np.float32)
    W = np.zeros((3, N_LANES, N_LANES), np.float32)
    for j in range(3):                               # tap j multiplies x[l - 1 + j]
        for ci, lane_in in enumerate(in_lanes):
            W[j, lane_in, out_lanes] = w[:, ci, j]
    bias = np.zeros((1, N_LANES), np.float32)
    bias[0, out_lanes] = b
    return W.reshape(3 * N_LANES, N_LANES), bias


def prepare_params(p):
    """Convert PyTorch-layout params into the fused-kernel layout; fold eval-mode BN; bf16 weights."""
    prep = {"embedding": jnp.asarray(np.asarray(p["embedding"], np.float32))}

    conv_specs = [
        (p["res1"]["w1"], p["res1"]["b1"], LANES["emb"],                                 LANES["r1c1"]),
        (p["res1"]["w2"], p["res1"]["b2"], LANES["r1c1"],                                LANES["r1c2"]),
        (p["res2"]["w1"], p["res2"]["b1"], LANES["r1c2"] + LANES["emb"],                 LANES["r2c1"]),
        (p["res2"]["w2"], p["res2"]["b2"], LANES["r2c1"],                                LANES["r2c2"]),
        (p["res3"]["w1"], p["res3"]["b1"], LANES["r2c2"] + LANES["r1c2"] + LANES["emb"], LANES["r3c1"]),
        (p["res3"]["w2"], p["res3"]["b2"], LANES["r3c1"],                                LANES["r3c2"]),
    ]
    Ws, Bs = zip(*[_conv_slab_weight(w, b, il, ol) for w, b, il, ol in conv_specs])
    prep["conv_w"] = jnp.asarray(np.stack(Ws)).astype(jnp.bfloat16)     # (6, 384, 128)
    prep["conv_b"] = jnp.asarray(np.stack(Bs))                          # (6, 1, 128) f32

    # fc_conv1 + folded bn_conv1.  PyTorch Flatten() index f = c*3 + l over channel order
    # [o3, o2, o1, emb]; re-index rows to (position block, slab lane).
    s, t = _bn_fold(p["bn_conv1"])
    chan_lanes = LANES["r3c2"] + LANES["r2c2"] + LANES["r1c2"] + LANES["emb"]   # 51 channels
    w_fc = np.asarray(p["fc_conv1"]["w"], np.float32)                   # (153, 32)
    Wfc = np.zeros((3, N_LANES, 32), np.float32)
    for c, lane in enumerate(chan_lanes):
        for l in range(3):
            Wfc[l, lane, :] = w_fc[c * 3 + l, :]
    Wfc *= s[None, None, :]
    prep["fc_conv1"] = {
        "w": jnp.asarray(Wfc.reshape(3 * N_LANES, 32)).astype(jnp.bfloat16),
        "b": jnp.asarray((np.asarray(p["fc_conv1"]["b"], np.float32) * s + t).reshape(1, -1)),
    }

    def fold_linear(lin, bn):
        s, t = _bn_fold(bn)
        w = np.asarray(lin["w"], np.float32) * s[None, :]
        b = np.asarray(lin["b"], np.float32) * s + t
        return w, b.reshape(1, -1)

    w, b = fold_linear(p["fc1"], p["bn1"])
    prep["fc1"] = {"w": jnp.asarray(w).astype(jnp.bfloat16), "b": jnp.asarray(b)}
    w, b = fold_linear(p["fc2"], p["bn2"])
    prep["fc2"] = {"w": jnp.asarray(w).astype(jnp.bfloat16), "b": jnp.asarray(b)}
    w, b = fold_linear(p["fc_combined1"], p["bn_combined1"])
    prep["fc_comb"] = {"w_conv": jnp.asarray(w[:32]).astype(jnp.bfloat16),   # multiplies x_conv
                       "w_ann": jnp.asarray(w[32:]).astype(jnp.bfloat16),    # multiplies x_ann branch
                       "b": jnp.asarray(b)}

    # fc_output padded to 128 output lanes for a lane-dense final store (lane 0 is real).
    w_out = np.zeros((128, N_LANES), np.float32)
    w_out[:, 0] = np.asarray(p["fc_output"]["w"], np.float32)[:, 0]
    b_out = np.zeros((1, N_LANES), np.float32)
    b_out[0, 0] = float(np.asarray(p["fc_output"]["b"], np.float32)[0])
    prep["fc_out"] = {"w": jnp.asarray(w_out).astype(jnp.bfloat16), "b": jnp.asarray(b_out)}
    return prep


# ----------------------------------------------------------------------------
if __name__ == "__main__":
    B = 4
    ANN = 64
    INPUT_SIZE = ANN + 31                                  # last 31 cols are token ids

    key = jax.random.PRNGKey(0)
    k_param, k_ann, k_tok = jax.random.split(key, 3)

    params = make_params(INPUT_SIZE, k_param)
    prep = prepare_params(params)
    aux = build_aux(B)

    x_ann = jax.random.normal(k_ann, (B, ANN), dtype=jnp.float32)
    x_tok = jax.random.randint(k_tok, (B, 31), 0, 21).astype(jnp.float32)
    x = jnp.concatenate([x_ann, x_tok], axis=1)            # (B, INPUT_SIZE)

    out = jax.jit(forward)(prep, aux, x)
    out = jax.block_until_ready(out)
    assert out.shape == (B, 1)
    assert bool(jnp.all((out >= 0.0) & (out <= 1.0)))
    print("KERNEL_OK")
</pallas_src>

<mosaic_0001>
module attributes {stable_mosaic.version = 11 : i64} {
  func.func @fused_forward_kernel(%arg0: i32, %arg1: memref<128x128xf32, #tpu.memory_space<vmem>>, %arg2: memref<4x64xf32, #tpu.memory_space<vmem>>, %arg3: memref<128x1xf32, #tpu.memory_space<vmem>>, %arg4: memref<64x1xf32, #tpu.memory_space<vmem>>, %arg5: memref<32x1xf32, #tpu.memory_space<vmem>>, %arg6: memref<64x128xf32, #tpu.memory_space<vmem>>, %arg7: memref<32x64xf32, #tpu.memory_space<vmem>>, %arg8: memref<16x32xf32, #tpu.memory_space<vmem>>, %arg9: memref<3x4x16xf32, #tpu.memory_space<vmem>>, %arg10: memref<6x384x128xbf16, #tpu.memory_space<vmem>>, %arg11: memref<6x1x128xf32, #tpu.memory_space<vmem>>, %arg12: memref<384x32xbf16, #tpu.memory_space<vmem>>, %arg13: memref<1x32xf32, #tpu.memory_space<vmem>>, %arg14: memref<64x512xbf16, #tpu.memory_space<vmem>>, %arg15: memref<1x512xf32, #tpu.memory_space<vmem>>, %arg16: memref<512x256xbf16, #tpu.memory_space<vmem>>, %arg17: memref<1x256xf32, #tpu.memory_space<vmem>>, %arg18: memref<32x128xbf16, #tpu.memory_space<vmem>>, %arg19: memref<256x128xbf16, #tpu.memory_space<vmem>>, %arg20: memref<1x128xf32, #tpu.memory_space<vmem>>, %arg21: memref<128x128xbf16, #tpu.memory_space<vmem>>, %arg22: memref<1x128xf32, #tpu.memory_space<vmem>>, %arg23: memref<4x128xf32, #tpu.memory_space<vmem>>) attributes {dimension_semantics = [#tpu.dimension_semantics<arbitrary>], iteration_bounds = array<i64: 1>, scalar_prefetch = 0 : i64, scratch_operands = 0 : i64, tpu.core_type = #tpu.core_type<tc>, window_params = [{pipeline_mode = #tpu.pipeline_mode<synchronous>, transform_indices = @transform_0, window_bounds = array<i64: 128, 128>}, {pipeline_mode = #tpu.pipeline_mode<synchronous>, transform_indices = @transform_1, window_bounds = array<i64: 4, 64>}, {pipeline_mode = #tpu.pipeline_mode<synchronous>, transform_indices = @transform_2, window_bounds = array<i64: 128, 1>}, {pipeline_mode = #tpu.pipeline_mode<synchronous>, transform_indices = @transform_3, window_bounds = array<i64: 64, 1>}, {pipeline_mode = #tpu.pipeline_mode<synchronous>, transform_indices = @transform_4, window_bounds = array<i64: 32, 1>}, {pipeline_mode = #tpu.pipeline_mode<synchronous>, transform_indices = @transform_5, window_bounds = array<i64: 64, 128>}, {pipeline_mode = #tpu.pipeline_mode<synchronous>, transform_indices = @transform_6, window_bounds = array<i64: 32, 64>}, {pipeline_mode = #tpu.pipeline_mode<synchronous>, transform_indices = @transform_7, window_bounds = array<i64: 16, 32>}, {pipeline_mode = #tpu.pipeline_mode<synchronous>, transform_indices = @transform_8, window_bounds = array<i64: 3, 4, 16>}, {pipeline_mode = #tpu.pipeline_mode<synchronous>, transform_indices = @transform_9, window_bounds = array<i64: 6, 384, 128>}, {pipeline_mode = #tpu.pipeline_mode<synchronous>, transform_indices = @transform_10, window_bounds = array<i64: 6, 1, 128>}, {pipeline_mode = #tpu.pipeline_mode<synchronous>, transform_indices = @transform_11, window_bounds = array<i64: 384, 32>}, {pipeline_mode = #tpu.pipeline_mode<synchronous>, transform_indices = @transform_12, window_bounds = array<i64: 1, 32>}, {pipeline_mode = #tpu.pipeline_mode<synchronous>, transform_indices = @transform_13, window_bounds = array<i64: 64, 512>}, {pipeline_mode = #tpu.pipeline_mode<synchronous>, transform_indices = @transform_14, window_bounds = array<i64: 1, 512>}, {pipeline_mode = #tpu.pipeline_mode<synchronous>, transform_indices = @transform_15, window_bounds = array<i64: 512, 256>}, {pipeline_mode = #tpu.pipeline_mode<synchronous>, transform_indices = @transform_16, window_bounds = array<i64: 1, 256>}, {pipeline_mode = #tpu.pipeline_mode<synchronous>, transform_indices = @transform_17, window_bounds = array<i64: 32, 128>}, {pipeline_mode = #tpu.pipeline_mode<synchronous>, transform_indices = @transform_18, window_bounds = array<i64: 256, 128>}, {pipeline_mode = #tpu.pipeline_mode<synchronous>, transform_indices = @transform_19, window_bounds = array<i64: 1, 128>}, {pipeline_mode = #tpu.pipeline_mode<synchronous>, transform_indices = @transform_20, window_bounds = array<i64: 128, 128>}, {pipeline_mode = #tpu.pipeline_mode<synchronous>, transform_indices = @transform_21, window_bounds = array<i64: 1, 128>}, {pipeline_mode = #tpu.pipeline_mode<synchronous>, transform_indices = @transform_22, window_bounds = array<i64: 4, 128>}]} {
    %c0 = arith.constant 0 : index
    %c0_0 = arith.constant 0 : index
    %0 = vector.load %arg1[%c0, %c0_0] : memref<128x128xf32, #tpu.memory_space<vmem>>, vector<128x128xf32>
    %c0_1 = arith.constant 0 : index
    %c0_2 = arith.constant 0 : index
    %1 = vector.load %arg3[%c0_1, %c0_2] : memref<128x1xf32, #tpu.memory_space<vmem>>, vector<128x1xf32>
    %c1_i32 = arith.constant 1 : i32
    %2 = tpu.dynamic_rotate %0 by %c1_i32 dim 0 : vector<128x128xf32>, i32 -> vector<128x128xf32>
    %c127_i32 = arith.constant 127 : i32
    %3 = tpu.dynamic_rotate %0 by %c127_i32 dim 0 : vector<128x128xf32>, i32 -> vector<128x128xf32>
    %4 = tpu.concatenate %2, %0, %3 in 1 : vector<128x128xf32>, vector<128x128xf32>, vector<128x128xf32> -> vector<128x384xf32>
    %5 = arith.truncf %4 : vector<128x384xf32> to vector<128x384xbf16>
    %c0_3 = arith.constant 0 : index
    %c0_4 = arith.constant 0 : index
    %c0_5 = arith.constant 0 : index
    %6 = vector.load %arg10[%c0_3, %c0_4, %c0_5] : memref<6x384x128xbf16, #tpu.memory_space<vmem>>, vector<1x384x128xbf16>
    %7 = vector.shape_cast %6 : vector<1x384x128xbf16> to vector<384x128xbf16>
    %cst = arith.constant dense<0.000000e+00> : vector<128x128xf32>
    %8 = tpu.matmul %5, %7, %cst {dimension_numbers = #tpu.dot_dimension_numbers<[1], [0], [0], [1], [0, 0, 1, 1], [], []>} : vector<128x384xbf16>, vector<384x128xbf16>, vector<128x128xf32> -> vector<128x128xf32>
    %c0_6 = arith.constant 0 : index
    %c0_7 = arith.constant 0 : index
    %c0_8 = arith.constant 0 : index
    %9 = vector.load %arg11[%c0_6, %c0_7, %c0_8] : memref<6x1x128xf32, #tpu.memory_space<vmem>>, vector<1x1x128xf32>
    %10 = vector.shape_cast %9 : vector<1x1x128xf32> to vector<1x128xf32>
    %11 = vector.broadcast %10 : vector<1x128xf32> to vector<128x128xf32>
    %12 = arith.addf %8, %11 : vector<128x128xf32>
    %cst_9 = arith.constant 0.000000e+00 : f32
    %13 = vector.broadcast %cst_9 : f32 to vector<128x128xf32>
    %14 = arith.maximumf %12, %13 : vector<128x128xf32>
    %15 = vector.broadcast %1 : vector<128x1xf32> to vector<128x128xf32>
    %16 = arith.mulf %14, %15 : vector<128x128xf32>
    %17 = arith.addf %0, %16 : vector<128x128xf32>
    %c0_10 = arith.constant 0 : index
    %c0_11 = arith.constant 0 : index
    %18 = vector.load %arg3[%c0_10, %c0_11] : memref<128x1xf32, #tpu.memory_space<vmem>>, vector<128x1xf32>
    %c1_i32_12 = arith.constant 1 : i32
    %19 = tpu.dynamic_rotate %17 by %c1_i32_12 dim 0 : vector<128x128xf32>, i32 -> vector<128x128xf32>
    %c127_i32_13 = arith.constant 127 : i32
    %20 = tpu.dynamic_rotate %17 by %c127_i32_13 dim 0 : vector<128x128xf32>, i32 -> vector<128x128xf32>
    %21 = tpu.concatenate %19, %17, %20 in 1 : vector<128x128xf32>, vector<128x128xf32>, vector<128x128xf32> -> vector<128x384xf32>
    %22 = arith.truncf %21 : vector<128x384xf32> to vector<128x384xbf16>
    %c1 = arith.constant 1 : index
    %c0_14 = arith.constant 0 : index
    %c0_15 = arith.constant 0 : index
    %23 = vector.load %arg10[%c1, %c0_14, %c0_15] : memref<6x384x128xbf16, #tpu.memory_space<vmem>>, vector<1x384x128xbf16>
    %24 = vector.shape_cast %23 : vector<1x384x128xbf16> to vector<384x128xbf16>
    %cst_16 = arith.constant dense<0.000000e+00> : vector<128x128xf32>
    %25 = tpu.matmul %22, %24, %cst_16 {dimension_numbers = #tpu.dot_dimension_numbers<[1], [0], [0], [1], [0, 0, 1, 1], [], []>} : vector<128x384xbf16>, vector<384x128xbf16>, vector<128x128xf32> -> vector<128x128xf32>
    %c1_17 = arith.constant 1 : index
    %c0_18 = arith.constant 0 : index
    %c0_19 = arith.constant 0 : index
    %26 = vector.load %arg11[%c1_17, %c0_18, %c0_19] : memref<6x1x128xf32, #tpu.memory_space<vmem>>, vector<1x1x128xf32>
    %27 = vector.shape_cast %26 : vector<1x1x128xf32> to vector<1x128xf32>
    %28 = vector.broadcast %27 : vector<1x128xf32> to vector<128x128xf32>
    %29 = arith.addf %25, %28 : vector<128x128xf32>
    %cst_20 = arith.constant 0.000000e+00 : f32
    %30 = vector.broadcast %cst_20 : f32 to vector<128x128xf32>
    %31 = arith.maximumf %29, %30 : vector<128x128xf32>
    %32 = vector.broadcast %18 : vector<128x1xf32> to vector<128x128xf32>
    %33 = arith.mulf %31, %32 : vector<128x128xf32>
    %34 = arith.addf %17, %33 : vector<128x128xf32>
    %c127_i32_21 = arith.constant 127 : i32
    %35 = tpu.dynamic_rotate %34 by %c127_i32_21 dim 0 : vector<128x128xf32>, i32 -> vector<128x128xf32>
    %36 = arith.maximumf %34, %35 : vector<128x128xf32>
    %c0_22 = arith.constant 0 : index
    %c0_23 = arith.constant 0 : index
    %37 = vector.load %arg6[%c0_22, %c0_23] : memref<64x128xf32, #tpu.memory_space<vmem>>, vector<64x128xf32>
    %cst_24 = arith.constant dense<0.000000e+00> : vector<64x128xf32>
    %38 = tpu.matmul %37, %36, %cst_24 {dimension_numbers = #tpu.dot_dimension_numbers<[1], [0], [0], [1], [0, 0, 1, 1], [], []>} : vector<64x128xf32>, vector<128x128xf32>, vector<64x128xf32> -> vector<64x128xf32>
    %c0_25 = arith.constant 0 : index
    %c0_26 = arith.constant 0 : index
    %39 = vector.load %arg4[%c0_25, %c0_26] : memref<64x1xf32, #tpu.memory_space<vmem>>, vector<64x1xf32>
    %c1_i32_27 = arith.constant 1 : i32
    %40 = tpu.dynamic_rotate %38 by %c1_i32_27 dim 0 : vector<64x128xf32>, i32 -> vector<64x128xf32>
    %c63_i32 = arith.constant 63 : i32
    %41 = tpu.dynamic_rotate %38 by %c63_i32 dim 0 : vector<64x128xf32>, i32 -> vector<64x128xf32>
    %42 = tpu.concatenate %40, %38, %41 in 1 : vector<64x128xf32>, vector<64x128xf32>, vector<64x128xf32> -> vector<64x384xf32>
    %43 = arith.truncf %42 : vector<64x384xf32> to vector<64x384xbf16>
    %c2 = arith.constant 2 : index
    %c0_28 = arith.constant 0 : index
    %c0_29 = arith.constant 0 : index
    %44 = vector.load %arg10[%c2, %c0_28, %c0_29] : memref<6x384x128xbf16, #tpu.memory_space<vmem>>, vector<1x384x128xbf16>
    %45 = vector.shape_cast %44 : vector<1x384x128xbf16> to vector<384x128xbf16>
    %cst_30 = arith.constant dense<0.000000e+00> : vector<64x128xf32>
    %46 = tpu.matmul %43, %45, %cst_30 {dimension_numbers = #tpu.dot_dimension_numbers<[1], [0], [0], [1], [0, 0, 1, 1], [], []>} : vector<64x384xbf16>, vector<384x128xbf16>, vector<64x128xf32> -> vector<64x128xf32>
    %c2_31 = arith.constant 2 : index
    %c0_32 = arith.constant 0 : index
    %c0_33 = arith.constant 0 : index
    %47 = vector.load %arg11[%c2_31, %c0_32, %c0_33] : memref<6x1x128xf32, #tpu.memory_space<vmem>>, vector<1x1x128xf32>
    %48 = vector.shape_cast %47 : vector<1x1x128xf32> to vector<1x128xf32>
    %49 = vector.broadcast %48 : vector<1x128xf32> to vector<64x128xf32>
    %50 = arith.addf %46, %49 : vector<64x128xf32>
    %cst_34 = arith.constant 0.000000e+00 : f32
    %51 = vector.broadcast %cst_34 : f32 to vector<64x128xf32>
    %52 = arith.maximumf %50, %51 : vector<64x128xf32>
    %53 = vector.broadcast %39 : vector<64x1xf32> to vector<64x128xf32>
    %54 = arith.mulf %52, %53 : vector<64x128xf32>
    %55 = arith.addf %38, %54 : vector<64x128xf32>
    %c0_35 = arith.constant 0 : index
    %c0_36 = arith.constant 0 : index
    %56 = vector.load %arg4[%c0_35, %c0_36] : memref<64x1xf32, #tpu.memory_space<vmem>>, vector<64x1xf32>
    %c1_i32_37 = arith.constant 1 : i32
    %57 = tpu.dynamic_rotate %55 by %c1_i32_37 dim 0 : vector<64x128xf32>, i32 -> vector<64x128xf32>
    %c63_i32_38 = arith.constant 63 : i32
    %58 = tpu.dynamic_rotate %55 by %c63_i32_38 dim 0 : vector<64x128xf32>, i32 -> vector<64x128xf32>
    %59 = tpu.concatenate %57, %55, %58 in 1 : vector<64x128xf32>, vector<64x128xf32>, vector<64x128xf32> -> vector<64x384xf32>
    %60 = arith.truncf %59 : vector<64x384xf32> to vector<64x384xbf16>
    %c3 = arith.constant 3 : index
    %c0_39 = arith.constant 0 : index
    %c0_40 = arith.constant 0 : index
    %61 = vector.load %arg10[%c3, %c0_39, %c0_40] : memref<6x384x128xbf16, #tpu.memory_space<vmem>>, vector<1x384x128xbf16>
    %62 = vector.shape_cast %61 : vector<1x384x128xbf16> to vector<384x128xbf16>
    %cst_41 = arith.constant dense<0.000000e+00> : vector<64x128xf32>
    %63 = tpu.matmul %60, %62, %cst_41 {dimension_numbers = #tpu.dot_dimension_numbers<[1], [0], [0], [1], [0, 0, 1, 1], [], []>} : vector<64x384xbf16>, vector<384x128xbf16>, vector<64x128xf32> -> vector<64x128xf32>
    %c3_42 = arith.constant 3 : index
    %c0_43 = arith.constant 0 : index
    %c0_44 = arith.constant 0 : index
    %64 = vector.load %arg11[%c3_42, %c0_43, %c0_44] : memref<6x1x128xf32, #tpu.memory_space<vmem>>, vector<1x1x128xf32>
    %65 = vector.shape_cast %64 : vector<1x1x128xf32> to vector<1x128xf32>
    %66 = vector.broadcast %65 : vector<1x128xf32> to vector<64x128xf32>
    %67 = arith.addf %63, %66 : vector<64x128xf32>
    %cst_45 = arith.constant 0.000000e+00 : f32
    %68 = vector.broadcast %cst_45 : f32 to vector<64x128xf32>
    %69 = arith.maximumf %67, %68 : vector<64x128xf32>
    %70 = vector.broadcast %56 : vector<64x1xf32> to vector<64x128xf32>
    %71 = arith.mulf %69, %70 : vector<64x128xf32>
    %72 = arith.addf %55, %71 : vector<64x128xf32>
    %c63_i32_46 = arith.constant 63 : i32
    %73 = tpu.dynamic_rotate %72 by %c63_i32_46 dim 0 : vector<64x128xf32>, i32 -> vector<64x128xf32>
    %74 = arith.maximumf %72, %73 : vector<64x128xf32>
    %c0_47 = arith.constant 0 : index
    %c0_48 = arith.constant 0 : index
    %75 = vector.load %arg7[%c0_47, %c0_48] : memref<32x64xf32, #tpu.memory_space<vmem>>, vector<32x64xf32>
    %cst_49 = arith.constant dense<0.000000e+00> : vector<32x128xf32>
    %76 = tpu.matmul %75, %74, %cst_49 {dimension_numbers = #tpu.dot_dimension_numbers<[1], [0], [0], [1], [0, 0, 1, 1], [], []>} : vector<32x64xf32>, vector<64x128xf32>, vector<32x128xf32> -> vector<32x128xf32>
    %c0_50 = arith.constant 0 : index
    %c0_51 = arith.constant 0 : index
    %77 = vector.load %arg5[%c0_50, %c0_51] : memref<32x1xf32, #tpu.memory_space<vmem>>, vector<32x1xf32>
    %c1_i32_52 = arith.constant 1 : i32
    %78 = tpu.dynamic_rotate %76 by %c1_i32_52 dim 0 : vector<32x128xf32>, i32 -> vector<32x128xf32>
    %c31_i32 = arith.constant 31 : i32
    %79 = tpu.dynamic_rotate %76 by %c31_i32 dim 0 : vector<32x128xf32>, i32 -> vector<32x128xf32>
    %80 = tpu.concatenate %78, %76, %79 in 1 : vector<32x128xf32>, vector<32x128xf32>, vector<32x128xf32> -> vector<32x384xf32>
    %81 = arith.truncf %80 : vector<32x384xf32> to vector<32x384xbf16>
    %c4 = arith.constant 4 : index
    %c0_53 = arith.constant 0 : index
    %c0_54 = arith.constant 0 : index
    %82 = vector.load %arg10[%c4, %c0_53, %c0_54] : memref<6x384x128xbf16, #tpu.memory_space<vmem>>, vector<1x384x128xbf16>
    %83 = vector.shape_cast %82 : vector<1x384x128xbf16> to vector<384x128xbf16>
    %cst_55 = arith.constant dense<0.000000e+00> : vector<32x128xf32>
    %84 = tpu.matmul %81, %83, %cst_55 {dimension_numbers = #tpu.dot_dimension_numbers<[1], [0], [0], [1], [0, 0, 1, 1], [], []>} : vector<32x384xbf16>, vector<384x128xbf16>, vector<32x128xf32> -> vector<32x128xf32>
    %c4_56 = arith.constant 4 : index
    %c0_57 = arith.constant 0 : index
    %c0_58 = arith.constant 0 : index
    %85 = vector.load %arg11[%c4_56, %c0_57, %c0_58] : memref<6x1x128xf32, #tpu.memory_space<vmem>>, vector<1x1x128xf32>
    %86 = vector.shape_cast %85 : vector<1x1x128xf32> to vector<1x128xf32>
    %87 = vector.broadcast %86 : vector<1x128xf32> to vector<32x128xf32>
    %88 = arith.addf %84, %87 : vector<32x128xf32>
    %cst_59 = arith.constant 0.000000e+00 : f32
    %89 = vector.broadcast %cst_59 : f32 to vector<32x128xf32>
    %90 = arith.maximumf %88, %89 : vector<32x128xf32>
    %91 = vector.broadcast %77 : vector<32x1xf32> to vector<32x128xf32>
    %92 = arith.mulf %90, %91 : vector<32x128xf32>
    %93 = arith.addf %76, %92 : vector<32x128xf32>
    %c0_60 = arith.constant 0 : index
    %c0_61 = arith.constant 0 : index
    %94 = vector.load %arg5[%c0_60, %c0_61] : memref<32x1xf32, #tpu.memory_space<vmem>>, vector<32x1xf32>
    %c1_i32_62 = arith.constant 1 : i32
    %95 = tpu.dynamic_rotate %93 by %c1_i32_62 dim 0 : vector<32x128xf32>, i32 -> vector<32x128xf32>
    %c31_i32_63 = arith.constant 31 : i32
    %96 = tpu.dynamic_rotate %93 by %c31_i32_63 dim 0 : vector<32x128xf32>, i32 -> vector<32x128xf32>
    %97 = tpu.concatenate %95, %93, %96 in 1 : vector<32x128xf32>, vector<32x128xf32>, vector<32x128xf32> -> vector<32x384xf32>
    %98 = arith.truncf %97 : vector<32x384xf32> to vector<32x384xbf16>
    %c5 = arith.constant 5 : index
    %c0_64 = arith.constant 0 : index
    %c0_65 = arith.constant 0 : index
    %99 = vector.load %arg10[%c5, %c0_64, %c0_65] : memref<6x384x128xbf16, #tpu.memory_space<vmem>>, vector<1x384x128xbf16>
    %100 = vector.shape_cast %99 : vector<1x384x128xbf16> to vector<384x128xbf16>
    %cst_66 = arith.constant dense<0.000000e+00> : vector<32x128xf32>
    %101 = tpu.matmul %98, %100, %cst_66 {dimension_numbers = #tpu.dot_dimension_numbers<[1], [0], [0], [1], [0, 0, 1, 1], [], []>} : vector<32x384xbf16>, vector<384x128xbf16>, vector<32x128xf32> -> vector<32x128xf32>
    %c5_67 = arith.constant 5 : index
    %c0_68 = arith.constant 0 : index
    %c0_69 = arith.constant 0 : index
    %102 = vector.load %arg11[%c5_67, %c0_68, %c0_69] : memref<6x1x128xf32, #tpu.memory_space<vmem>>, vector<1x1x128xf32>
    %103 = vector.shape_cast %102 : vector<1x1x128xf32> to vector<1x128xf32>
    %104 = vector.broadcast %103 : vector<1x128xf32> to vector<32x128xf32>
    %105 = arith.addf %101, %104 : vector<32x128xf32>
    %cst_70 = arith.constant 0.000000e+00 : f32
    %106 = vector.broadcast %cst_70 : f32 to vector<32x128xf32>
    %107 = arith.maximumf %105, %106 : vector<32x128xf32>
    %108 = vector.broadcast %94 : vector<32x1xf32> to vector<32x128xf32>
    %109 = arith.mulf %107, %108 : vector<32x128xf32>
    %110 = arith.addf %93, %109 : vector<32x128xf32>
    %c31_i32_71 = arith.constant 31 : i32
    %111 = tpu.dynamic_rotate %110 by %c31_i32_71 dim 0 : vector<32x128xf32>, i32 -> vector<32x128xf32>
    %112 = arith.maximumf %110, %111 : vector<32x128xf32>
    %c0_72 = arith.constant 0 : index
    %c0_73 = arith.constant 0 : index
    %113 = vector.load %arg8[%c0_72, %c0_73] : memref<16x32xf32, #tpu.memory_space<vmem>>, vector<16x32xf32>
    %cst_74 = arith.constant dense<0.000000e+00> : vector<16x128xf32>
    %114 = tpu.matmul %113, %112, %cst_74 {dimension_numbers = #tpu.dot_dimension_numbers<[1], [0], [0], [1], [0, 0, 1, 1], [], []>} : vector<16x32xf32>, vector<32x128xf32>, vector<16x128xf32> -> vector<16x128xf32>
    %c0_75 = arith.constant 0 : index
    %c0_76 = arith.constant 0 : index
    %c0_77 = arith.constant 0 : index
    %115 = vector.load %arg9[%c0_75, %c0_76, %c0_77] : memref<3x4x16xf32, #tpu.memory_space<vmem>>, vector<1x4x16xf32>
    %116 = vector.shape_cast %115 : vector<1x4x16xf32> to vector<4x16xf32>
    %cst_78 = arith.constant dense<0.000000e+00> : vector<4x128xf32>
    %117 = tpu.matmul %116, %114, %cst_78 {dimension_numbers = #tpu.dot_dimension_numbers<[1], [0], [0], [1], [0, 0, 1, 1], [], []>} : vector<4x16xf32>, vector<16x128xf32>, vector<4x128xf32> -> vector<4x128xf32>
    %c1_79 = arith.constant 1 : index
    %c0_80 = arith.constant 0 : index
    %c0_81 = arith.constant 0 : index
    %118 = vector.load %arg9[%c1_79, %c0_80, %c0_81] : memref<3x4x16xf32, #tpu.memory_space<vmem>>, vector<1x4x16xf32>
    %119 = vector.shape_cast %118 : vector<1x4x16xf32> to vector<4x16xf32>
    %cst_82 = arith.constant dense<0.000000e+00> : vector<4x128xf32>
    %120 = tpu.matmul %119, %114, %cst_82 {dimension_numbers = #tpu.dot_dimension_numbers<[1], [0], [0], [1], [0, 0, 1, 1], [], []>} : vector<4x16xf32>, vector<16x128xf32>, vector<4x128xf32> -> vector<4x128xf32>
    %c2_83 = arith.constant 2 : index
    %c0_84 = arith.constant 0 : index
    %c0_85 = arith.constant 0 : index
    %121 = vector.load %arg9[%c2_83, %c0_84, %c0_85] : memref<3x4x16xf32, #tpu.memory_space<vmem>>, vector<1x4x16xf32>
    %122 = vector.shape_cast %121 : vector<1x4x16xf32> to vector<4x16xf32>
    %cst_86 = arith.constant dense<0.000000e+00> : vector<4x128xf32>
    %123 = tpu.matmul %122, %114, %cst_86 {dimension_numbers = #tpu.dot_dimension_numbers<[1], [0], [0], [1], [0, 0, 1, 1], [], []>} : vector<4x16xf32>, vector<16x128xf32>, vector<4x128xf32> -> vector<4x128xf32>
    %124 = tpu.concatenate %117, %120, %123 in 1 : vector<4x128xf32>, vector<4x128xf32>, vector<4x128xf32> -> vector<4x384xf32>
    %125 = arith.truncf %124 : vector<4x384xf32> to vector<4x384xbf16>
    %c0_87 = arith.constant 0 : index
    %c0_88 = arith.constant 0 : index
    %126 = vector.load %arg12[%c0_87, %c0_88] : memref<384x32xbf16, #tpu.memory_space<vmem>>, vector<384x32xbf16>
    %cst_89 = arith.constant dense<0.000000e+00> : vector<4x32xf32>
    %127 = tpu.matmul %125, %126, %cst_89 {dimension_numbers = #tpu.dot_dimension_numbers<[1], [0], [0], [1], [0, 0, 1, 1], [], []>} : vector<4x384xbf16>, vector<384x32xbf16>, vector<4x32xf32> -> vector<4x32xf32>
    %c0_90 = arith.constant 0 : index
    %c0_91 = arith.constant 0 : index
    %128 = vector.load %arg13[%c0_90, %c0_91] : memref<1x32xf32, #tpu.memory_space<vmem>>, vector<1x32xf32>
    %129 = vector.broadcast %128 : vector<1x32xf32> to vector<4x32xf32>
    %130 = arith.addf %127, %129 : vector<4x32xf32>
    %cst_92 = arith.constant 0.000000e+00 : f32
    %131 = vector.broadcast %cst_92 : f32 to vector<4x32xf32>
    %132 = arith.maximumf %130, %131 : vector<4x32xf32>
    %c0_93 = arith.constant 0 : index
    %c0_94 = arith.constant 0 : index
    %133 = vector.load %arg2[%c0_93, %c0_94] : memref<4x64xf32, #tpu.memory_space<vmem>>, vector<4x64xf32>
    %134 = arith.truncf %133 : vector<4x64xf32> to vector<4x64xbf16>
    %c0_95 = arith.constant 0 : index
    %c0_96 = arith.constant 0 : index
    %135 = vector.load %arg14[%c0_95, %c0_96] : memref<64x512xbf16, #tpu.memory_space<vmem>>, vector<64x512xbf16>
    %cst_97 = arith.constant dense<0.000000e+00> : vector<4x512xf32>
    %136 = tpu.matmul %134, %135, %cst_97 {dimension_numbers = #tpu.dot_dimension_numbers<[1], [0], [0], [1], [0, 0, 1, 1], [], []>} : vector<4x64xbf16>, vector<64x512xbf16>, vector<4x512xf32> -> vector<4x512xf32>
    %c0_98 = arith.constant 0 : index
    %c0_99 = arith.constant 0 : index
    %137 = vector.load %arg15[%c0_98, %c0_99] : memref<1x512xf32, #tpu.memory_space<vmem>>, vector<1x512xf32>
    %138 = vector.broadcast %137 : vector<1x512xf32> to vector<4x512xf32>
    %139 = arith.addf %136, %138 : vector<4x512xf32>
    %cst_100 = arith.constant 0.000000e+00 : f32
    %140 = vector.broadcast %cst_100 : f32 to vector<4x512xf32>
    %141 = arith.maximumf %139, %140 : vector<4x512xf32>
    %142 = arith.truncf %141 : vector<4x512xf32> to vector<4x512xbf16>
    %c0_101 = arith.constant 0 : index
    %c0_102 = arith.constant 0 : index
    %143 = vector.load %arg16[%c0_101, %c0_102] : memref<512x256xbf16, #tpu.memory_space<vmem>>, vector<512x256xbf16>
    %cst_103 = arith.constant dense<0.000000e+00> : vector<4x256xf32>
    %144 = tpu.matmul %142, %143, %cst_103 {dimension_numbers = #tpu.dot_dimension_numbers<[1], [0], [0], [1], [0, 0, 1, 1], [], []>} : vector<4x512xbf16>, vector<512x256xbf16>, vector<4x256xf32> -> vector<4x256xf32>
    %c0_104 = arith.constant 0 : index
    %c0_105 = arith.constant 0 : index
    %145 = vector.load %arg17[%c0_104, %c0_105] : memref<1x256xf32, #tpu.memory_space<vmem>>, vector<1x256xf32>
    %146 = vector.broadcast %145 : vector<1x256xf32> to vector<4x256xf32>
    %147 = arith.addf %144, %146 : vector<4x256xf32>
    %cst_106 = arith.constant 0.000000e+00 : f32
    %148 = vector.broadcast %cst_106 : f32 to vector<4x256xf32>
    %149 = arith.maximumf %147, %148 : vector<4x256xf32>
    %150 = arith.truncf %132 : vector<4x32xf32> to vector<4x32xbf16>
    %c0_107 = arith.constant 0 : index
    %c0_108 = arith.constant 0 : index
    %151 = vector.load %arg18[%c0_107, %c0_108] : memref<32x128xbf16, #tpu.memory_space<vmem>>, vector<32x128xbf16>
    %cst_109 = arith.constant dense<0.000000e+00> : vector<4x128xf32>
    %152 = tpu.matmul %150, %151, %cst_109 {dimension_numbers = #tpu.dot_dimension_numbers<[1], [0], [0], [1], [0, 0, 1, 1], [], []>} : vector<4x32xbf16>, vector<32x128xbf16>, vector<4x128xf32> -> vector<4x128xf32>
    %153 = arith.truncf %149 : vector<4x256xf32> to vector<4x256xbf16>
    %c0_110 = arith.constant 0 : index
    %c0_111 = arith.constant 0 : index
    %154 = vector.load %arg19[%c0_110, %c0_111] : memref<256x128xbf16, #tpu.memory_space<vmem>>, vector<256x128xbf16>
    %cst_112 = arith.constant dense<0.000000e+00> : vector<4x128xf32>
    %155 = tpu.matmul %153, %154, %cst_112 {dimension_numbers = #tpu.dot_dimension_numbers<[1], [0], [0], [1], [0, 0, 1, 1], [], []>} : vector<4x256xbf16>, vector<256x128xbf16>, vector<4x128xf32> -> vector<4x128xf32>
    %156 = arith.addf %152, %155 : vector<4x128xf32>
    %c0_113 = arith.constant 0 : index
    %c0_114 = arith.constant 0 : index
    %157 = vector.load %arg20[%c0_113, %c0_114] : memref<1x128xf32, #tpu.memory_space<vmem>>, vector<1x128xf32>
    %158 = vector.broadcast %157 : vector<1x128xf32> to vector<4x128xf32>
    %159 = arith.addf %156, %158 : vector<4x128xf32>
    %cst_115 = arith.constant 0.000000e+00 : f32
    %160 = vector.broadcast %cst_115 : f32 to vector<4x128xf32>
    %161 = arith.maximumf %159, %160 : vector<4x128xf32>
    %162 = arith.truncf %161 : vector<4x128xf32> to vector<4x128xbf16>
    %c0_116 = arith.constant 0 : index
    %c0_117 = arith.constant 0 : index
    %163 = vector.load %arg21[%c0_116, %c0_117] : memref<128x128xbf16, #tpu.memory_space<vmem>>, vector<128x128xbf16>
    %cst_118 = arith.constant dense<0.000000e+00> : vector<4x128xf32>
    %164 = tpu.matmul %162, %163, %cst_118 {dimension_numbers = #tpu.dot_dimension_numbers<[1], [0], [0], [1], [0, 0, 1, 1], [], []>} : vector<4x128xbf16>, vector<128x128xbf16>, vector<4x128xf32> -> vector<4x128xf32>
    %c0_119 = arith.constant 0 : index
    %c0_120 = arith.constant 0 : index
    %165 = vector.load %arg22[%c0_119, %c0_120] : memref<1x128xf32, #tpu.memory_space<vmem>>, vector<1x128xf32>
    %166 = vector.broadcast %165 : vector<1x128xf32> to vector<4x128xf32>
    %167 = arith.addf %164, %166 : vector<4x128xf32>
    %cst_121 = arith.constant 0.000000e+00 : f32
    %168 = vector.broadcast %cst_121 : f32 to vector<4x128xf32>
    %169 = arith.subf %168, %167 : vector<4x128xf32>
    %170 = math.exp %169 : vector<4x128xf32>
    %cst_122 = arith.constant 1.000000e+00 : f32
    %171 = vector.broadcast %cst_122 : f32 to vector<4x128xf32>
    %172 = arith.addf %171, %170 : vector<4x128xf32>
    %cst_123 = arith.constant 1.000000e+00 : f32
    %173 = vector.broadcast %cst_123 : f32 to vector<4x128xf32>
    %174 = arith.divf %173, %172 : vector<4x128xf32>
    %c0_124 = arith.constant 0 : index
    %c0_125 = arith.constant 0 : index
    %175 = vector.load %arg23[%c0_124, %c0_125] : memref<4x128xf32, #tpu.memory_space<vmem>>, vector<4x128xf32>
    tpu.vector_store %arg23[%c0_124, %c0_125], %174 {strides = array<i32>} : memref<4x128xf32, #tpu.memory_space<vmem>>, vector<4x128xf32>,
    return
  }
  func.func @transform_0(%arg0: i32) -> (i32, i32) {
    %c0_i32 = arith.constant 0 : i32
    %c0_i32_0 = arith.constant 0 : i32
    %c0_i32_1 = arith.constant 0 : i32
    return %c0_i32, %c0_i32_0 : i32, i32
  }
  func.func @transform_1(%arg0: i32) -> (i32, i32) {
    %c0_i32 = arith.constant 0 : i32
    %c0_i32_0 = arith.constant 0 : i32
    %c0_i32_1 = arith.constant 0 : i32
    return %c0_i32, %c0_i32_0 : i32, i32
  }
  func.func @transform_2(%arg0: i32) -> (i32, i32) {
    %c0_i32 = arith.constant 0 : i32
    %c0_i32_0 = arith.constant 0 : i32
    %c0_i32_1 = arith.constant 0 : i32
    return %c0_i32, %c0_i32_0 : i32, i32
  }
  func.func @transform_3(%arg0: i32) -> (i32, i32) {
    %c0_i32 = arith.constant 0 : i32
    %c0_i32_0 = arith.constant 0 : i32
    %c0_i32_1 = arith.constant 0 : i32
    return %c0_i32, %c0_i32_0 : i32, i32
  }
  func.func @transform_4(%arg0: i32) -> (i32, i32) {
    %c0_i32 = arith.constant 0 : i32
    %c0_i32_0 = arith.constant 0 : i32
    %c0_i32_1 = arith.constant 0 : i32
    return %c0_i32, %c0_i32_0 : i32, i32
  }
  func.func @transform_5(%arg0: i32) -> (i32, i32) {
    %c0_i32 = arith.constant 0 : i32
    %c0_i32_0 = arith.constant 0 : i32
    %c0_i32_1 = arith.constant 0 : i32
    return %c0_i32, %c0_i32_0 : i32, i32
  }
  func.func @transform_6(%arg0: i32) -> (i32, i32) {
    %c0_i32 = arith.constant 0 : i32
    %c0_i32_0 = arith.constant 0 : i32
    %c0_i32_1 = arith.constant 0 : i32
    return %c0_i32, %c0_i32_0 : i32, i32
  }
  func.func @transform_7(%arg0: i32) -> (i32, i32) {
    %c0_i32 = arith.constant 0 : i32
    %c0_i32_0 = arith.constant 0 : i32
    %c0_i32_1 = arith.constant 0 : i32
    return %c0_i32, %c0_i32_0 : i32, i32
  }
  func.func @transform_8(%arg0: i32) -> (i32, i32, i32) {
    %c0_i32 = arith.constant 0 : i32
    %c0_i32_0 = arith.constant 0 : i32
    %c0_i32_1 = arith.constant 0 : i32
    %c0_i32_2 = arith.constant 0 : i32
    return %c0_i32, %c0_i32_0, %c0_i32_1 : i32, i32, i32
  }
  func.func @transform_9(%arg0: i32) -> (i32, i32, i32) {
    %c0_i32 = arith.constant 0 : i32
    %c0_i32_0 = arith.constant 0 : i32
    %c0_i32_1 = arith.constant 0 : i32
    %c0_i32_2 = arith.constant 0 : i32
    return %c0_i32, %c0_i32_0, %c0_i32_1 : i32, i32, i32
  }
  func.func @transform_10(%arg0: i32) -> (i32, i32, i32) {
    %c0_i32 = arith.constant 0 : i32
    %c0_i32_0 = arith.constant 0 : i32
    %c0_i32_1 = arith.constant 0 : i32
    %c0_i32_2 = arith.constant 0 : i32
    return %c0_i32, %c0_i32_0, %c0_i32_1 : i32, i32, i32
  }
  func.func @transform_11(%arg0: i32) -> (i32, i32) {
    %c0_i32 = arith.constant 0 : i32
    %c0_i32_0 = arith.constant 0 : i32
    %c0_i32_1 = arith.constant 0 : i32
    return %c0_i32, %c0_i32_0 : i32, i32
  }
  func.func @transform_12(%arg0: i32) -> (i32, i32) {
    %c0_i32 = arith.constant 0 : i32
    %c0_i32_0 = arith.constant 0 : i32
    %c0_i32_1 = arith.constant 0 : i32
    return %c0_i32, %c0_i32_0 : i32, i32
  }
  func.func @transform_13(%arg0: i32) -> (i32, i32) {
    %c0_i32 = arith.constant 0 : i32
    %c0_i32_0 = arith.constant 0 : i32
    %c0_i32_1 = arith.constant 0 : i32
    return %c0_i32, %c0_i32_0 : i32, i32
  }
  func.func @transform_14(%arg0: i32) -> (i32, i32) {
    %c0_i32 = arith.constant 0 : i32
    %c0_i32_0 = arith.constant 0 : i32
    %c0_i32_1 = arith.constant 0 : i32
    return %c0_i32, %c0_i32_0 : i32, i32
  }
  func.func @transform_15(%arg0: i32) -> (i32, i32) {
    %c0_i32 = arith.constant 0 : i32
    %c0_i32_0 = arith.constant 0 : i32
    %c0_i32_1 = arith.constant 0 : i32
    return %c0_i32, %c0_i32_0 : i32, i32
  }
  func.func @transform_16(%arg0: i32) -> (i32, i32) {
    %c0_i32 = arith.constant 0 : i32
    %c0_i32_0 = arith.constant 0 : i32
    %c0_i32_1 = arith.constant 0 : i32
    return %c0_i32, %c0_i32_0 : i32, i32
  }
  func.func @transform_17(%arg0: i32) -> (i32, i32) {
    %c0_i32 = arith.constant 0 : i32
    %c0_i32_0 = arith.constant 0 : i32
    %c0_i32_1 = arith.constant 0 : i32
    return %c0_i32, %c0_i32_0 : i32, i32
  }
  func.func @transform_18(%arg0: i32) -> (i32, i32) {
    %c0_i32 = arith.constant 0 : i32
    %c0_i32_0 = arith.constant 0 : i32
    %c0_i32_1 = arith.constant 0 : i32
    return %c0_i32, %c0_i32_0 : i32, i32
  }
  func.func @transform_19(%arg0: i32) -> (i32, i32) {
    %c0_i32 = arith.constant 0 : i32
    %c0_i32_0 = arith.constant 0 : i32
    %c0_i32_1 = arith.constant 0 : i32
    return %c0_i32, %c0_i32_0 : i32, i32
  }
  func.func @transform_20(%arg0: i32) -> (i32, i32) {
    %c0_i32 = arith.constant 0 : i32
    %c0_i32_0 = arith.constant 0 : i32
    %c0_i32_1 = arith.constant 0 : i32
    return %c0_i32, %c0_i32_0 : i32, i32
  }
  func.func @transform_21(%arg0: i32) -> (i32, i32) {
    %c0_i32 = arith.constant 0 : i32
    %c0_i32_0 = arith.constant 0 : i32
    %c0_i32_1 = arith.constant 0 : i32
    return %c0_i32, %c0_i32_0 : i32, i32
  }
  func.func @transform_22(%arg0: i32) -> (i32, i32) {
    %c0_i32 = arith.constant 0 : i32
    %c0_i32_0 = arith.constant 0 : i32
    %c0_i32_1 = arith.constant 0 : i32
    return %c0_i32, %c0_i32_0 : i32, i32
  }
}

</mosaic_0001>

<bundles_post_ra>
// kernel: forward.1
= control target key start
LH: loop header
LB: loop body
LE: loop exit
PB: predicated region body
PF: predicated region fallthrough
CT: control target
= control target key end

     0   :  { %v120_v15 = vlaneseq  ;;  %v5645_v25 = vmov 0   ;;  %vm2027_vm2 = vcmask 523264   ;;  %vm2685_vm3 = vcmask 261120   ;;  %s7942_s9 = inlined_call_operand.vmem [shape: bf16[6,384,128], index: 9, kind: input, shape index: {}]   ;;  %s7943_s0 = inlined_call_operand.vmem [shape: f32[128,128], index: 0, kind: input, shape index: {}]   ;;  %s7944_s2 = inlined_call_operand.vmem [shape: f32[128,1], index: 2, kind: input, shape index: {}]   ;;  %s7945_s10 = inlined_call_operand.vmem [shape: f32[6,1,128], index: 10, kind: input, shape index: {}]   ;;  %s7946_s3 = inlined_call_operand.vmem [shape: f32[64,1], index: 3, kind: input, shape index: {}]   ;;  %s7947_s4 = inlined_call_operand.vmem [shape: f32[32,1], index: 4, kind: input, shape index: {}]   ;;  %s7948_s5 = inlined_call_operand.vmem [shape: f32[64,128], index: 5, kind: input, shape index: {}]   ;;  %s7949_s6 = inlined_call_operand.vmem [shape: f32[32,64], index: 6, kind: input, shape index: {}]   ;;  %s7950_s7 = inlined_call_operand.vmem [shape: f32[16,32], index: 7, kind: input, shape index: {}]   ;;  %s7951_s11 = inlined_call_operand.vmem [shape: bf16[384,32], index: 11, kind: input, shape index: {}]   ;;  %s7952_s8 = inlined_call_operand.vmem [shape: f32[3,4,16], index: 8, kind: input, shape index: {}]   ;;  %s7953_s13 = inlined_call_operand.vmem [shape: bf16[64,512], index: 13, kind: input, shape index: {}]   ;;  %s7954_s1 = inlined_call_operand.vmem [shape: f32[4,64], index: 1, kind: input, shape index: {}]   ;;  %s7955_s12 = inlined_call_operand.vmem [shape: f32[1,32], index: 12, kind: input, shape index: {}]   ;;  %s7956_s15 = inlined_call_operand.vmem [shape: bf16[512,256], index: 15, kind: input, shape index: {}]   ;;  %s7957_s14 = inlined_call_operand.vmem [shape: f32[1,512], index: 14, kind: input, shape index: {}]   ;;  %s7958_s17 = inlined_call_operand.vmem [shape: bf16[32,128], index: 17, kind: input, shape index: {}]   ;;  %s7959_s18 = inlined_call_operand.vmem [shape: bf16[256,128], index: 18, kind: input, shape index: {}]   ;;  %s7960_s16 = inlined_call_operand.vmem [shape: f32[1,256], index: 16, kind: input, shape index: {}]   ;;  %s7961_s20 = inlined_call_operand.vmem [shape: bf16[128,128], index: 20, kind: input, shape index: {}]   ;;  %s7962_s19 = inlined_call_operand.vmem [shape: f32[1,128], index: 19, kind: input, shape index: {}]   ;;  %s7963_s21 = inlined_call_operand.vmem [shape: f32[1,128], index: 21, kind: input, shape index: {}]   ;;  %s7964_s22 = inlined_call_operand.vmem [shape: f32[4,128], index: 22, kind: output, shape index: {}]  }
   0x1   :  { %7994 = sst [smem:[#allocation30_spill]] %s7942_s9  ;;  %5629 = vset.pattern.permute.xlu0 %v5645_v25  ;;  %5630 = vset.pattern.permute.xlu1 %v5645_v25  ;;  %vm2716_vm4 = vcmask 130048  }
   0x2   :  { %7995 = sst [smem:[#allocation31_spill]] %s7943_s0  ;;  %v5836_v24 = vshrl.u32 %v120_v15, 7  ;;  %5631 = vset.pattern.permute.xlu2 %v5645_v25 }
   0x3   :  { %7996 = sst [smem:[#allocation32_spill]] %s7944_s2 }
   0x4   :  { %7997 = sst [smem:[#allocation33_spill]] %s7945_s10  ;;  %8004 = vst [vmem:[#allocation2_spill] sm:$0xff] %v5836_v24  ;;  %vm122_vm0 = vcmp.lt.s32.totalorder %v5836_v24, 1  ;;  %vm155_vm1 = vcmp.lt.s32.totalorder %v5836_v24, 7 }
   0x5   :  { %7998 = sst [smem:[#allocation34_spill]] %s7946_s3 }
   0x6   :  { %7999 = sst [smem:[#allocation35_spill]] %s7947_s4 }
   0x7   :  { %8000 = sst [smem:[#allocation36_spill]] %s7948_s5 }
   0x8   :  { %s8001_s29 = sld [smem:[#allocation30_spill]] }
   0x9   :  { %s8002_s25 = sld [smem:[#allocation31_spill]] }
   0xa   :  { %s8003_s28 = sld [smem:[#allocation32_spill]] }
   0xb   :  { %s8005_s0 = sld [smem:[#allocation34_spill]] }
   0xc   :  { %s8006_s10 = sld [smem:[#allocation35_spill]] }
   0xd   :  { %s8007_s23 = sld [smem:[#allocation33_spill]] }
   0xe   :  { %v5361_v0 = vld [vmem:[%s8001_s29 + $0x38] sm:$0xff]  ;;  %v5360_v3 = vld [vmem:[%s8001_s29 + $0x30] sm:$0xff]  ;;  %v5359_v6 = vld [vmem:[%s8001_s29 + $0x28] sm:$0xff]  ;;  %s8063_s26 = sld [smem:[#allocation36_spill]] }
   0xf   :  { %v5369_v1 = vld [vmem:[%s8001_s29 + $0x78] sm:$0xff]  ;;  %392 = vmatpush.bf16.msra.mxu0 %v5361_v0  ;;  %v5368_v4 = vld [vmem:[%s8001_s29 + $0x70] sm:$0xff]  ;;  %v5367_v7 = vld [vmem:[%s8001_s29 + $0x68] sm:$0xff] }
  0x10   :  { %v5377_v2 = vld [vmem:[%s8001_s29 + $0xb8] sm:$0xff]  ;;  %441 = vmatpush.bf16.msra.mxu1 %v5369_v1  ;;  %v5376_v5 = vld [vmem:[%s8001_s29 + $0xb0] sm:$0xff]  ;;  %v5375_v8 = vld [vmem:[%s8001_s29 + $0xa8] sm:$0xff] }
  0x11   :  { %490 = vmatpush.bf16.msra.mxu2 %v5377_v2  ;;  %v5358_v9 = vld [vmem:[%s8001_s29 + $0x20] sm:$0xff]  ;;  %v5357_v12 = vld [vmem:[%s8001_s29 + $0x18] sm:$0xff]  ;;  %v5356_v16 = vld [vmem:[%s8001_s29 + $0x10] sm:$0xff] }
  0x12   :  { %v5366_v10 = vld [vmem:[%s8001_s29 + $0x60] sm:$0xff]  ;;  %v5365_v13 = vld [vmem:[%s8001_s29 + $0x58] sm:$0xff]  ;;  %v5364_v17 = vld [vmem:[%s8001_s29 + $0x50] sm:$0xff] }
  0x13   :  { %393 = vmatpush.bf16.msra.mxu0 %v5360_v3  ;;  %v5374_v11 = vld [vmem:[%s8001_s29 + $0xa0] sm:$0xff]  ;;  %v5373_v14 = vld [vmem:[%s8001_s29 + $0x98] sm:$0xff]  ;;  %v5372_v18 = vld [vmem:[%s8001_s29 + $0x90] sm:$0xff] }
  0x14   :  { %442 = vmatpush.bf16.msra.mxu1 %v5368_v4  ;;  %v5818_v19 = vld [vmem:[%s8002_s25] sm:$0xff]  ;;  %v5823_v20 = vld [vmem:[%s8002_s25 + $0x8] sm:$0xff]  ;;  %v103_v22 = vld [vmem:[%s8003_s28 + $0x78] sm:$0xff] }
  0x15   :  { %491 = vmatpush.bf16.msra.mxu2 %v5376_v5  ;;  %v88_v21 = vld [vmem:[%s8003_s28] sm:$0xff]  ;;  %v5834_v23 = vld [vmem:[%s8002_s25 + $0x78] sm:$0xff]  ;;  %v5841_v26 = vld [vmem:[%s8002_s25 + $0x10] sm:$0xff]  ;;  %632 = vperm.xlu1 %5630, %v103_v22   ;;  %v104_v29 = vrot.slane %v5818_v19, 7  ;;  %v105_v30 = vrot.slane %v5823_v20, 7  ;;  %v139_v33 = vrot.slane %v5818_v19, 1  ;;  %v173_v45 = vpack.c.bf16 %v5823_v20, %v5818_v19 }
  0x16   :  { %557 = vperm.xlu0 %5629, %v88_v21   ;;  %v5355_v27 = vld [vmem:[%s8001_s29 + $0x8] sm:$0xff]  ;;  %v119_v31 = vrot.slane %v5834_v23, 7  ;;  %v140_v34 = vrot.slane %v5823_v20, 1  ;;  %v141_v35 = vrot.slane %v5841_v26, 1  ;;  %v5354_v37 = vld [vmem:[%s8001_s29] sm:$0xff]  ;;  %v90_v47 = vld [vmem:[%s8003_s28 + $0x10] sm:$0xff] }
  0x17   :  { %394 = vmatpush.bf16.msra.mxu0 %v5359_v6  ;;  %v5363_v28 = vld [vmem:[%s8001_s29 + $0x48] sm:$0xff]  ;;  %v5362_v38 = vld [vmem:[%s8001_s29 + $0x40] sm:$0xff]  ;;  %v137_v39 = vsel %vm122_vm0, %v104_v29, %v105_v30  ;;  %v5892_v48 = vld [vmem:[%s8002_s25 + $0x18] sm:$0xff]  ;;  %v106_v50 = vrot.slane %v5841_v26, 7 }
  0x18   :  { %443 = vmatpush.bf16.msra.mxu1 %v5367_v7  ;;  %v5371_v32 = vld [vmem:[%s8001_s29 + $0x88] sm:$0xff]  ;;  %v138_v40 = vsel %vm122_vm0, %v119_v31, %v104_v29  ;;  %v5370_v41 = vld [vmem:[%s8001_s29 + $0x80] sm:$0xff]  ;;  %v169_v42 = vsel %vm155_vm1, %v140_v34, %v141_v35  ;;  %v170_v43 = vsel %vm155_vm1, %v139_v33, %v140_v34  ;;  %v107_v51 = vrot.slane %v5892_v48, 7  ;;  %v5924_v63 = vld [vmem:[%s8002_s25 + $0x30] sm:$0xff] }
  0x19   :  { %492 = vmatpush.bf16.msra.mxu2 %v5375_v8  ;;  %v89_v36 = vld [vmem:[%s8003_s28 + $0x8] sm:$0xff]  ;;  %v172_v44 = vpack.c.bf16 %v137_v39, %v138_v40  ;;  %v174_v46 = vpack.c.bf16 %v169_v42, %v170_v43  ;;  %v5897_v49 = vld [vmem:[%s8002_s25 + $0x20] sm:$0xff]  ;;  %v142_v52 = vrot.slane %v5892_v48, 1  ;;  %v136_v55 = vsel %vm122_vm0, %v105_v30, %v106_v50  ;;  %v99_v42 = vld [vmem:[%s8003_s28 + $0x58] sm:$0xff] }
  0x1a   :  { %v143_v53 = vrot.slane %v5897_v49, 1  ;;  %v135_v54 = vsel %vm122_vm0, %v106_v50, %v107_v51  ;;  %v176_v59 = vpack.c.bf16 %v5892_v48, %v5841_v26  ;;  %v93_v61 = vld [vmem:[%s8003_s28 + $0x28] sm:$0xff]  ;;  %v108_v0 = vrot.slane %v5897_v49, 7  ;;  %v92_v21 = vld [vmem:[%s8003_s28 + $0x20] sm:$0xff] }
  0x1b   :  { %395 = vmatpush.bf16.msra.mxu0 %v5358_v9  ;;  %v168_v57 = vsel %vm155_vm1, %v141_v35, %v142_v52  ;;  %v175_v58 = vpack.c.bf16 %v135_v54, %v136_v55  ;;  %v5919_v62 = vld [vmem:[%s8002_s25 + $0x28] sm:$0xff]  ;;  %v145_v3 = vrot.slane %v5924_v63, 1  ;;  %v110_v15 = vrot.slane %v5924_v63, 7  ;;  %v96_v34 = vld [vmem:[%s8003_s28 + $0x40] sm:$0xff]  ;;  %v6018_v55 = vld [vmem:[%s8002_s25 + $0x58] sm:$0xff] }
  0x1c   :  { %444 = vmatpush.bf16.msra.mxu1 %v5366_v10  ;;  %v167_v56 = vsel %vm155_vm1, %v142_v52, %v143_v53  ;;  %v109_v1 = vrot.slane %v5919_v62, 7  ;;  %v144_v2 = vrot.slane %v5919_v62, 1  ;;  %v134_v5 = vsel %vm122_vm0, %v107_v51, %v108_v0  ;;  %v97_v35 = vld [vmem:[%s8003_s28 + $0x48] sm:$0xff]  ;;  %v95_v52 = vld [vmem:[%s8003_s28 + $0x38] sm:$0xff]  ;;  %v100_v54 = vld [vmem:[%s8003_s28 + $0x60] sm:$0xff] }
  0x1d   :  { %493 = vmatpush.bf16.msra.mxu2 %v5374_v11  ;;  %567 = vperm.xlu1 %5630, %v90_v47   ;;  %v177_v60 = vpack.c.bf16 %v167_v56, %v168_v57  ;;  %v179_v9 = vpack.c.bf16 %v5919_v62, %v5897_v49  ;;  %v91_v11 = vld [vmem:[%s8003_s28 + $0x18] sm:$0xff]  ;;  %v6023_v56 = vld [vmem:[%s8002_s25 + $0x60] sm:$0xff] }
  0x1e   :  { %562 = vperm.xlu0 %5629, %v89_v36   ;;  %v133_v4 = vsel %vm122_vm0, %v108_v0, %v109_v1  ;;  %v165_v6 = vsel %vm155_vm1, %v144_v2, %v145_v3  ;;  %v166_v7 = vsel %vm155_vm1, %v143_v53, %v144_v2  ;;  %572 = vperm.xlu2 %5631, %v91_v11   ;;  %v5982_v36 = vld [vmem:[%s8002_s25 + $0x48] sm:$0xff]  ;;  %v102_v53 = vld [vmem:[%s8003_s28 + $0x70] sm:$0xff] }
  0x1f   :  { %396 = vmatpush.bf16.msra.mxu0 %v5357_v12  ;;  %v178_v8 = vpack.c.bf16 %v133_v4, %v134_v5  ;;  %v180_v10 = vpack.c.bf16 %v165_v6, %v166_v7  ;;  %v94_v12 = vld [vmem:[%s8003_s28 + $0x30] sm:$0xff]  ;;  %v132_v25 = vsel %vm122_vm0, %v109_v1, %v110_v15  ;;  %v113_v39 = vrot.slane %v5982_v36, 7  ;;  %v1245_v7 = vld [vmem:[%s8005_s0] sm:$0xff] }
  0x20   :  { %445 = vmatpush.bf16.msra.mxu1 %v5365_v13  ;;  %v5949_v13 = vld [vmem:[%s8002_s25 + $0x38] sm:$0xff]  ;;  %v148_v40 = vrot.slane %v5982_v36, 1  ;;  %v98_v11 = vld [vmem:[%s8003_s28 + $0x50] sm:$0xff] }
  0x21   :  { %494 = vmatpush.bf16.msra.mxu2 %v5373_v14  ;;  %v5954_v14 = vld [vmem:[%s8002_s25 + $0x40] sm:$0xff]  ;;  %v182_v30 = vpack.c.bf16 %v5949_v13, %v5924_v63 }
  0x22   :  { %v185_v50 = vpack.c.bf16 %v5982_v36, %v5954_v14 }
  0x23   :  { %397 = vmatpush.bf16.msra.mxu0 %v5356_v16  ;;  %v111_v16 = vrot.slane %v5949_v13, 7 }
  0x24   :  { %446 = vmatpush.bf16.msra.mxu1 %v5364_v17  ;;  %v146_v17 = vrot.slane %v5949_v13, 1 }
  0x25   :  { %495 = vmatpush.bf16.msra.mxu2 %v5372_v18  ;;  %587 = vperm.xlu1 %5630, %v94_v12   ;;  %v147_v18 = vrot.slane %v5954_v14, 1  ;;  %v131_v22 = vsel %vm122_vm0, %v110_v15, %v111_v16  ;;  %v6062_v12 = vld [vmem:[%s8002_s25 + $0x70] sm:$0xff] }
  0x26   :  { %582 = vperm.xlu0 %5629, %v93_v61   ;;  %577 = vperm.xlu2 %5631, %v92_v21   ;;  %v181_v29 = vpack.c.bf16 %v131_v22, %v132_v25  ;;  %v1247_v61 = vld [vmem:[%s8005_s0 + $0x10] sm:$0xff]  ;;  %v153_v21 = vrot.slane %v6062_v12, 1  ;;  %v1252_v22 = vld [vmem:[%s8005_s0 + $0x38] sm:$0xff]  ;;  %v2069_v25 = vld [vmem:[%s8006_s10] sm:$0xff] }
  0x27   :  { %398 = vmatpush.bf16.msra.mxu0 %v5355_v27  ;;  %v163_v27 = vsel %vm155_vm1, %v146_v17, %v147_v18  ;;  %v5392_v15 = vld [vmem:[%s8001_s29 + $0x130] sm:$0xff] }
  0x28   :  { %447 = vmatpush.bf16.msra.mxu1 %v5363_v28  ;;  %v164_v28 = vsel %vm155_vm1, %v145_v3, %v146_v17 }
  0x29   :  { %496 = vmatpush.bf16.msra.mxu2 %v5371_v32  ;;  %v183_v32 = vpack.c.bf16 %v163_v27, %v164_v28 }
  0x2b   :  { %399 = vmatpush.bf16.msra.mxu0 %v5354_v37  ;;  %v5987_v37 = vld [vmem:[%s8002_s25 + $0x50] sm:$0xff] }
  0x2c   :  { %448 = vmatpush.bf16.msra.mxu1 %v5362_v38  ;;  %v112_v38 = vrot.slane %v5954_v14, 7  ;;  %v114_v57 = vrot.slane %v5987_v37, 7  ;;  %v188_v5 = vpack.c.bf16 %v6018_v55, %v5987_v37 }
  0x2d   :  { %497 = vmatpush.bf16.msra.mxu2 %v5370_v41  ;;  %602 = vperm.xlu1 %5630, %v97_v35   ;;  %v149_v41 = vrot.slane %v5987_v37, 1 }
  0x2e   :  { %400 = vmatmul.bf16.vlgmr.msra.gmra.mxu0 %v172_v44  ;;  %597 = vperm.xlu0 %5629, %v96_v34   ;;  %v129_v43 = vsel %vm122_vm0, %v112_v38, %v113_v39  ;;  %v130_v44 = vsel %vm122_vm0, %v111_v16, %v112_v38  ;;  %v128_v1 = vsel %vm122_vm0, %v113_v39, %v114_v57  ;;  %v116_v16 = vrot.slane %v6023_v56, 7  ;;  %v5391_v38 = vld [vmem:[%s8001_s29 + $0x128] sm:$0xff]  ;;  %v5401_v39 = vld [vmem:[%s8001_s29 + $0x178] sm:$0xff] }
  0x2f   :  { %449 = vmatmul.bf16.vlgmr.msra.gmra.mxu1 %v173_v45  ;;  %v161_v45 = vsel %vm155_vm1, %v148_v40, %v149_v41  ;;  %v184_v47 = vpack.c.bf16 %v129_v43, %v130_v44  ;;  %592 = vperm.xlu2 %5631, %v95_v52   ;;  %v2071_v43 = vld [vmem:[%s8006_s10 + $0x10] sm:$0xff] }
  0x30   :  { %498 = vmatmul.bf16.vlgmr.msra.gmra.mxu2 %v174_v46  ;;  %v162_v46 = vsel %vm155_vm1, %v147_v18, %v148_v40  ;;  %1051 = vmatpush.bf16.msrb.mxu1 %v5401_v39  ;;  %v5390_v40 = vld [vmem:[%s8001_s29 + $0x120] sm:$0xff]  ;;  %v5400_v44 = vld [vmem:[%s8001_s29 + $0x170] sm:$0xff] }
  0x31   :  { %v186_v51 = vpack.c.bf16 %v161_v45, %v162_v46  ;;  %v154_v45 = vrot.slane %v5834_v23, 1  ;;  %v5389_v46 = vld [vmem:[%s8001_s29 + $0x118] sm:$0xff] }
  0x33   :  { %v156_v52 = vsel %vm155_vm1, %v153_v21, %v154_v45 }
  0x34   :  { %1052 = vmatpush.bf16.msrb.mxu1 %v5400_v44 }
  0x35   :  { %617 = vperm.xlu1 %5630, %v100_v54  }
  0x36   :  { %612 = vperm.xlu0 %5629, %v99_v42   ;;  %v1250_v42 = vld [vmem:[%s8005_s0 + $0x28] sm:$0xff] }
  0x37   :  { %607 = vperm.xlu2 %5631, %v98_v11  }
  0x3d   :  { %1592 = vperm.xlu1 %5630, %v1245_v7   ;;  %v1246_v7 = vld [vmem:[%s8005_s0 + $0x8] sm:$0xff] }
  0x3e   :  { %405 = vmatmul.bf16.gmra.mxu0 %v175_v58  ;;  %627 = vperm.xlu0 %5629, %v102_v53   ;;  %v115_v58 = vrot.slane %v6018_v55, 7  ;;  %v171_v53 = vsel %vm155_vm1, %v154_v45, %v139_v33  ;;  %v5387_v33 = vld [vmem:[%s8001_s29 + $0x108] sm:$0xff] }
  0x3f   :  { %454 = vmatmul.bf16.gmra.mxu1 %v176_v59  ;;  %v150_v59 = vrot.slane %v6018_v55, 1 }
  0x40   :  { %503 = vmatmul.bf16.gmra.mxu2 %v177_v60  ;;  %v151_v60 = vrot.slane %v6023_v56, 1  ;;  %v127_v0 = vsel %vm122_vm0, %v114_v57, %v115_v58  ;;  %v126_v28 = vsel %vm122_vm0, %v115_v58, %v116_v16  ;;  %v194_v57 = vpack.c.bf16 %v5834_v23, %v6062_v12 }
  0x41   :  { %v160_v3 = vsel %vm155_vm1, %v149_v41, %v150_v59  ;;  %v187_v4 = vpack.c.bf16 %v127_v0, %v128_v1  ;;  %v118_v41 = vrot.slane %v6062_v12, 7  ;;  %v195_v58 = vpack.c.bf16 %v171_v53, %v156_v52  ;;  %v5386_v0 = vld [vmem:[%s8001_s29 + $0x100] sm:$0xff]  ;;  %v101_v1 = vld [vmem:[%s8003_s28 + $0x68] sm:$0xff] }
  0x42   :  { %v159_v2 = vsel %vm155_vm1, %v150_v59, %v151_v60  ;;  %v2070_v59 = vld [vmem:[%s8006_s10 + $0x8] sm:$0xff]  ;;  %622 = vperm.xlu2 %5631, %v101_v1  }
  0x43   :  { %v189_v6 = vpack.c.bf16 %v159_v2, %v160_v3  ;;  %v5396_v2 = vld [vmem:[%s8001_s29 + $0x150] sm:$0xff]  ;;  %v5395_v3 = vld [vmem:[%s8001_s29 + $0x148] sm:$0xff] }
  0x45   :  { %1627 = vperm.xlu1 %5630, %v1252_v22  }
  0x46   :  { %1602 = vperm.xlu0 %5629, %v1247_v61   ;;  %v5397_v61 = vld [vmem:[%s8001_s29 + $0x158] sm:$0xff] }
  0x4a   :  { %1597 = vperm.xlu2 %5631, %v1246_v7  }
  0x4d   :  { %1617 = vperm.xlu1 %5630, %v1250_v42  }
  0x4e   :  { %410 = vmatmul.bf16.gmra.mxu0 %v178_v8  ;;  %v1249_v8 = vld [vmem:[%s8005_s0 + $0x20] sm:$0xff] }
  0x4f   :  { %459 = vmatmul.bf16.gmra.mxu1 %v179_v9  ;;  %v5393_v9 = vld [vmem:[%s8001_s29 + $0x138] sm:$0xff]  ;;  %1612 = vperm.xlu0 %5629, %v1249_v8   ;;  %v5394_v8 = vld [vmem:[%s8001_s29 + $0x140] sm:$0xff] }
  0x50   :  { %508 = vmatmul.bf16.gmra.mxu2 %v180_v10  ;;  %v6054_v10 = vld [vmem:[%s8002_s25 + $0x68] sm:$0xff]  ;;  %1002 = vmatpush.bf16.msrb.mxu0 %v5393_v9 }
  0x51   :  { %v117_v17 = vrot.slane %v6054_v10, 7  ;;  %v152_v18 = vrot.slane %v6054_v10, 1  ;;  %v191_v34 = vpack.c.bf16 %v6054_v10, %v6023_v56 }
  0x53   :  { %v125_v27 = vsel %vm122_vm0, %v116_v16, %v117_v17 }
  0x54   :  { %1003 = vmatpush.bf16.msrb.mxu0 %v5392_v15 }
  0x55   :  { %2361 = vperm.xlu1 %5630, %v2070_v59  }
  0x57   :  { %2356 = vperm.xlu0 %5629, %v2069_v25  }
  0x58   :  { %1004 = vmatpush.bf16.msrb.mxu0 %v5391_v38  ;;  %v1251_v38 = vld [vmem:[%s8005_s0 + $0x30] sm:$0xff] }
  0x5c   :  { %1005 = vmatpush.bf16.msrb.mxu0 %v5390_v40 }
  0x5e   :  { %415 = vmatmul.bf16.gmra.mxu0 %v181_v29  ;;  %v157_v29 = vsel %vm155_vm1, %v152_v18, %v153_v21  ;;  %v1248_v21 = vld [vmem:[%s8005_s0 + $0x18] sm:$0xff] }
  0x5f   :  { %464 = vmatmul.bf16.gmra.mxu1 %v182_v30  ;;  %v158_v30 = vsel %vm155_vm1, %v151_v60, %v152_v18  ;;  %2366 = vperm.xlu0 %5629, %v2071_v43   ;;  %v5398_v60 = vld [vmem:[%s8001_s29 + $0x160] sm:$0xff] }
  0x60   :  { %513 = vmatmul.bf16.gmra.mxu2 %v183_v32  ;;  %v190_v32 = vpack.c.bf16 %v125_v27, %v126_v28  ;;  %v192_v35 = vpack.c.bf16 %v157_v29, %v158_v30  ;;  %1006 = vmatpush.bf16.msrb.mxu0 %v5389_v46 }
  0x61   :  { %1607 = vperm.xlu2 %5631, %v1248_v21  }
  0x69   :  { %1622 = vperm.xlu2 %5631, %v1251_v38  }
  0x6e   :  { %420 = vmatmul.bf16.gmra.mxu0 %v184_v47  ;;  %v123_v47 = vsel %vm122_vm0, %v118_v41, %v119_v31  ;;  %v5388_v31 = vld [vmem:[%s8001_s29 + $0x110] sm:$0xff] }
  0x6f   :  { %469 = vmatmul.bf16.gmra.mxu1 %v185_v50  ;;  %v124_v50 = vsel %vm122_vm0, %v117_v17, %v118_v41  ;;  %1007 = vmatpush.bf16.msrb.mxu0 %v5388_v31  ;;  %v2072_v31 = vld [vmem:[%s8006_s10 + $0x18] sm:$0xff] }
  0x70   :  { %518 = vmatmul.bf16.gmra.mxu2 %v186_v51  ;;  %v5399_v51 = vld [vmem:[%s8001_s29 + $0x168] sm:$0xff]  ;;  %v193_v54 = vpack.c.bf16 %v123_v47, %v124_v50 }
  0x71   :  { %1053 = vmatpush.bf16.msrb.mxu1 %v5399_v51  ;;  %2371 = vperm.xlu2 %5631, %v2072_v31  }
  0x73   :  { %1008 = vmatpush.bf16.msrb.mxu0 %v5387_v33 }
  0x75   :  { %1054 = vmatpush.bf16.msrb.mxu1 %v5398_v60 }
  0x77   :  { %1009 = vmatpush.bf16.msrb.mxu0 %v5386_v0 }
  0x79   :  { %1055 = vmatpush.bf16.msrb.mxu1 %v5397_v61  ;;  %v6201_v61 = vpop.permute.xlu2 %572 }
  0x7a   :  { %8012 = vst [vmem:[#allocation7_spill] sm:$0xff] %v6201_v61 }
  0x7d   :  { %1056 = vmatpush.bf16.msrb.mxu1 %v5396_v2 }
  0x7e   :  { %425 = vmatmul.bf16.gmra.mxu0 %v187_v4  ;;  %v6157_v4 = vld [vmem:[%s8007_s23] ss:$0 sm:$0xff] }
  0x7f   :  { %474 = vmatmul.bf16.gmra.mxu1 %v188_v5 }
  0x80   :  { %523 = vmatmul.bf16.gmra.mxu2 %v189_v6 }
  0x81   :  { %1057 = vmatpush.bf16.msrb.mxu1 %v5395_v3 }
  0x85   :  { %1058 = vmatpush.bf16.msrb.mxu1 %v5394_v8 }
  0x87   :  { %v6172_v30 = vpop.permute.xlu1 %632 }
  0x88   :  { %v6166_v16 = vpop.permute.xlu0 %557 }
  0x8e   :  { %430 = vmatmul.bf16.gmra.mxu0 %v190_v32 }
  0x8f   :  { %479 = vmatmul.bf16.gmra.mxu1 %v191_v34 }
  0x90   :  { %528 = vmatmul.bf16.gmra.mxu2 %v192_v35  ;;  %v6178_v40 = vpop.permute.xlu0 %562 }
  0x91   :  { %8008 = vst [vmem:[#allocation3_spill] sm:$0xff] %v6178_v40 }
  0x9e   :  { %435 = vmatmul.bf16.gmra.mxu0 %v193_v54  ;;  %v6193_v54 = vpop.permute.xlu1 %567 }
  0x9f   :  { %484 = vmatmul.bf16.gmra.mxu1 %v194_v57  ;;  %8010 = vst [vmem:[#allocation5_spill] sm:$0xff] %v6193_v54 }
  0xa0   :  { %533 = vmatmul.bf16.gmra.mxu2 %v195_v58 }
  0xab   :  { %v401_v5 = vpop.f32.mrf.mxu0 }
  0xac   :  { %v450_v6 = vpop.f32.mrf.mxu1  ;;  %v402_v9 = vadd.f32 %v6157_v4, %v401_v5 }
  0xae   :  { %v451_v11 = vadd.f32 %v450_v6, %v402_v9 }
  0xb3   :  { %v499_v15 = vpop.f32.mrf.mxu2  ;;  %v403_v17 = vpop.f32.mrf.mxu0 }
  0xb4   :  { %v452_v18 = vpop.f32.mrf.mxu1  ;;  %v500_v22 = vadd.f32 %v499_v15, %v451_v11  ;;  %v404_v25 = vadd.f32 %v6157_v4, %v403_v17 }
  0xb6   :  { %v539_v27 = vmax.f32 %v500_v22, 0.0  ;;  %v453_v28 = vadd.f32 %v452_v18, %v404_v25 }
  0xb8   :  { %v635_v41 = vmul.f32 %v6166_v16, %v539_v27 }
  0xba   :  { %v6183_v45 = vadd.f32 %v635_v41, %v5818_v19 }
  0xbb   :  { %v501_v29 = vpop.f32.mrf.mxu2  ;;  %v406_v34 = vpop.f32.mrf.mxu0 }
  0xbc   :  { %v502_v32 = vadd.f32 %v501_v29, %v453_v28  ;;  %v455_v35 = vpop.f32.mrf.mxu1  ;;  %v407_v39 = vadd.f32 %v6157_v4, %v406_v34  ;;  %v699_v3 = vrot.slane %v6183_v45, 1  ;;  %v6218_v28 = vpop.permute.xlu2 %577 }
  0xbd   :  { %8014 = vst [vmem:[#allocation9_spill] sm:$0xff] %v6218_v28 }
  0xbe   :  { %v540_v42 = vmax.f32 %v502_v32, 0.0  ;;  %v456_v43 = vadd.f32 %v455_v35, %v407_v39 }
  0xc0   :  { %v636_v44 = vmul.f32 %v6178_v40, %v540_v42 }
  0xc2   :  { %v6186_v46 = vadd.f32 %v636_v44, %v5823_v20 }
  0xc3   :  { %v504_v47 = vpop.f32.mrf.mxu2  ;;  %v408_v51 = vpop.f32.mrf.mxu0 }
  0xc4   :  { %8009 = vst [vmem:[#allocation4_spill] sm:$0xff] %v6186_v46  ;;  %v505_v50 = vadd.f32 %v504_v47, %v456_v43  ;;  %v457_v52 = vpop.f32.mrf.mxu1  ;;  %v732_v53 = vpack.c.bf16 %v6186_v46, %v6183_v45  ;;  %v409_v19 = vadd.f32 %v6157_v4, %v408_v51  ;;  %v700_v60 = vrot.slane %v6186_v46, 1 }
  0xc6   :  { %v541_v57 = vmax.f32 %v505_v50, 0.0  ;;  %1010 = vmatmul.bf16.vlgmr.msrb.gmra.mxu0 %v732_v53  ;;  %v458_v58 = vadd.f32 %v457_v52, %v409_v19  ;;  %v6228_v50 = vpop.permute.xlu0 %582 }
  0xc7   :  { %8016 = vst [vmem:[#allocation11_spill] sm:$0xff] %v6228_v50 }
  0xc8   :  { %v637_v20 = vmul.f32 %v6193_v54, %v541_v57 }
  0xca   :  { %v6198_v59 = vadd.f32 %v637_v20, %v5841_v26  ;;  %v729_v26 = vsel %vm155_vm1, %v699_v3, %v700_v60 }
  0xcb   :  { %v506_v33 = vpop.f32.mrf.mxu2  ;;  %v411_v1 = vpop.f32.mrf.mxu0 }
  0xcc   :  { %8011 = vst [vmem:[#allocation6_spill] sm:$0xff] %v6198_v59  ;;  %v507_v0 = vadd.f32 %v506_v33, %v458_v58  ;;  %v460_v2 = vpop.f32.mrf.mxu1  ;;  %v701_v5 = vrot.slane %v6198_v59, 1  ;;  %v412_v6 = vadd.f32 %v6157_v4, %v411_v1  ;;  %v6240_v1 = vpop.permute.xlu1 %587 }
  0xcd   :  { %8018 = vst [vmem:[#allocation13_spill] sm:$0xff] %v6240_v1 }
  0xce   :  { %v542_v7 = vmax.f32 %v507_v0, 0.0  ;;  %v728_v8 = vsel %vm155_vm1, %v700_v60, %v701_v5  ;;  %v461_v11 = vadd.f32 %v460_v2, %v412_v6 }
  0xcf   :  { %v733_v9 = vpack.c.bf16 %v728_v8, %v729_v26 }
  0xd0   :  { %v638_v15 = vmul.f32 %v6201_v61, %v542_v7 }
  0xd1   :  { %1059 = vmatmul.bf16.vlgmr.msrb.gmra.mxu1 %v733_v9 }
  0xd2   :  { %v6214_v17 = vadd.f32 %v638_v15, %v5892_v48 }
  0xd3   :  { %v509_v18 = vpop.f32.mrf.mxu2  ;;  %v413_v22 = vpop.f32.mrf.mxu0 }
  0xd4   :  { %8013 = vst [vmem:[#allocation8_spill] sm:$0xff] %v6214_v17  ;;  %v510_v21 = vadd.f32 %v509_v18, %v461_v11  ;;  %v462_v25 = vpop.f32.mrf.mxu1  ;;  %v735_v27 = vpack.c.bf16 %v6214_v17, %v6198_v59  ;;  %v414_v32 = vadd.f32 %v6157_v4, %v413_v22  ;;  %v702_v48 = vrot.slane %v6214_v17, 1  ;;  %v6250_v22 = vpop.permute.xlu2 %592 }
  0xd5   :  { %8020 = vst [vmem:[#allocation15_spill] sm:$0xff] %v6250_v22 }
  0xd6   :  { %v543_v29 = vmax.f32 %v510_v21, 0.0  ;;  %1015 = vmatmul.bf16.gmra.mxu0 %v735_v27  ;;  %v463_v35 = vadd.f32 %v462_v25, %v414_v32 }
  0xd8   :  { %v639_v34 = vmul.f32 %v6218_v28, %v543_v29 }
  0xda   :  { %v6223_v38 = vadd.f32 %v639_v34, %v5897_v49  ;;  %v727_v49 = vsel %vm155_vm1, %v701_v5, %v702_v48 }
  0xdb   :  { %v511_v39 = vpop.f32.mrf.mxu2  ;;  %v416_v42 = vpop.f32.mrf.mxu0 }
  0xdc   :  { %8015 = vst [vmem:[#allocation10_spill] sm:$0xff] %v6223_v38  ;;  %v512_v41 = vadd.f32 %v511_v39, %v463_v35  ;;  %v465_v43 = vpop.f32.mrf.mxu1  ;;  %v703_v44 = vrot.slane %v6223_v38, 1  ;;  %v417_v47 = vadd.f32 %v6157_v4, %v416_v42 }
  0xde   :  { %v544_v51 = vmax.f32 %v512_v41, 0.0  ;;  %v726_v52 = vsel %vm155_vm1, %v702_v48, %v703_v44  ;;  %v466_v31 = vadd.f32 %v465_v43, %v417_v47  ;;  %v6262_v47 = vpop.permute.xlu0 %597 }
  0xdf   :  { %v736_v53 = vpack.c.bf16 %v726_v52, %v727_v49  ;;  %8022 = vst [vmem:[#allocation17_spill] sm:$0xff] %v6262_v47 }
  0xe0   :  { %v640_v57 = vmul.f32 %v6228_v50, %v544_v51 }
  0xe1   :  { %1064 = vmatmul.bf16.gmra.mxu1 %v736_v53 }
  0xe2   :  { %v6236_v19 = vadd.f32 %v640_v57, %v5919_v62 }
  0xe3   :  { %v514_v20 = vpop.f32.mrf.mxu2  ;;  %v418_v60 = vpop.f32.mrf.mxu0 }
  0xe4   :  { %8017 = vst [vmem:[#allocation12_spill] sm:$0xff] %v6236_v19  ;;  %v515_v58 = vadd.f32 %v514_v20, %v466_v31  ;;  %v467_v33 = vpop.f32.mrf.mxu1  ;;  %v738_v0 = vpack.c.bf16 %v6236_v19, %v6223_v38  ;;  %v419_v5 = vadd.f32 %v6157_v4, %v418_v60  ;;  %v704_v62 = vrot.slane %v6236_v19, 1 }
  0xe6   :  { %v545_v2 = vmax.f32 %v515_v58, 0.0  ;;  %1020 = vmatmul.bf16.gmra.mxu0 %v738_v0  ;;  %v468_v7 = vadd.f32 %v467_v33, %v419_v5  ;;  %v5384_v0 = vld [vmem:[%s8001_s29 + $0xf0] sm:$0xff]  ;;  %v6278_v5 = vpop.permute.xlu1 %602 }
  0xe7   :  { %8024 = vst [vmem:[#allocation19_spill] sm:$0xff] %v6278_v5 }
  0xe8   :  { %v641_v6 = vmul.f32 %v6240_v1, %v545_v2 }
  0xea   :  { %v6245_v8 = vadd.f32 %v641_v6, %v5924_v63  ;;  %v725_v63 = vsel %vm155_vm1, %v703_v44, %v704_v62 }
  0xeb   :  { %v516_v26 = vpop.f32.mrf.mxu2  ;;  %v421_v11 = vpop.f32.mrf.mxu0 }
  0xec   :  { %8019 = vst [vmem:[#allocation14_spill] sm:$0xff] %v6245_v8  ;;  %v517_v9 = vadd.f32 %v516_v26, %v468_v7  ;;  %v470_v15 = vpop.f32.mrf.mxu1  ;;  %v705_v18 = vrot.slane %v6245_v8, 1  ;;  %v422_v21 = vadd.f32 %v6157_v4, %v421_v11  ;;  %v5383_v11 = vld [vmem:[%s8001_s29 + $0xe8] sm:$0xff] }
  0xee   :  { %v546_v25 = vmax.f32 %v517_v9, 0.0  ;;  %v724_v27 = vsel %vm155_vm1, %v704_v62, %v705_v18  ;;  %v471_v32 = vadd.f32 %v470_v15, %v422_v21 }
  0xef   :  { %v739_v29 = vpack.c.bf16 %v724_v27, %v725_v63 }
  0xf0   :  { %v642_v34 = vmul.f32 %v6250_v22, %v546_v25 }
  0xf1   :  { %1069 = vmatmul.bf16.gmra.mxu1 %v739_v29  ;;  %v5382_v29 = vld [vmem:[%s8001_s29 + $0xe0] sm:$0xff] }
  0xf2   :  { %v6258_v35 = vadd.f32 %v642_v34, %v5949_v13  ;;  %v5385_v13 = vld [vmem:[%s8001_s29 + $0xf8] sm:$0xff] }
  0xf3   :  { %v519_v48 = vpop.f32.mrf.mxu2  ;;  %v423_v41 = vpop.f32.mrf.mxu0  ;;  %953 = vmatpush.bf16.msra.mxu3 %v5385_v13 }
  0xf4   :  { %8021 = vst [vmem:[#allocation16_spill] sm:$0xff] %v6258_v35  ;;  %v520_v39 = vadd.f32 %v519_v48, %v471_v32  ;;  %v472_v42 = vpop.f32.mrf.mxu1  ;;  %v741_v43 = vpack.c.bf16 %v6258_v35, %v6245_v8  ;;  %v424_v44 = vadd.f32 %v6157_v4, %v423_v41  ;;  %v706_v31 = vrot.slane %v6258_v35, 1  ;;  %v6296_v32 = vpop.permute.xlu2 %607 }
  0xf6   :  { %v547_v51 = vmax.f32 %v520_v39, 0.0  ;;  %1025 = vmatmul.bf16.gmra.mxu0 %v741_v43  ;;  %v473_v49 = vadd.f32 %v472_v42, %v424_v44  ;;  %v723_v7 = vsel %vm155_vm1, %v705_v18, %v706_v31  ;;  %v5381_v39 = vld [vmem:[%s8001_s29 + $0xd8] sm:$0xff] }
  0xf7   :  { %954 = vmatpush.bf16.msra.mxu3 %v5384_v0 }
  0xf8   :  { %v643_v52 = vmul.f32 %v6262_v47, %v547_v51 }
  0xfa   :  { %v6270_v53 = vadd.f32 %v643_v52, %v5954_v14 }
  0xfb   :  { %v521_v57 = vpop.f32.mrf.mxu2  ;;  %v426_v58 = vpop.f32.mrf.mxu0  ;;  %955 = vmatpush.bf16.msra.mxu3 %v5383_v11 }
  0xfc   :  { %8023 = vst [vmem:[#allocation18_spill] sm:$0xff] %v6270_v53  ;;  %v522_v20 = vadd.f32 %v521_v57, %v473_v49  ;;  %v475_v60 = vpop.f32.mrf.mxu1  ;;  %v707_v33 = vrot.slane %v6270_v53, 1  ;;  %v427_v2 = vadd.f32 %v6157_v4, %v426_v58 }
  0xfe   :  { %v548_v6 = vmax.f32 %v522_v20, 0.0  ;;  %v722_v14 = vsel %vm155_vm1, %v706_v31, %v707_v33  ;;  %v476_v26 = vadd.f32 %v475_v60, %v427_v2  ;;  %v5380_v31 = vld [vmem:[%s8001_s29 + $0xd0] sm:$0xff]  ;;  %v6316_v60 = vpop.permute.xlu0 %612 }
  0xff   :  { %v742_v62 = vpack.c.bf16 %v722_v14, %v723_v7  ;;  %956 = vmatpush.bf16.msra.mxu3 %v5382_v29  ;;  %v5379_v14 = vld [vmem:[%s8001_s29 + $0xc8] sm:$0xff] }
 0x100   :  { %v644_v9 = vmul.f32 %v6278_v5, %v548_v6 }
 0x101   :  { %1074 = vmatmul.bf16.gmra.mxu1 %v742_v62 }
 0x102   :  { %v6289_v15 = vadd.f32 %v644_v9, %v5982_v36 }
 0x103   :  { %v524_v21 = vpop.f32.mrf.mxu2  ;;  %v428_v27 = vpop.f32.mrf.mxu0  ;;  %957 = vmatpush.bf16.msra.mxu3 %v5381_v39 }
 0x104   :  { %8025 = vst [vmem:[#allocation20_spill] sm:$0xff] %v6289_v15  ;;  %v525_v25 = vadd.f32 %v524_v21, %v476_v26  ;;  %v477_v63 = vpop.f32.mrf.mxu1  ;;  %v744_v18 = vpack.c.bf16 %v6289_v15, %v6270_v53  ;;  %v429_v48 = vadd.f32 %v6157_v4, %v428_v27  ;;  %v708_v43 = vrot.slane %v6289_v15, 1 }
 0x106   :  { %v549_v34 = vmax.f32 %v525_v25, 0.0  ;;  %1030 = vmatmul.bf16.gmra.mxu0 %v744_v18  ;;  %v478_v41 = vadd.f32 %v477_v63, %v429_v48  ;;  %v721_v58 = vsel %vm155_vm1, %v707_v33, %v708_v43  ;;  %v5378_v33 = vld [vmem:[%s8001_s29 + $0xc0] sm:$0xff]  ;;  %v6331_v63 = vpop.permute.xlu1 %617 }
 0x107   :  { %958 = vmatpush.bf16.msra.mxu3 %v5380_v31 }
 0x108   :  { %v645_v36 = vmul.f32 %v6296_v32, %v549_v34 }
 0x10a   :  { %v6304_v42 = vadd.f32 %v645_v36, %v5987_v37 }
 0x10b   :  { %v526_v51 = vpop.f32.mrf.mxu2  ;;  %v431_v52 = vpop.f32.mrf.mxu0  ;;  %959 = vmatpush.bf16.msra.mxu3 %v5379_v14 }
 0x10c   :  { %8026 = vst [vmem:[#allocation21_spill] sm:$0xff] %v6304_v42  ;;  %v527_v44 = vadd.f32 %v526_v51, %v478_v41  ;;  %v480_v13 = vpop.f32.mrf.mxu1  ;;  %v709_v49 = vrot.slane %v6304_v42, 1  ;;  %v432_v57 = vadd.f32 %v6157_v4, %v431_v52  ;;  %v6340_v51 = vpop.permute.xlu2 %622 }
 0x10e   :  { %v550_v20 = vmax.f32 %v527_v44, 0.0  ;;  %v720_v37 = vsel %vm155_vm1, %v708_v43, %v709_v49  ;;  %v481_v6 = vadd.f32 %v480_v13, %v432_v57 }
 0x10f   :  { %v745_v0 = vpack.c.bf16 %v720_v37, %v721_v58  ;;  %960 = vmatpush.bf16.msra.mxu3 %v5378_v33 }
 0x110   :  { %v646_v2 = vmul.f32 %v6316_v60, %v550_v20 }
 0x111   :  { %1079 = vmatmul.bf16.gmra.mxu1 %v745_v0 }
 0x112   :  { %v6323_v7 = vadd.f32 %v646_v2, %v6018_v55 }
 0x113   :  { %v529_v62 = vpop.f32.mrf.mxu2  ;;  %v433_v9 = vpop.f32.mrf.mxu0 }
 0x114   :  { %8027 = vst [vmem:[#allocation22_spill] sm:$0xff] %v6323_v7  ;;  %v530_v26 = vadd.f32 %v529_v62, %v481_v6  ;;  %v747_v11 = vpack.c.bf16 %v6323_v7, %v6304_v42  ;;  %v482_v21 = vpop.f32.mrf.mxu1  ;;  %v434_v27 = vadd.f32 %v6157_v4, %v433_v9  ;;  %v710_v34 = vrot.slane %v6323_v7, 1 }
 0x116   :  { %v551_v25 = vmax.f32 %v530_v26, 0.0  ;;  %1035 = vmatmul.bf16.gmra.mxu0 %v747_v11  ;;  %v483_v29 = vadd.f32 %v482_v21, %v434_v27 }
 0x118   :  { %v647_v55 = vmul.f32 %v6331_v63, %v551_v25 }
 0x11a   :  { %v6335_v18 = vadd.f32 %v647_v55, %v6023_v56  ;;  %v719_v56 = vsel %vm155_vm1, %v709_v49, %v710_v34  ;;  %v6353_v49 = vpop.permute.xlu0 %627 }
 0x11b   :  { %v531_v48 = vpop.f32.mrf.mxu2  ;;  %v436_v39 = vpop.f32.mrf.mxu0 }
 0x11c   :  { %v532_v36 = vadd.f32 %v531_v48, %v483_v29  ;;  %v711_v41 = vrot.slane %v6335_v18, 1  ;;  %v437_v43 = vadd.f32 %v6157_v4, %v436_v39  ;;  %v485_v13 = vpop.f32.mrf.mxu1 }
 0x11e   :  { %v552_v44 = vmax.f32 %v532_v36, 0.0  ;;  %v718_v52 = vsel %vm155_vm1, %v710_v34, %v711_v41  ;;  %v486_v57 = vadd.f32 %v485_v13, %v437_v43  ;;  %v668_v36 = vrot.slane %v6186_v46, 7 }
 0x11f   :  { %v748_v31 = vpack.c.bf16 %v718_v52, %v719_v56  ;;  %v667_v43 = vrot.slane %v6183_v45, 7 }
 0x120   :  { %v648_v20 = vmul.f32 %v6340_v51, %v552_v44 }
 0x121   :  { %1084 = vmatmul.bf16.gmra.mxu1 %v748_v31 }
 0x122   :  { %v6348_v37 = vadd.f32 %v648_v20, %v6054_v10  ;;  %v670_v20 = vrot.slane %v6214_v17, 7 }
 0x123   :  { %v534_v58 = vpop.f32.mrf.mxu2  ;;  %v438_v2 = vpop.f32.mrf.mxu0 }
 0x124   :  { %v535_v0 = vadd.f32 %v534_v58, %v486_v57  ;;  %v750_v6 = vpack.c.bf16 %v6348_v37, %v6335_v18  ;;  %v439_v33 = vadd.f32 %v6157_v4, %v438_v2  ;;  %v487_v26 = vpop.f32.mrf.mxu1  ;;  %v712_v11 = vrot.slane %v6348_v37, 1 }
 0x125   :  { %v669_v58 = vrot.slane %v6198_v59, 7 }
 0x126   :  { %v553_v14 = vmax.f32 %v535_v0, 0.0  ;;  %1040 = vmatmul.bf16.gmra.mxu0 %v750_v6  ;;  %v488_v10 = vadd.f32 %v487_v26, %v439_v33  ;;  %v717_v29 = vsel %vm155_vm1, %v711_v41, %v712_v11  ;;  %v697_v41 = vsel %vm122_vm0, %v667_v43, %v668_v36 }
 0x127   :  { %v695_v0 = vsel %vm122_vm0, %v669_v58, %v670_v20  ;;  %v696_v2 = vsel %vm122_vm0, %v668_v36, %v669_v58  ;;  %v671_v33 = vrot.slane %v6223_v38, 7  ;;  %v678_v36 = vrot.slane %v6323_v7, 7 }
 0x128   :  { %v649_v62 = vmul.f32 %v6353_v49, %v553_v14  ;;  %v734_v6 = vpack.c.bf16 %v695_v0, %v696_v2  ;;  %v672_v14 = vrot.slane %v6236_v19, 7 }
 0x12a   :  { %v6357_v9 = vadd.f32 %v649_v62, %v6062_v12  ;;  %v694_v62 = vsel %vm122_vm0, %v670_v20, %v671_v33 }
 0x12b   :  { %v536_v21 = vpop.f32.mrf.mxu2 }
 0x12c   :  { %v537_v25 = vadd.f32 %v536_v21, %v488_v10  ;;  %v713_v27 = vrot.slane %v6357_v9, 1  ;;  %v674_v10 = vrot.slane %v6258_v35, 7  ;;  %v681_v0 = vrot.slane %v6357_v9, 7 }
 0x12e   :  { %v554_v55 = vmax.f32 %v537_v25, 0.0  ;;  %v716_v4 = vsel %vm155_vm1, %v712_v11, %v713_v27  ;;  %v673_v11 = vrot.slane %v6245_v8, 7 }
 0x12f   :  { %v751_v34 = vpack.c.bf16 %v716_v4, %v717_v29  ;;  %v675_v4 = vrot.slane %v6270_v53, 7 }
 0x130   :  { %v650_v48 = vmul.f32 %v6172_v30, %v554_v55  ;;  %v691_v21 = vsel %vm122_vm0, %v673_v11, %v674_v10  ;;  %v692_v25 = vsel %vm122_vm0, %v672_v14, %v673_v11  ;;  %v676_v55 = vrot.slane %v6289_v15, 7 }
 0x131   :  { %1089 = vmatmul.bf16.gmra.mxu1 %v751_v34  ;;  %v690_v34 = vsel %vm122_vm0, %v674_v10, %v675_v4 }
 0x132   :  { %v6367_v12 = vadd.f32 %v650_v48, %v5834_v23  ;;  %v689_v29 = vsel %vm122_vm0, %v675_v4, %v676_v55 }
 0x133   :  { %v743_v48 = vpack.c.bf16 %v689_v29, %v690_v34 }
 0x134   :  { %v753_v39 = vpack.c.bf16 %v6367_v12, %v6357_v9  ;;  %v682_v44 = vrot.slane %v6367_v12, 7  ;;  %v714_v23 = vrot.slane %v6367_v12, 1 }
 0x136   :  { %1045 = vmatmul.bf16.gmra.mxu0 %v753_v39  ;;  %v698_v52 = vsel %vm122_vm0, %v682_v44, %v667_v43  ;;  %v715_v13 = vsel %vm155_vm1, %v713_v27, %v714_v23  ;;  %v730_v31 = vsel %vm155_vm1, %v714_v23, %v699_v3  ;;  %v693_v3 = vsel %vm122_vm0, %v671_v33, %v672_v14 }
 0x137   :  { %v731_v56 = vpack.c.bf16 %v697_v41, %v698_v52  ;;  %v754_v57 = vpack.c.bf16 %v730_v31, %v715_v13  ;;  %v737_v26 = vpack.c.bf16 %v693_v3, %v694_v62  ;;  %v740_v27 = vpack.c.bf16 %v691_v21, %v692_v25 }
 0x138   :  { %v677_v39 = vrot.slane %v6304_v42, 7  ;;  %v679_v23 = vrot.slane %v6335_v18, 7  ;;  %v683_v2 = vsel %vm122_vm0, %v681_v0, %v682_v44 }
 0x139   :  { %961 = vmatmul.bf16.vlgmr.msra.gmra.mxu3 %v731_v56  ;;  %v680_v56 = vrot.slane %v6348_v37, 7 }
 0x13a   :  { %v687_v43 = vsel %vm122_vm0, %v677_v39, %v678_v36  ;;  %v688_v41 = vsel %vm122_vm0, %v676_v55, %v677_v39  ;;  %v686_v31 = vsel %vm122_vm0, %v678_v36, %v679_v23 }
 0x13b   :  { %v746_v52 = vpack.c.bf16 %v687_v43, %v688_v41  ;;  %v685_v13 = vsel %vm122_vm0, %v679_v23, %v680_v56 }
 0x141   :  { %1094 = vmatmul.bf16.gmra.mxu1 %v754_v57  ;;  %v749_v57 = vpack.c.bf16 %v685_v13, %v686_v31 }
 0x143   :  { %v1011_v20 = vpop.f32.mrf.mxu0 }
 0x149   :  { %966 = vmatmul.bf16.gmra.mxu3 %v734_v6  ;;  %v684_v6 = vsel %vm122_vm0, %v680_v56, %v681_v0  ;;  %v6467_v0 = vld [vmem:[%s8007_s23 + $0x1] ss:$0 sm:$0xff] }
 0x14a   :  { %v752_v14 = vpack.c.bf16 %v683_v2, %v684_v6 }
 0x14b   :  { %v6426_v33 = vpop.f32.mrf.mxu0 }
 0x14c   :  { %8028 = vst [vmem:[#allocation23_spill] sm:$0xff] %v6426_v33 }
 0x14e   :  { %v1060_v58 = vpop.f32.mrf.mxu1 }
 0x153   :  { %v6430_v62 = vpop.f32.mrf.mxu0 }
 0x154   :  { %8030 = vst [vmem:[#allocation25_spill] sm:$0xff] %v6430_v62 }
 0x156   :  { %v6428_v3 = vpop.f32.mrf.mxu1 }
 0x157   :  { %8029 = vst [vmem:[#allocation24_spill] sm:$0xff] %v6428_v3 }
 0x159   :  { %971 = vmatmul.bf16.gmra.mxu3 %v737_v26 }
 0x15b   :  { %v6434_v11 = vpop.f32.mrf.mxu0 }
 0x15e   :  { %v6432_v26 = vpop.f32.mrf.mxu1 }
 0x15f   :  { %8031 = vst [vmem:[#allocation26_spill] sm:$0xff] %v6432_v26 }
 0x163   :  { %v6440_v44 = vpop.f32.mrf.mxu0 }
 0x166   :  { %v6436_v21 = vpop.f32.mrf.mxu1 }
 0x167   :  { %8032 = vst [vmem:[#allocation27_spill] sm:$0xff] %v6436_v21 }
 0x169   :  { %976 = vmatmul.bf16.gmra.mxu3 %v740_v27 }
 0x16b   :  { %v6446_v4 = vpop.f32.mrf.mxu0 }
 0x16e   :  { %v6442_v27 = vpop.f32.mrf.mxu1 }
 0x16f   :  { %8033 = vst [vmem:[#allocation28_spill] sm:$0xff] %v6442_v27 }
 0x176   :  { %v6448_v29 = vpop.f32.mrf.mxu1 }
 0x177   :  { %8034 = vst [vmem:[#allocation29_spill] sm:$0xff] %v6448_v29 }
 0x179   :  { %981 = vmatmul.bf16.gmra.mxu3 %v743_v48  ;;  %v6452_v48 = vpop.f32.mrf.mxu0 }
 0x17e   :  { %v6456_v39 = vpop.f32.mrf.mxu1 }
 0x181   :  { %v6460_v41 = vpop.f32.mrf.mxu0 }
 0x189   :  { %986 = vmatmul.bf16.gmra.mxu3 %v746_v52  ;;  %v6462_v52 = vpop.f32.mrf.mxu1  ;;  %v1031_v23 = vpop.f32.mrf.mxu0 }
 0x191   :  { %v1080_v13 = vpop.f32.mrf.mxu1 }
 0x199   :  { %991 = vmatmul.bf16.gmra.mxu3 %v749_v57  ;;  %v1033_v57 = vpop.f32.mrf.mxu0  ;;  %v1082_v2 = vpop.f32.mrf.mxu1 }
 0x1a1   :  { %v1036_v40 = vpop.f32.mrf.mxu0  ;;  %v1085_v54 = vpop.f32.mrf.mxu1 }
 0x1a9   :  { %996 = vmatmul.bf16.gmra.mxu3 %v752_v14  ;;  %v1038_v61 = vpop.f32.mrf.mxu0  ;;  %v1087_v19 = vpop.f32.mrf.mxu1 }
 0x1b1   :  { %v1041_v8 = vpop.f32.mrf.mxu0  ;;  %v1090_v50 = vpop.f32.mrf.mxu1 }
 0x1b9   :  { %v1043_v3 = vpop.f32.mrf.mxu0  ;;  %v1092_v1 = vpop.f32.mrf.mxu1 }
 0x1bc   :  { %v962_v10 = vpop.f32.mrf.mxu3 }
 0x1bd   :  { %v963_v26 = vadd.f32 %v6467_v0, %v962_v10 }
 0x1bf   :  { %v1012_v22 = vadd.f32 %v1011_v20, %v963_v26 }
 0x1c1   :  { %v1095_v15 = vpop.f32.mrf.mxu1  ;;  %v1061_v21 = vadd.f32 %v1060_v58, %v1012_v22 }
 0x1c3   :  { %v1100_v26 = vmax.f32 %v1061_v21, 0.0 }
 0x1c4   :  { %v6438_v25 = vpop.f32.mrf.mxu3 }
 0x1cc   :  { %v6444_v55 = vpop.f32.mrf.mxu3 }
 0x1d4   :  { %v6450_v34 = vpop.f32.mrf.mxu3 }
 0x1dc   :  { %v6454_v36 = vpop.f32.mrf.mxu3 }
 0x1e4   :  { %v6458_v43 = vpop.f32.mrf.mxu3 }
 0x1ec   :  { %v977_v56 = vpop.f32.mrf.mxu3 }
 0x1f4   :  { %v979_v31 = vpop.f32.mrf.mxu3 }
 0x1fc   :  { %v982_v6 = vpop.f32.mrf.mxu3 }
 0x1fd   :  { %v983_v14 = vadd.f32 %v6467_v0, %v982_v6 }
 0x1ff   :  { %v1032_v46 = vadd.f32 %v1031_v23, %v983_v14 }
 0x201   :  { %v6470_v59 = vadd.f32 %v1080_v13, %v1032_v46  ;;  %v1046_v46 = vpop.f32.mrf.mxu0 }
 0x204   :  { %v984_v17 = vpop.f32.mrf.mxu3 }
 0x205   :  { %v985_v20 = vadd.f32 %v6467_v0, %v984_v17  ;;  %v978_v17 = vadd.f32 %v6467_v0, %v977_v56 }
 0x207   :  { %v1034_v58 = vadd.f32 %v1033_v57, %v985_v20  ;;  %v8040_v20 = vld [vmem:[#allocation28_spill] sm:$0xff] }
 0x209   :  { %v1048_v22 = vpop.f32.mrf.mxu0 }
 0x20c   :  { %v987_v38 = vpop.f32.mrf.mxu3 }
 0x20d   :  { %v988_v27 = vadd.f32 %v6467_v0, %v987_v38 }
 0x20f   :  { %v1037_v5 = vadd.f32 %v1036_v40, %v988_v27 }
 0x214   :  { %v989_v28 = vpop.f32.mrf.mxu3 }
 0x215   :  { %v990_v33 = vadd.f32 %v6467_v0, %v989_v28  ;;  %v980_v28 = vadd.f32 %v6467_v0, %v979_v31 }
 0x21c   :  { %v992_v35 = vpop.f32.mrf.mxu3 }
 0x21d   :  { %v993_v6 = vadd.f32 %v6467_v0, %v992_v35 }
 0x21f   :  { %v1042_v62 = vadd.f32 %v1041_v8, %v993_v6 }
 0x221   :  { %v1091_v35 = vadd.f32 %v1090_v50, %v1042_v62  ;;  %v1029_v50 = vadd.f32 %v6460_v41, %v980_v28  ;;  %v8042_v28 = vld [vmem:[#allocation17_spill] sm:$0xff] }
 0x223   :  { %v1078_v41 = vadd.f32 %v6462_v52, %v1029_v50 }
 0x224   :  { %v994_v53 = vpop.f32.mrf.mxu3 }
 0x225   :  { %v995_v23 = vadd.f32 %v6467_v0, %v994_v53  ;;  %v1039_v53 = vadd.f32 %v1038_v61, %v990_v33  ;;  %v1086_v61 = vadd.f32 %v1085_v54, %v1037_v5  ;;  %v965_v54 = vadd.f32 %v6467_v0, %v6438_v25 }
 0x226   :  { %v973_v5 = vadd.f32 %v6467_v0, %v6454_v36 }
 0x227   :  { %v1044_v47 = vadd.f32 %v1043_v3, %v995_v23  ;;  %v1116_v3 = vmul.f32 %v1100_v26, %v6166_v16  ;;  %v1088_v38 = vadd.f32 %v1087_v19, %v1039_v53  ;;  %v1110_v21 = vmax.f32 %v1086_v61, 0.0 }
 0x229   :  { %v1093_v10 = vadd.f32 %v1092_v1, %v1044_v47  ;;  %v1112_v1 = vmax.f32 %v1091_v35, 0.0  ;;  %v1111_v33 = vmax.f32 %v1088_v38, 0.0  ;;  %v6488_v16 = vadd.f32 %v1116_v3, %v6183_v45  ;;  %v8043_v3 = vld [vmem:[#allocation23_spill] sm:$0xff] }
 0x22a   :  { %v970_v45 = vadd.f32 %v6467_v0, %v6450_v34  ;;  %v1014_v38 = vadd.f32 %v8043_v3, %v965_v54 }
 0x22b   :  { %v1113_v8 = vmax.f32 %v1093_v10, 0.0  ;;  %v1148_v36 = vrot.slane %v6488_v16, 1 }
 0x22c   :  { %v997_v13 = vpop.f32.mrf.mxu3 }
 0x22d   :  { %v998_v14 = vadd.f32 %v6467_v0, %v997_v13  ;;  %v1129_v19 = vmul.f32 %v1113_v8, %v6340_v51  ;;  %v8044_v8 = vld [vmem:[#allocation27_spill] sm:$0xff] }
 0x22f   :  { %v1047_v42 = vadd.f32 %v1046_v46, %v998_v14  ;;  %v8036_v46 = vld [vmem:[#allocation19_spill] sm:$0xff]  ;;  %v8039_v14 = vld [vmem:[#allocation25_spill] sm:$0xff] }
 0x231   :  { %v1096_v7 = vadd.f32 %v1095_v15, %v1047_v42  ;;  %v1097_v42 = vpop.f32.mrf.mxu1 }
 0x233   :  { %v1114_v29 = vmax.f32 %v1096_v7, 0.0  ;;  %v1083_v7 = vadd.f32 %v1082_v2, %v1034_v58  ;;  %v1019_v2 = vadd.f32 %v6434_v11, %v970_v45 }
 0x234   :  { %v999_v24 = vpop.f32.mrf.mxu3 }
 0x235   :  { %v1000_v13 = vadd.f32 %v6467_v0, %v999_v24  ;;  %v1130_v40 = vmul.f32 %v1114_v29, %v6353_v49  ;;  %v975_v24 = vadd.f32 %v6467_v0, %v6458_v43  ;;  %v1027_v49 = vadd.f32 %v6452_v48, %v978_v17 }
 0x236   :  { %v1128_v43 = vmul.f32 %v1112_v1, %v6331_v63  ;;  %v1109_v25 = vmax.f32 %v1083_v7, 0.0  ;;  %v1145_v48 = vadd.f32 %v1129_v19, %v6348_v37  ;;  %v1022_v63 = vadd.f32 %v6440_v44, %v973_v5  ;;  %v8035_v37 = vld [vmem:[#allocation29_spill] sm:$0xff]  ;;  %v8047_v7 = vld [vmem:[#allocation26_spill] sm:$0xff] }
 0x237   :  { %v1049_v15 = vadd.f32 %v1048_v22, %v1000_v13  ;;  %v1146_v29 = vadd.f32 %v1130_v40, %v6357_v9  ;;  %v1024_v51 = vadd.f32 %v6446_v4, %v975_v24  ;;  %v968_v9 = vadd.f32 %v6467_v0, %v6444_v55  ;;  %v8038_v0 = vld [vmem:[#allocation22_spill] sm:$0xff]  ;;  %v8041_v13 = vld [vmem:[#allocation21_spill] sm:$0xff]  ;;  %v8046_v24 = vld [vmem:[#allocation15_spill] sm:$0xff] }
 0x238   :  { %v1076_v34 = vadd.f32 %v6456_v39, %v1027_v49  ;;  %v1108_v4 = vmax.f32 %v6470_v59, 0.0  ;;  %v1144_v57 = vadd.f32 %v1128_v43, %v6335_v18  ;;  %v1125_v6 = vmul.f32 %v1109_v25, %v8036_v46  ;;  %v8048_v49 = vld [vmem:[#allocation18_spill] sm:$0xff]  ;;  %v8050_v43 = vld [vmem:[#allocation24_spill] sm:$0xff]  ;;  %v5505_v44 = vld [vmem:[%s7951_s11 + $0x38] sm:$0xff] }
 0x239   :  { %v1098_v47 = vadd.f32 %v1097_v42, %v1049_v15  ;;  %v1162_v52 = vrot.slane %v1146_v29, 1  ;;  %v1073_v23 = vadd.f32 %v8035_v37, %v1024_v51  ;;  %v1161_v39 = vrot.slane %v1145_v48, 1  ;;  %v8054_v37 = vld [vmem:[#allocation9_spill] sm:$0xff] }
 0x23a   :  { %v1071_v11 = vadd.f32 %v8040_v20, %v1022_v63  ;;  %v1106_v26 = vmax.f32 %v1076_v34, 0.0  ;;  %v1160_v35 = vrot.slane %v1144_v57, 1  ;;  %v1124_v58 = vmul.f32 %v1108_v4, %v8042_v28  ;;  %v8057_v20 = vld [vmem:[#allocation10_spill] sm:$0xff] }
 0x23b   :  { %v1115_v62 = vmax.f32 %v1098_v47, 0.0  ;;  %v1165_v10 = vsel %vm155_vm1, %v1161_v39, %v1162_v52  ;;  %v1068_v15 = vadd.f32 %v8044_v8, %v1019_v2  ;;  %v1105_v42 = vmax.f32 %v1073_v23, 0.0  ;;  %v8045_v47 = vld [vmem:[#allocation20_spill] sm:$0xff] }
 0x23c   :  { %v1166_v61 = vsel %vm155_vm1, %v1160_v35, %v1161_v39  ;;  %v1141_v40 = vadd.f32 %v1125_v6, %v8045_v47  ;;  %v1193_v19 = vmax.f32 %v1145_v48, %v1165_v10  ;;  %v1063_v45 = vadd.f32 %v8050_v43, %v1014_v38  ;;  %v8052_v48 = vld [vmem:[#allocation11_spill] sm:$0xff] }
 0x23d   :  { %v1131_v27 = vmul.f32 %v1115_v62, %v6172_v30  ;;  %v1127_v30 = vmul.f32 %v1111_v33, %v6316_v60  ;;  %v1107_v60 = vmax.f32 %v1078_v41, 0.0  ;;  %v1104_v62 = vmax.f32 %v1071_v11, 0.0  ;;  %v8056_v39 = vld [vmem:[#allocation7_spill] sm:$0xff] }
 0x23e   :  { %v1103_v51 = vmax.f32 %v1068_v15, 0.0  ;;  %v1192_v41 = vmax.f32 %v1144_v57, %v1166_v61  ;;  %v1121_v63 = vmul.f32 %v1105_v42, %v8052_v48  ;;  %v1101_v57 = vmax.f32 %v1063_v45, 0.0  ;;  %v8061_v42 = vld [vmem:[#allocation6_spill] sm:$0xff]  ;;  %v5416_v48 = vld [vmem:[%s8001_s29 + $0x1f0] sm:$0xff] }
 0x23f   :  { %v1147_v56 = vadd.f32 %v1131_v27, %v6367_v12  ;;  %v1126_v12 = vmul.f32 %v1110_v21, %v6296_v32  ;;  %v1143_v18 = vadd.f32 %v1127_v30, %v8038_v0  ;;  %v1017_v32 = vadd.f32 %v8039_v14, %v968_v9  ;;  %v8049_v27 = vld [vmem:[#allocation13_spill] sm:$0xff]  ;;  %v8051_v30 = vld [vmem:[#allocation16_spill] sm:$0xff]  ;;  %v1196_v45 = vld [vmem:[%s8063_s26] sm:$0xff] }
 0x240   :  { %v1123_v50 = vmul.f32 %v1107_v60, %v8046_v24  ;;  %v1140_v21 = vadd.f32 %v1124_v58, %v8048_v49  ;;  %v1120_v23 = vmul.f32 %v1104_v62, %v8054_v37  ;;  %v1119_v0 = vmul.f32 %v1103_v51, %v8056_v39  ;;  %v8060_v58 = vld [vmem:[#allocation3_spill] sm:$0xff]  ;;  %v5404_v39 = vld [vmem:[%s8001_s29 + $0x190] sm:$0xff] }
 0x241   :  { %v1163_v31 = vrot.slane %v1147_v56, 1  ;;  %v1142_v22 = vadd.f32 %v1126_v12, %v8041_v13  ;;  %v1159_v1 = vrot.slane %v1143_v18, 1  ;;  %v1066_v33 = vadd.f32 %v8047_v7, %v1017_v32  ;;  %v8053_v12 = vld [vmem:[#allocation14_spill] sm:$0xff]  ;;  %v1197_v51 = vld [vmem:[%s8063_s26 + $0x8] sm:$0xff] }
 0x242   :  { %v1139_v9 = vadd.f32 %v1123_v50, %v8051_v30  ;;  %v1136_v11 = vadd.f32 %v1120_v23, %v8057_v20  ;;  %v1117_v3 = vmul.f32 %v1101_v57, %v8060_v58  ;;  %v1203_v30 = vld [vmem:[%s8063_s26 + $0x38] sm:$0xff]  ;;  %v5408_v23 = vld [vmem:[%s8001_s29 + $0x1b0] sm:$0xff]  ;;  %v5407_v57 = vld [vmem:[%s8001_s29 + $0x1a8] sm:$0xff] }
 0x243   :  { %v1179_v55 = vsel %vm155_vm1, %v1163_v31, %v1148_v36  ;;  %v1164_v59 = vsel %vm155_vm1, %v1162_v52, %v1163_v31  ;;  %v1167_v54 = vsel %vm155_vm1, %v1159_v1, %v1160_v35  ;;  %v1158_v5 = vrot.slane %v1142_v22, 1 }
 0x244   :  { %v1195_v53 = vmax.f32 %v1147_v56, %v1179_v55  ;;  %v1194_v17 = vmax.f32 %v1146_v29, %v1164_v59  ;;  %v1122_v29 = vmul.f32 %v1106_v26, %v8049_v27  ;;  %v1157_v56 = vrot.slane %v1141_v40, 1  ;;  %v8055_v55 = vld [vmem:[#allocation12_spill] sm:$0xff]  ;;  %v8058_v26 = vld [vmem:[#allocation5_spill] sm:$0xff] }
 0x245   :  { %v1168_v25 = vsel %vm155_vm1, %v1158_v5, %v1159_v1  ;;  %v1102_v34 = vmax.f32 %v1066_v33, 0.0  ;;  %v1191_v4 = vmax.f32 %v1143_v18, %v1167_v54  ;;  %v1156_v52 = vrot.slane %v1140_v21, 1 }
 0x246   :  { %1204 = vmatpush.msrb.mxu2 %v1195_v53  ;;  %v1169_v31 = vsel %vm155_vm1, %v1157_v56, %v1158_v5  ;;  %v1138_v2 = vadd.f32 %v1122_v29, %v8053_v12  ;;  %v1190_v60 = vmax.f32 %v1142_v22, %v1168_v25  ;;  %v1155_v6 = vrot.slane %v1139_v9, 1  ;;  %v8059_v22 = vld [vmem:[#allocation8_spill] sm:$0xff]  ;;  %v1201_v25 = vld [vmem:[%s8063_s26 + $0x28] sm:$0xff]  ;;  %v5410_v12 = vld [vmem:[%s8001_s29 + $0x1c0] sm:$0xff] }
 0x247   :  { %v1170_v46 = vsel %vm155_vm1, %v1156_v52, %v1157_v56  ;;  %v1137_v59 = vadd.f32 %v1121_v63, %v8055_v55  ;;  %v1189_v18 = vmax.f32 %v1141_v40, %v1169_v31  ;;  %v1118_v53 = vmul.f32 %v1102_v34, %v8058_v26  ;;  %v8062_v40 = vld [vmem:[#allocation4_spill] sm:$0xff]  ;;  %v5415_v63 = vld [vmem:[%s8001_s29 + $0x1e8] sm:$0xff]  ;;  %v5414_v34 = vld [vmem:[%s8001_s29 + $0x1e0] sm:$0xff] }
 0x248   :  { %1205 = vmatpush.msrb.mxu2 %v1194_v17  ;;  %v1171_v14 = vsel %vm155_vm1, %v1155_v6, %v1156_v52  ;;  %v1154_v32 = vrot.slane %v1138_v2, 1  ;;  %v1188_v10 = vmax.f32 %v1140_v21, %v1170_v46  ;;  %v1135_v28 = vadd.f32 %v1119_v0, %v8059_v22  ;;  %v1202_v56 = vld [vmem:[%s8063_s26 + $0x30] sm:$0xff]  ;;  %v5411_v52 = vld [vmem:[%s8001_s29 + $0x1c8] sm:$0xff]  ;;  %v5405_v55 = vld [vmem:[%s8001_s29 + $0x198] sm:$0xff] }
 0x249   :  { %v1153_v13 = vrot.slane %v1137_v59, 1  ;;  %v1187_v38 = vmax.f32 %v1139_v9, %v1171_v14  ;;  %v1152_v15 = vrot.slane %v1136_v11, 1  ;;  %v1134_v17 = vadd.f32 %v1118_v53, %v8061_v42  ;;  %v5417_v9 = vld [vmem:[%s8001_s29 + $0x1f8] sm:$0xff]  ;;  %v5412_v31 = vld [vmem:[%s8001_s29 + $0x1d0] sm:$0xff]  ;;  %v5403_v0 = vld [vmem:[%s8001_s29 + $0x188] sm:$0xff] }
 0x24a   :  { %1206 = vmatpush.msrb.mxu2 %v1193_v19  ;;  %v1172_v35 = vsel %vm155_vm1, %v1154_v32, %v1155_v6  ;;  %v1151_v47 = vrot.slane %v1135_v28, 1  ;;  %v1133_v24 = vadd.f32 %v1117_v3, %v8062_v40  ;;  %v5406_v6 = vld [vmem:[%s8001_s29 + $0x1a0] sm:$0xff]  ;;  %v5423_v42 = vld [vmem:[%s8001_s29 + $0x228] sm:$0xff] }
 0x24b   :  { %v1173_v8 = vsel %vm155_vm1, %v1153_v13, %v1154_v32  ;;  %v1186_v61 = vmax.f32 %v1138_v2, %v1172_v35  ;;  %v1174_v1 = vsel %vm155_vm1, %v1152_v15, %v1153_v13  ;;  %v1150_v33 = vrot.slane %v1134_v17, 1  ;;  %v5409_v2 = vld [vmem:[%s8001_s29 + $0x1b8] sm:$0xff]  ;;  %v5402_v14 = vld [vmem:[%s8001_s29 + $0x180] sm:$0xff] }
 0x24c   :  { %1207 = vmatpush.msrb.mxu2 %v1192_v41  ;;  %v1185_v50 = vmax.f32 %v1137_v59, %v1173_v8  ;;  %v1175_v7 = vsel %vm155_vm1, %v1151_v47, %v1152_v15  ;;  %v1184_v62 = vmax.f32 %v1136_v11, %v1174_v1  ;;  %v1149_v54 = vrot.slane %v1133_v24, 1  ;;  %v1200_v41 = vld [vmem:[%s8063_s26 + $0x20] sm:$0xff]  ;;  %1495 = vmatpush.bf16.msrb.mxu3 %v5409_v2  ;;  %v5425_v8 = vld [vmem:[%s8001_s29 + $0x238] sm:$0xff]  ;;  %v5424_v15 = vld [vmem:[%s8001_s29 + $0x230] sm:$0xff] }
 0x24d   :  { %v1176_v19 = vsel %vm155_vm1, %v1150_v33, %v1151_v47  ;;  %v1183_v5 = vmax.f32 %v1135_v28, %v1175_v7  ;;  %v5422_v1 = vld [vmem:[%s8001_s29 + $0x220] sm:$0xff]  ;;  %v5420_v7 = vld [vmem:[%s8001_s29 + $0x210] sm:$0xff] }
 0x24e   :  { %1208 = vmatpush.msrb.mxu2 %v1191_v4  ;;  %v1177_v49 = vsel %vm155_vm1, %v1149_v54, %v1150_v33  ;;  %v1182_v21 = vmax.f32 %v1134_v17, %v1176_v19  ;;  %v1178_v27 = vsel %vm155_vm1, %v1148_v36, %v1149_v54  ;;  %v1198_v36 = vld [vmem:[%s8063_s26 + $0x10] sm:$0xff]  ;;  %v5413_v4 = vld [vmem:[%s8001_s29 + $0x1d8] sm:$0xff]  ;;  %v5419_v33 = vld [vmem:[%s8001_s29 + $0x208] sm:$0xff] }
 0x24f   :  { %v1181_v29 = vmax.f32 %v1133_v24, %v1177_v49  ;;  %v1180_v43 = vmax.f32 %v6488_v16, %v1178_v27  ;;  %v1199_v16 = vld [vmem:[%s8063_s26 + $0x18] sm:$0xff]  ;;  %v5418_v54 = vld [vmem:[%s8001_s29 + $0x200] sm:$0xff] }
 0x250   :  { %1209 = vmatpush.msrb.mxu2 %v1190_v60  ;;  %1496 = vmatpush.bf16.msrb.mxu3 %v5408_v23 }
 0x252   :  { %1210 = vmatpush.msrb.mxu2 %v1189_v18 }
 0x254   :  { %1211 = vmatpush.msrb.mxu2 %v1188_v10  ;;  %1497 = vmatpush.bf16.msrb.mxu3 %v5407_v57 }
 0x256   :  { %1212 = vmatpush.msrb.mxu2 %v1187_v38 }
 0x258   :  { %1213 = vmatpush.msrb.mxu2 %v1186_v61  ;;  %1498 = vmatpush.bf16.msrb.mxu3 %v5406_v6 }
 0x25a   :  { %1214 = vmatpush.msrb.mxu2 %v1185_v50  ;;  %v5421_v50 = vld [vmem:[%s8001_s29 + $0x218] sm:$0xff] }
 0x25c   :  { %1215 = vmatpush.msrb.mxu2 %v1184_v62  ;;  %1499 = vmatpush.bf16.msrb.mxu3 %v5405_v55 }
 0x25e   :  { %1216 = vmatpush.msrb.mxu2 %v1183_v5 }
 0x260   :  { %1217 = vmatpush.msrb.mxu2 %v1182_v21  ;;  %1500 = vmatpush.bf16.msrb.mxu3 %v5404_v39 }
 0x262   :  { %1218 = vmatpush.msrb.mxu2 %v1181_v29 }
 0x264   :  { %1219 = vmatpush.msrb.mxu2 %v1180_v43  ;;  %1501 = vmatpush.bf16.msrb.mxu3 %v5403_v0 }
 0x265   :  { %1220 = vmatmul.f32.vlgmr.msrb.gmra.mxu2 %v1196_v45 }
 0x266   :  { %1524 = vmatpush.bf16.msra.mxu2 %v5417_v9 }
 0x268   :  { %1502 = vmatpush.bf16.msrb.mxu3 %v5402_v14  ;;  %v5441_v14 = vld [vmem:[%s8001_s29 + $0x2b8] sm:$0xff] }
 0x269   :  { %1917 = vmatpush.bf16.msra.mxu1 %v5441_v14 }
 0x26a   :  { %1525 = vmatpush.bf16.msra.mxu2 %v5416_v48 }
 0x26c   :  { %1553 = vmatpush.bf16.msra.mxu3 %v5425_v8  ;;  %v5436_v8 = vld [vmem:[%s8001_s29 + $0x290] sm:$0xff] }
 0x26d   :  { %1223 = vmatmul.f32.gmra.mxu2 %v1197_v51 }
 0x26e   :  { %1526 = vmatpush.bf16.msra.mxu2 %v5415_v63 }
 0x270   :  { %1554 = vmatpush.bf16.msra.mxu3 %v5424_v15 }
 0x272   :  { %1527 = vmatpush.bf16.msra.mxu2 %v5414_v34 }
 0x274   :  { %1555 = vmatpush.bf16.msra.mxu3 %v5423_v42  ;;  %v5446_v42 = vld [vmem:[%s8001_s29 + $0x2e0] sm:$0xff] }
 0x275   :  { %1226 = vmatmul.f32.gmra.mxu2 %v1198_v36 }
 0x276   :  { %1528 = vmatpush.bf16.msra.mxu2 %v5413_v4 }
 0x278   :  { %1556 = vmatpush.bf16.msra.mxu3 %v5422_v1  ;;  %v5434_v1 = vld [vmem:[%s8001_s29 + $0x280] sm:$0xff] }
 0x27a   :  { %1529 = vmatpush.bf16.msra.mxu2 %v5412_v31 }
 0x27c   :  { %1557 = vmatpush.bf16.msra.mxu3 %v5421_v50  ;;  %v5443_v50 = vld [vmem:[%s8001_s29 + $0x2c8] sm:$0xff] }
 0x27d   :  { %1229 = vmatmul.f32.gmra.mxu2 %v1199_v16 }
 0x27e   :  { %1530 = vmatpush.bf16.msra.mxu2 %v5411_v52 }
 0x280   :  { %1558 = vmatpush.bf16.msra.mxu3 %v5420_v7 }
 0x282   :  { %1531 = vmatpush.bf16.msra.mxu2 %v5410_v12 }
 0x284   :  { %1559 = vmatpush.bf16.msra.mxu3 %v5419_v33  ;;  %v6805_v33 = vld [vmem:[%s8007_s23 + $0x2] ss:$0 sm:$0xff] }
 0x285   :  { %1232 = vmatmul.f32.gmra.mxu2 %v1200_v41 }
 0x288   :  { %1560 = vmatpush.bf16.msra.mxu3 %v5418_v54 }
 0x28d   :  { %1235 = vmatmul.f32.gmra.mxu2 %v1201_v25 }
 0x295   :  { %1238 = vmatmul.f32.gmra.mxu2 %v1202_v56 }
 0x29d   :  { %1241 = vmatmul.f32.gmra.mxu2 %v1203_v30 }
 0x2e8   :  { %v6630_v37 = vpop.f32.mrf.mxu2 }
 0x2e9   :  { %v1253_v13 = vrot.slane %v6630_v37, 7  ;;  %v1269_v16 = vrot.slane %v6630_v37, 1 }
 0x2f0   :  { %v6638_v60 = vpop.f32.mrf.mxu2 }
 0x2f1   :  { %v1286_v46 = vpack.c.bf16 %v6638_v60, %v6630_v37  ;;  %v1254_v10 = vrot.slane %v6638_v60, 7  ;;  %v1270_v36 = vrot.slane %v6638_v60, 1 }
 0x2f3   :  { %1532 = vmatmul.bf16.vlgmr.msra.gmra.mxu2 %v1286_v46  ;;  %v1267_v58 = vsel %vm122_vm0, %v1253_v13, %v1254_v10  ;;  %v1283_v25 = vsel %vm155_vm1, %v1269_v16, %v1270_v36 }
 0x2f8   :  { %v6648_v59 = vpop.f32.mrf.mxu2 }
 0x2f9   :  { %v1255_v61 = vrot.slane %v6648_v59, 7  ;;  %v1271_v51 = vrot.slane %v6648_v59, 1 }
 0x2fb   :  { %v1266_v40 = vsel %vm122_vm0, %v1254_v10, %v1255_v61  ;;  %v1282_v41 = vsel %vm155_vm1, %v1270_v36, %v1271_v51  ;;  %v5439_v10 = vld [vmem:[%s8001_s29 + $0x2a8] sm:$0xff] }
 0x2fc   :  { %v1287_v56 = vpack.c.bf16 %v1282_v41, %v1283_v25  ;;  %v5432_v41 = vld [vmem:[%s8001_s29 + $0x270] sm:$0xff]  ;;  %v6818_v25 = vpop.permute.xlu1 %1592 }
 0x300   :  { %v6656_v18 = vpop.f32.mrf.mxu2 }
 0x301   :  { %v1289_v32 = vpack.c.bf16 %v6656_v18, %v6648_v59  ;;  %v1256_v17 = vrot.slane %v6656_v18, 7  ;;  %v1272_v9 = vrot.slane %v6656_v18, 1 }
 0x303   :  { %1537 = vmatmul.bf16.gmra.mxu2 %v1289_v32  ;;  %v1265_v47 = vsel %vm122_vm0, %v1255_v61, %v1256_v17  ;;  %v1281_v63 = vsel %vm155_vm1, %v1271_v51, %v1272_v9  ;;  %v5440_v32 = vld [vmem:[%s8001_s29 + $0x2b0] sm:$0xff]  ;;  %v5445_v61 = vld [vmem:[%s8001_s29 + $0x2d8] sm:$0xff] }
 0x304   :  { %v1288_v24 = vpack.c.bf16 %v1265_v47, %v1266_v40  ;;  %1918 = vmatpush.bf16.msra.mxu1 %v5440_v32 }
 0x308   :  { %v6663_v20 = vpop.f32.mrf.mxu2  ;;  %1919 = vmatpush.bf16.msra.mxu1 %v5439_v10 }
 0x309   :  { %v1257_v19 = vrot.slane %v6663_v20, 7  ;;  %v1273_v30 = vrot.slane %v6663_v20, 1 }
 0x30b   :  { %v1264_v49 = vsel %vm122_vm0, %v1256_v17, %v1257_v19  ;;  %v1280_v48 = vsel %vm155_vm1, %v1272_v9, %v1273_v30  ;;  %v5435_v17 = vld [vmem:[%s8001_s29 + $0x288] sm:$0xff] }
 0x30c   :  { %v1290_v34 = vpack.c.bf16 %v1280_v48, %v1281_v63  ;;  %v6822_v48 = vpop.permute.xlu2 %1597 }
 0x310   :  { %v6665_v11 = vpop.f32.mrf.mxu2 }
 0x311   :  { %v1292_v26 = vpack.c.bf16 %v6665_v11, %v6663_v20  ;;  %v1258_v62 = vrot.slane %v6665_v11, 7  ;;  %v1274_v31 = vrot.slane %v6665_v11, 1 }
 0x313   :  { %1542 = vmatmul.bf16.gmra.mxu2 %v1292_v26  ;;  %v1263_v5 = vsel %vm122_vm0, %v1257_v19, %v1258_v62  ;;  %v1279_v12 = vsel %vm155_vm1, %v1273_v30, %v1274_v31 }
 0x314   :  { %v1291_v21 = vpack.c.bf16 %v1263_v5, %v1264_v49 }
 0x318   :  { %v6669_v53 = vpop.f32.mrf.mxu2 }
 0x319   :  { %v1259_v27 = vrot.slane %v6669_v53, 7  ;;  %v1275_v4 = vrot.slane %v6669_v53, 1 }
 0x31b   :  { %v1262_v43 = vsel %vm122_vm0, %v1258_v62, %v1259_v27  ;;  %v1278_v52 = vsel %vm155_vm1, %v1274_v31, %v1275_v4  ;;  %v5442_v62 = vld [vmem:[%s8001_s29 + $0x2c0] sm:$0xff] }
 0x31c   :  { %v1293_v2 = vpack.c.bf16 %v1278_v52, %v1279_v12 }
 0x320   :  { %v6672_v35 = vpop.f32.mrf.mxu2 }
 0x321   :  { %v1260_v22 = vrot.slane %v6672_v35, 7  ;;  %v1295_v28 = vpack.c.bf16 %v6672_v35, %v6669_v53  ;;  %v1276_v23 = vrot.slane %v6672_v35, 1 }
 0x323   :  { %v1268_v3 = vsel %vm122_vm0, %v1260_v22, %v1253_v13  ;;  %1547 = vmatmul.bf16.gmra.mxu2 %v1295_v28  ;;  %v1261_v29 = vsel %vm122_vm0, %v1259_v27, %v1260_v22  ;;  %v1277_v57 = vsel %vm155_vm1, %v1275_v4, %v1276_v23  ;;  %v1284_v46 = vsel %vm155_vm1, %v1276_v23, %v1269_v16  ;;  %v5449_v13 = vld [vmem:[%s8001_s29 + $0x2f8] sm:$0xff]  ;;  %v5438_v22 = vld [vmem:[%s8001_s29 + $0x2a0] sm:$0xff] }
 0x324   :  { %v1285_v38 = vpack.c.bf16 %v1267_v58, %v1268_v3  ;;  %v1294_v45 = vpack.c.bf16 %v1261_v29, %v1262_v43  ;;  %v1296_v6 = vpack.c.bf16 %v1284_v46, %v1277_v57  ;;  %1946 = vmatpush.bf16.msrb.mxu2 %v5449_v13  ;;  %1920 = vmatpush.bf16.msra.mxu1 %v5438_v22  ;;  %v5448_v58 = vld [vmem:[%s8001_s29 + $0x2f0] sm:$0xff]  ;;  %v5437_v3 = vld [vmem:[%s8001_s29 + $0x298] sm:$0xff]  ;;  %v5430_v46 = vld [vmem:[%s8001_s29 + $0x260] sm:$0xff] }
 0x325   :  { %v5433_v43 = vld [vmem:[%s8001_s29 + $0x278] sm:$0xff] }
 0x326   :  { %1503 = vmatmul.bf16.vlgmr.msrb.gmra.mxu3 %v1285_v38  ;;  %v5447_v38 = vld [vmem:[%s8001_s29 + $0x2e8] sm:$0xff]  ;;  %1888 = vmatpush.bf16.msra.mxu0 %v5433_v43 }
 0x328   :  { %1947 = vmatpush.bf16.msrb.mxu2 %v5448_v58  ;;  %1921 = vmatpush.bf16.msra.mxu1 %v5437_v3  ;;  %v5428_v3 = vld [vmem:[%s8001_s29 + $0x250] sm:$0xff] }
 0x32a   :  { %1889 = vmatpush.bf16.msra.mxu0 %v5432_v41 }
 0x32c   :  { %1948 = vmatpush.bf16.msrb.mxu2 %v5447_v38  ;;  %1922 = vmatpush.bf16.msra.mxu1 %v5436_v8 }
 0x330   :  { %1949 = vmatpush.bf16.msrb.mxu2 %v5446_v42  ;;  %1923 = vmatpush.bf16.msra.mxu1 %v5435_v17  ;;  %v6864_v17 = vpop.permute.xlu2 %1607 }
 0x334   :  { %1950 = vmatpush.bf16.msrb.mxu2 %v5445_v61  ;;  %1924 = vmatpush.bf16.msra.mxu1 %v5434_v1 }
 0x336   :  { %1508 = vmatmul.bf16.gmra.mxu3 %v1288_v24  ;;  %v5444_v24 = vld [vmem:[%s8001_s29 + $0x2d0] sm:$0xff] }
 0x338   :  { %1951 = vmatpush.bf16.msrb.mxu2 %v5444_v24 }
 0x33c   :  { %1952 = vmatpush.bf16.msrb.mxu2 %v5443_v50 }
 0x340   :  { %1953 = vmatpush.bf16.msrb.mxu2 %v5442_v62 }
 0x346   :  { %1513 = vmatmul.bf16.gmra.mxu3 %v1291_v21 }
 0x356   :  { %1518 = vmatmul.bf16.gmra.mxu3 %v1294_v45 }
 0x366   :  { %1561 = vmatmul.bf16.vlgmr.msra.gmra.mxu3 %v1287_v56 }
 0x376   :  { %1566 = vmatmul.bf16.gmra.mxu3 %v1290_v34  ;;  %v1533_v47 = vpop.f32.mrf.mxu2  ;;  %v5431_v34 = vld [vmem:[%s8001_s29 + $0x268] sm:$0xff] }
 0x377   :  { %1890 = vmatpush.bf16.msra.mxu0 %v5431_v34 }
 0x37b   :  { %1891 = vmatpush.bf16.msra.mxu0 %v5430_v46 }
 0x37e   :  { %v1535_v19 = vpop.f32.mrf.mxu2 }
 0x386   :  { %1571 = vmatmul.bf16.gmra.mxu3 %v1293_v2  ;;  %v1538_v29 = vpop.f32.mrf.mxu2 }
 0x38e   :  { %v1540_v4 = vpop.f32.mrf.mxu2 }
 0x396   :  { %1576 = vmatmul.bf16.gmra.mxu3 %v1296_v6  ;;  %v1543_v10 = vpop.f32.mrf.mxu2 }
 0x3a9   :  { %v1504_v55 = vpop.f32.mrf.mxu3 }
 0x3aa   :  { %v1505_v54 = vadd.f32 %v6805_v33, %v1504_v55 }
 0x3ac   :  { %v1534_v49 = vadd.f32 %v1533_v47, %v1505_v54  ;;  %v5427_v47 = vld [vmem:[%s8001_s29 + $0x248] sm:$0xff]  ;;  %v5426_v54 = vld [vmem:[%s8001_s29 + $0x240] sm:$0xff] }
 0x3b1   :  { %v1506_v39 = vpop.f32.mrf.mxu3 }
 0x3b2   :  { %v1507_v21 = vadd.f32 %v6805_v33, %v1506_v39  ;;  %v5429_v39 = vld [vmem:[%s8001_s29 + $0x258] sm:$0xff] }
 0x3b3   :  { %1892 = vmatpush.bf16.msra.mxu0 %v5429_v39 }
 0x3b4   :  { %v1536_v51 = vadd.f32 %v1535_v19, %v1507_v21 }
 0x3b7   :  { %1893 = vmatpush.bf16.msra.mxu0 %v5428_v3 }
 0x3b9   :  { %v1509_v0 = vpop.f32.mrf.mxu3 }
 0x3ba   :  { %v1510_v56 = vadd.f32 %v6805_v33, %v1509_v0 }
 0x3bb   :  { %1894 = vmatpush.bf16.msra.mxu0 %v5427_v47 }
 0x3bc   :  { %v1539_v31 = vadd.f32 %v1538_v29, %v1510_v56 }
 0x3bf   :  { %1895 = vmatpush.bf16.msra.mxu0 %v5426_v54 }
 0x3c1   :  { %v6753_v26 = vpop.f32.mrf.mxu3 }
 0x3c2   :  { %v1512_v6 = vadd.f32 %v6805_v33, %v6753_v26 }
 0x3c4   :  { %v1541_v32 = vadd.f32 %v1540_v4, %v1512_v6 }
 0x3c9   :  { %v6764_v28 = vpop.f32.mrf.mxu3 }
 0x3ca   :  { %v1515_v38 = vadd.f32 %v6805_v33, %v6764_v28 }
 0x3cc   :  { %v1544_v24 = vadd.f32 %v1543_v10, %v1515_v38 }
 0x3d1   :  { %v6778_v15 = vpop.f32.mrf.mxu3 }
 0x3d2   :  { %v1517_v21 = vadd.f32 %v6805_v33, %v6778_v15 }
 0x3d9   :  { %v6792_v40 = vpop.f32.mrf.mxu3 }
 0x3da   :  { %v1520_v15 = vadd.f32 %v6805_v33, %v6792_v40 }
 0x3e1   :  { %v6800_v7 = vpop.f32.mrf.mxu3 }
 0x3e2   :  { %v1522_v46 = vadd.f32 %v6805_v33, %v6800_v7 }
 0x3e9   :  { %v1562_v5 = vpop.f32.mrf.mxu3 }
 0x3ea   :  { %v1563_v27 = vadd.f32 %v1562_v5, %v1534_v49  ;;  %v6878_v5 = vpop.permute.xlu1 %1627  ;;  %v1545_v49 = vpop.f32.mrf.mxu2 }
 0x3ec   :  { %v1582_v45 = vmax.f32 %v1563_v27, 0.0 }
 0x3ee   :  { %v1630_v30 = vmul.f32 %v6818_v25, %v1582_v45  ;;  %v1546_v45 = vadd.f32 %v1545_v49, %v1517_v21 }
 0x3f0   :  { %v6829_v52 = vadd.f32 %v1630_v30, %v6630_v37  ;;  %v6841_v37 = vpop.permute.xlu0 %1602 }
 0x3f1   :  { %v1564_v36 = vpop.f32.mrf.mxu3 }
 0x3f2   :  { %v1565_v16 = vadd.f32 %v1564_v36, %v1536_v51  ;;  %v1662_v13 = vrot.slane %v6829_v52, 1 }
 0x3f4   :  { %v1583_v9 = vmax.f32 %v1565_v16, 0.0 }
 0x3f6   :  { %v1631_v63 = vmul.f32 %v6822_v48, %v1583_v9 }
 0x3f8   :  { %v6832_v12 = vadd.f32 %v1631_v63, %v6638_v60  ;;  %v6896_v63 = vpop.permute.xlu1 %1617 }
 0x3f9   :  { %v1567_v2 = vpop.f32.mrf.mxu3 }
 0x3fa   :  { %v1568_v23 = vadd.f32 %v1567_v2, %v1539_v31  ;;  %v1679_v57 = vpack.c.bf16 %v6832_v12, %v6829_v52  ;;  %v1663_v0 = vrot.slane %v6832_v12, 1 }
 0x3fc   :  { %v1584_v55 = vmax.f32 %v1568_v23, 0.0  ;;  %1925 = vmatmul.bf16.vlgmr.msra.gmra.mxu1 %v1679_v57  ;;  %v1676_v42 = vsel %vm155_vm1, %v1662_v13, %v1663_v0 }
 0x3fe   :  { %v1632_v60 = vmul.f32 %v6841_v37, %v1584_v55  ;;  %v6906_v55 = vpop.permute.xlu2 %1622 }
 0x400   :  { %v6849_v14 = vadd.f32 %v1632_v60, %v6648_v59 }
 0x401   :  { %v1569_v26 = vpop.f32.mrf.mxu3 }
 0x402   :  { %v1664_v22 = vrot.slane %v6849_v14, 1  ;;  %v1570_v58 = vadd.f32 %v1569_v26, %v1541_v32  ;;  %v1648_v49 = vrot.slane %v6849_v14, 7 }
 0x404   :  { %v1585_v8 = vmax.f32 %v1570_v58, 0.0  ;;  %v1675_v59 = vsel %vm155_vm1, %v1663_v0, %v1664_v22 }
 0x405   :  { %v1680_v61 = vpack.c.bf16 %v1675_v59, %v1676_v42  ;;  %v1646_v59 = vrot.slane %v6829_v52, 7 }
 0x406   :  { %v1633_v1 = vmul.f32 %v6864_v17, %v1585_v8 }
 0x407   :  { %1954 = vmatmul.bf16.vlgmr.msrb.gmra.mxu2 %v1680_v61 }
 0x408   :  { %v6871_v28 = vadd.f32 %v1633_v1, %v6656_v18  ;;  %v6882_v18 = vpop.permute.xlu0 %1612 }
 0x409   :  { %v1572_v50 = vpop.f32.mrf.mxu3 }
 0x40a   :  { %v1573_v62 = vadd.f32 %v1572_v50, %v1544_v24  ;;  %v1682_v19 = vpack.c.bf16 %v6871_v28, %v6849_v14  ;;  %v1665_v51 = vrot.slane %v6871_v28, 1  ;;  %v1649_v54 = vrot.slane %v6871_v28, 7 }
 0x40c   :  { %v1586_v27 = vmax.f32 %v1573_v62, 0.0  ;;  %1930 = vmatmul.bf16.gmra.mxu1 %v1682_v19  ;;  %v1674_v9 = vsel %vm155_vm1, %v1664_v22, %v1665_v51  ;;  %v1658_v21 = vsel %vm122_vm0, %v1648_v49, %v1649_v54 }
 0x40e   :  { %v1634_v29 = vmul.f32 %v6882_v18, %v1586_v27 }
 0x410   :  { %v6886_v43 = vadd.f32 %v1634_v29, %v6663_v20  ;;  %v1548_v20 = vpop.f32.mrf.mxu2 }
 0x411   :  { %v1574_v36 = vpop.f32.mrf.mxu3  ;;  %v1549_v2 = vadd.f32 %v1548_v20, %v1520_v15 }
 0x412   :  { %v1575_v16 = vadd.f32 %v1574_v36, %v1546_v45  ;;  %v1666_v41 = vrot.slane %v6886_v43, 1 }
 0x414   :  { %v1587_v56 = vmax.f32 %v1575_v16, 0.0  ;;  %v1673_v30 = vsel %vm155_vm1, %v1665_v51, %v1666_v41  ;;  %v1650_v51 = vrot.slane %v6886_v43, 7 }
 0x415   :  { %v1683_v34 = vpack.c.bf16 %v1673_v30, %v1674_v9 }
 0x416   :  { %v1635_v4 = vmul.f32 %v6896_v63, %v1587_v56  ;;  %v1657_v36 = vsel %vm122_vm0, %v1649_v54, %v1650_v51 }
 0x417   :  { %1959 = vmatmul.bf16.gmra.mxu2 %v1683_v34 }
 0x418   :  { %v6900_v31 = vadd.f32 %v1635_v4, %v6665_v11  ;;  %v1550_v39 = vpop.f32.mrf.mxu2 }
 0x419   :  { %v1577_v23 = vpop.f32.mrf.mxu3  ;;  %v1551_v11 = vadd.f32 %v1550_v39, %v1522_v46 }
 0x41a   :  { %v1578_v40 = vadd.f32 %v1577_v23, %v1549_v2  ;;  %v1685_v57 = vpack.c.bf16 %v6900_v31, %v6886_v43  ;;  %v1667_v32 = vrot.slane %v6900_v31, 1  ;;  %v1651_v45 = vrot.slane %v6900_v31, 7 }
 0x41c   :  { %v1588_v6 = vmax.f32 %v1578_v40, 0.0  ;;  %1935 = vmatmul.bf16.gmra.mxu1 %v1685_v57  ;;  %v1672_v33 = vsel %vm155_vm1, %v1666_v41, %v1667_v32 }
 0x41e   :  { %v1636_v60 = vmul.f32 %v6906_v55, %v1588_v6 }
 0x420   :  { %v6910_v0 = vadd.f32 %v1636_v60, %v6669_v53  ;;  %v1647_v53 = vrot.slane %v6832_v12, 7 }
 0x421   :  { %v1579_v10 = vpop.f32.mrf.mxu3 }
 0x422   :  { %v1580_v26 = vadd.f32 %v1579_v10, %v1551_v11  ;;  %v1668_v22 = vrot.slane %v6910_v0, 1  ;;  %v1660_v1 = vsel %vm122_vm0, %v1646_v59, %v1647_v53  ;;  %v1659_v27 = vsel %vm122_vm0, %v1647_v53, %v1648_v49 }
 0x423   :  { %v1681_v29 = vpack.c.bf16 %v1658_v21, %v1659_v27  ;;  %v1652_v41 = vrot.slane %v6910_v0, 7 }
 0x424   :  { %v1589_v58 = vmax.f32 %v1580_v26, 0.0  ;;  %v1671_v7 = vsel %vm155_vm1, %v1667_v32, %v1668_v22 }
 0x425   :  { %v1686_v3 = vpack.c.bf16 %v1671_v7, %v1672_v33  ;;  %v1655_v56 = vsel %vm122_vm0, %v1651_v45, %v1652_v41 }
 0x426   :  { %v1637_v38 = vmul.f32 %v6878_v5, %v1589_v58 }
 0x427   :  { %1964 = vmatmul.bf16.gmra.mxu2 %v1686_v3 }
 0x428   :  { %v6921_v8 = vadd.f32 %v1637_v38, %v6672_v35 }
 0x42a   :  { %v1653_v42 = vrot.slane %v6921_v8, 7  ;;  %v1688_v61 = vpack.c.bf16 %v6921_v8, %v6910_v0  ;;  %v1669_v50 = vrot.slane %v6921_v8, 1 }
 0x42c   :  { %1940 = vmatmul.bf16.gmra.mxu1 %v1688_v61  ;;  %v1661_v47 = vsel %vm122_vm0, %v1653_v42, %v1646_v59  ;;  %v1670_v35 = vsel %vm155_vm1, %v1668_v22, %v1669_v50  ;;  %v1677_v62 = vsel %vm155_vm1, %v1669_v50, %v1662_v13  ;;  %v1656_v13 = vsel %vm122_vm0, %v1650_v51, %v1651_v45  ;;  %v5635_v22 = vld [vmem:[%s8007_s23 + $0x3] ss:$0 sm:$0xff] }
 0x42d   :  { %v1678_v24 = vpack.c.bf16 %v1660_v1, %v1661_v47  ;;  %v1689_v19 = vpack.c.bf16 %v1677_v62, %v1670_v35  ;;  %v1684_v16 = vpack.c.bf16 %v1656_v13, %v1657_v36  ;;  %v1654_v15 = vsel %vm122_vm0, %v1652_v41, %v1653_v42 }
 0x42e   :  { %v1687_v30 = vpack.c.bf16 %v1654_v15, %v1655_v56 }
 0x42f   :  { %1896 = vmatmul.bf16.vlgmr.msra.gmra.mxu0 %v1678_v24 }
 0x437   :  { %1969 = vmatmul.bf16.gmra.mxu2 %v1689_v19 }
 0x43f   :  { %1901 = vmatmul.bf16.gmra.mxu0 %v1681_v29 }
 0x44f   :  { %1906 = vmatmul.bf16.gmra.mxu0 %v1684_v16 }
 0x45f   :  { %1911 = vmatmul.bf16.gmra.mxu0 %v1687_v30 }
 0x479   :  { %v1926_v9 = vpop.f32.mrf.mxu1 }
 0x481   :  { %v1928_v34 = vpop.f32.mrf.mxu1 }
 0x489   :  { %v1931_v23 = vpop.f32.mrf.mxu1 }
 0x48a   :  { %v1955_v20 = vpop.f32.mrf.mxu2 }
 0x491   :  { %v1933_v6 = vpop.f32.mrf.mxu1 }
 0x492   :  { %v1957_v4 = vpop.f32.mrf.mxu2 }
 0x499   :  { %v1936_v11 = vpop.f32.mrf.mxu1 }
 0x49a   :  { %v1960_v57 = vpop.f32.mrf.mxu2 }
 0x4a1   :  { %v1938_v26 = vpop.f32.mrf.mxu1 }
 0x4a2   :  { %v1962_v60 = vpop.f32.mrf.mxu2 }
 0x4a9   :  { %v1941_v38 = vpop.f32.mrf.mxu1 }
 0x4aa   :  { %v1965_v32 = vpop.f32.mrf.mxu2 }
 0x4ac   :  { %v1897_v2 = vpop.f32.mrf.mxu0 }
 0x4ad   :  { %v1898_v33 = vadd.f32 %v5635_v22, %v1897_v2 }
 0x4af   :  { %v1927_v53 = vadd.f32 %v1926_v9, %v1898_v33 }
 0x4b1   :  { %v1956_v35 = vadd.f32 %v1955_v20, %v1927_v53  ;;  %v1943_v41 = vpop.f32.mrf.mxu1 }
 0x4b2   :  { %v1967_v58 = vpop.f32.mrf.mxu2 }
 0x4b3   :  { %v1975_v29 = vmax.f32 %v1956_v35, 0.0 }
 0x4b4   :  { %v1899_v40 = vpop.f32.mrf.mxu0 }
 0x4b5   :  { %v1900_v49 = vadd.f32 %v5635_v22, %v1899_v40  ;;  %v1983_v2 = vmul.f32 %v1975_v29, %v6818_v25  ;;  %v2025_v29 = vld [vmem:[%s7949_s6 + $0x10] sm:$0xff] }
 0x4b7   :  { %v1929_v15 = vadd.f32 %v1928_v34, %v1900_v49  ;;  %v2023_v49 = vld [vmem:[%s7949_s6] sm:$0xff] }
 0x4ba   :  { %v1970_v1 = vpop.f32.mrf.mxu2 }
 0x4bc   :  { %v1902_v46 = vpop.f32.mrf.mxu0 }
 0x4bd   :  { %v1903_v62 = vadd.f32 %v5635_v22, %v1902_v46 }
 0x4bf   :  { %v1932_v51 = vadd.f32 %v1931_v23, %v1903_v62 }
 0x4c1   :  { %v1961_v46 = vadd.f32 %v1960_v57, %v1932_v51  ;;  %v5465_v51 = vld [vmem:[%s8001_s29 + $0x378] sm:$0xff] }
 0x4c2   :  { %v1972_v20 = vpop.f32.mrf.mxu2  ;;  %2312 = vmatpush.bf16.msrb.mxu0 %v5465_v51  ;;  %v5493_v51 = vld [vmem:[%s8001_s29 + $0x458] sm:$0xff] }
 0x4c4   :  { %v1904_v39 = vpop.f32.mrf.mxu0 }
 0x4c5   :  { %v1905_v47 = vadd.f32 %v5635_v22, %v1904_v39 }
 0x4c7   :  { %v1934_v21 = vadd.f32 %v1933_v6, %v1905_v47 }
 0x4c9   :  { %v1963_v56 = vadd.f32 %v1962_v60, %v1934_v21  ;;  %v5457_v21 = vld [vmem:[%s8001_s29 + $0x338] sm:$0xff] }
 0x4cc   :  { %v1907_v10 = vpop.f32.mrf.mxu0 }
 0x4cd   :  { %v1908_v42 = vadd.f32 %v5635_v22, %v1907_v10  ;;  %v1978_v10 = vmax.f32 %v1963_v56, 0.0  ;;  %v5461_v56 = vld [vmem:[%s8001_s29 + $0x358] sm:$0xff] }
 0x4cf   :  { %v1937_v19 = vadd.f32 %v1936_v11, %v1908_v42  ;;  %v1958_v11 = vadd.f32 %v1957_v4, %v1929_v15  ;;  %v1986_v57 = vmul.f32 %v1978_v10, %v6864_v17  ;;  %v5472_v15 = vld [vmem:[%s8001_s29 + $0x3b0] sm:$0xff] }
 0x4d0   :  { %v5468_v10 = vld [vmem:[%s8001_s29 + $0x390] sm:$0xff] }
 0x4d1   :  { %v1966_v13 = vadd.f32 %v1965_v32, %v1937_v19 }
 0x4d3   :  { %v1979_v39 = vmax.f32 %v1966_v13, 0.0  ;;  %v5464_v13 = vld [vmem:[%s8001_s29 + $0x370] sm:$0xff] }
 0x4d4   :  { %v1909_v7 = vpop.f32.mrf.mxu0  ;;  %2313 = vmatpush.bf16.msrb.mxu0 %v5464_v13  ;;  %v5482_v13 = vld [vmem:[%s8001_s29 + $0x400] sm:$0xff] }
 0x4d5   :  { %v1910_v3 = vadd.f32 %v5635_v22, %v1909_v7  ;;  %v1987_v34 = vmul.f32 %v1979_v39, %v6882_v18  ;;  %v5455_v39 = vld [vmem:[%s8001_s29 + $0x328] sm:$0xff] }
 0x4d7   :  { %v1939_v24 = vadd.f32 %v1938_v26, %v1910_v3  ;;  %v1991_v26 = vadd.f32 %v1983_v2, %v6829_v52  ;;  %v1995_v52 = vadd.f32 %v1987_v34, %v6886_v43  ;;  %v5456_v2 = vld [vmem:[%s8001_s29 + $0x330] sm:$0xff]  ;;  %v5451_v34 = vld [vmem:[%s8001_s29 + $0x308] sm:$0xff] }
 0x4d9   :  { %v1968_v27 = vadd.f32 %v1967_v58, %v1939_v24  ;;  %v1976_v58 = vmax.f32 %v1958_v11, 0.0  ;;  %v1999_v7 = vrot.slane %v1991_v26, 1  ;;  %v5454_v11 = vld [vmem:[%s8001_s29 + $0x320] sm:$0xff] }
 0x4db   :  { %v1980_v30 = vmax.f32 %v1968_v27, 0.0  ;;  %v1984_v18 = vmul.f32 %v1976_v58, %v6822_v48  ;;  %v2024_v27 = vld [vmem:[%s7949_s6 + $0x8] sm:$0xff] }
 0x4dc   :  { %v1912_v59 = vpop.f32.mrf.mxu0 }
 0x4dd   :  { %v1913_v61 = vadd.f32 %v5635_v22, %v1912_v59  ;;  %v1988_v23 = vmul.f32 %v1980_v30, %v6896_v63  ;;  %v1992_v42 = vadd.f32 %v1984_v18, %v6832_v12  ;;  %v5471_v30 = vld [vmem:[%s8001_s29 + $0x3a8] sm:$0xff] }
 0x4df   :  { %v1942_v50 = vadd.f32 %v1941_v38, %v1913_v61  ;;  %v1996_v4 = vadd.f32 %v1988_v23, %v6900_v31  ;;  %v5453_v23 = vld [vmem:[%s8001_s29 + $0x318] sm:$0xff] }
 0x4e1   :  { %v1971_v54 = vadd.f32 %v1970_v1, %v1942_v50  ;;  %v2004_v17 = vrot.slane %v1996_v4, 1 }
 0x4e3   :  { %v1981_v36 = vmax.f32 %v1971_v54, 0.0 }
 0x4e4   :  { %v1914_v45 = vpop.f32.mrf.mxu0 }
 0x4e5   :  { %v1915_v16 = vadd.f32 %v5635_v22, %v1914_v45  ;;  %v1989_v40 = vmul.f32 %v1981_v36, %v6906_v55  ;;  %v1977_v22 = vmax.f32 %v1961_v46, 0.0  ;;  %v2026_v45 = vld [vmem:[%s7949_s6 + $0x18] sm:$0xff]  ;;  %v5463_v36 = vld [vmem:[%s8001_s29 + $0x368] sm:$0xff] }
 0x4e6   :  { %2314 = vmatpush.bf16.msrb.mxu0 %v5463_v36  ;;  %v5459_v46 = vld [vmem:[%s8001_s29 + $0x348] sm:$0xff]  ;;  %v5478_v36 = vld [vmem:[%s8001_s29 + $0x3e0] sm:$0xff] }
 0x4e7   :  { %v1944_v9 = vadd.f32 %v1943_v41, %v1915_v16  ;;  %v1997_v25 = vadd.f32 %v1989_v40, %v6910_v0  ;;  %v1985_v63 = vmul.f32 %v1977_v22, %v6841_v37  ;;  %v2003_v37 = vrot.slane %v1995_v52, 1  ;;  %v5473_v16 = vld [vmem:[%s8001_s29 + $0x3b8] sm:$0xff]  ;;  %v5462_v41 = vld [vmem:[%s8001_s29 + $0x360] sm:$0xff] }
 0x4e8   :  { %2331 = vmatpush.bf16.msrb.mxu1 %v5473_v16  ;;  %v5469_v40 = vld [vmem:[%s8001_s29 + $0x398] sm:$0xff]  ;;  %v5466_v22 = vld [vmem:[%s8001_s29 + $0x380] sm:$0xff]  ;;  %v5492_v16 = vld [vmem:[%s8001_s29 + $0x450] sm:$0xff] }
 0x4e9   :  { %v1973_v6 = vadd.f32 %v1972_v20, %v1944_v9  ;;  %v2005_v3 = vrot.slane %v1997_v25, 1  ;;  %v1993_v53 = vadd.f32 %v1985_v63, %v6849_v14  ;;  %v2009_v48 = vsel %vm155_vm1, %v2003_v37, %v2004_v17  ;;  %v5460_v9 = vld [vmem:[%s8001_s29 + $0x350] sm:$0xff]  ;;  %v5470_v20 = vld [vmem:[%s8001_s29 + $0x3a0] sm:$0xff] }
 0x4ea   :  { %v2019_v47 = vmax.f32 %v1995_v52, %v2009_v48  ;;  %v2000_v14 = vrot.slane %v1992_v42, 1  ;;  %2315 = vmatpush.bf16.msrb.mxu0 %v5462_v41  ;;  %v5488_v63 = vld [vmem:[%s8001_s29 + $0x430] sm:$0xff]  ;;  %v5477_v41 = vld [vmem:[%s8001_s29 + $0x3d8] sm:$0xff] }
 0x4eb   :  { %v1982_v32 = vmax.f32 %v1973_v6, 0.0  ;;  %v2008_v31 = vsel %vm155_vm1, %v2004_v17, %v2005_v3  ;;  %v2001_v1 = vrot.slane %v1993_v53, 1  ;;  %v5458_v6 = vld [vmem:[%s8001_s29 + $0x340] sm:$0xff] }
 0x4ec   :  { %v2020_v61 = vmax.f32 %v1996_v4, %v2008_v31  ;;  %v2013_v12 = vsel %vm155_vm1, %v1999_v7, %v2000_v14  ;;  %2332 = vmatpush.bf16.msrb.mxu1 %v5472_v15  ;;  %v5491_v15 = vld [vmem:[%s8001_s29 + $0x448] sm:$0xff] }
 0x4ed   :  { %v1990_v60 = vmul.f32 %v1982_v32, %v6878_v5  ;;  %v2012_v35 = vsel %vm155_vm1, %v2000_v14, %v2001_v1  ;;  %v2015_v54 = vmax.f32 %v1991_v26, %v2013_v12  ;;  %v5467_v32 = vld [vmem:[%s8001_s29 + $0x388] sm:$0xff]  ;;  %v5452_v26 = vld [vmem:[%s8001_s29 + $0x310] sm:$0xff]  ;;  %v5485_v12 = vld [vmem:[%s8001_s29 + $0x418] sm:$0xff] }
 0x4ee   :  { %v2016_v19 = vmax.f32 %v1992_v42, %v2012_v35  ;;  %2316 = vmatpush.bf16.msrb.mxu0 %v5461_v56  ;;  %v5487_v14 = vld [vmem:[%s8001_s29 + $0x428] sm:$0xff]  ;;  %v5486_v35 = vld [vmem:[%s8001_s29 + $0x420] sm:$0xff] }
 0x4ef   :  { %v1998_v55 = vadd.f32 %v1990_v60, %v6921_v8  ;;  %v1994_v8 = vadd.f32 %v1986_v57, %v6871_v28  ;;  %v5450_v60 = vld [vmem:[%s8001_s29 + $0x300] sm:$0xff] }
 0x4f0   :  { %2333 = vmatpush.bf16.msrb.mxu1 %v5471_v30  ;;  %v5636_v30 = vld [vmem:[%s8007_s23 + $0x4] ss:$0 sm:$0xff] }
 0x4f1   :  { %v2006_v33 = vrot.slane %v1998_v55, 1  ;;  %v2002_v59 = vrot.slane %v1994_v8, 1 }
 0x4f2   :  { %2317 = vmatpush.bf16.msrb.mxu0 %v5460_v9  ;;  %v5476_v9 = vld [vmem:[%s8001_s29 + $0x3d0] sm:$0xff] }
 0x4f3   :  { %v2014_v5 = vsel %vm155_vm1, %v2006_v33, %v1999_v7  ;;  %v2007_v0 = vsel %vm155_vm1, %v2005_v3, %v2006_v33  ;;  %v2010_v28 = vsel %vm155_vm1, %v2002_v59, %v2003_v37  ;;  %v2011_v24 = vsel %vm155_vm1, %v2001_v1, %v2002_v59 }
 0x4f4   :  { %v2022_v38 = vmax.f32 %v1998_v55, %v2014_v5  ;;  %v2021_v43 = vmax.f32 %v1997_v25, %v2007_v0  ;;  %v2018_v50 = vmax.f32 %v1994_v8, %v2010_v28  ;;  %v2017_v62 = vmax.f32 %v1993_v53, %v2011_v24  ;;  %2334 = vmatpush.bf16.msrb.mxu1 %v5470_v20  ;;  %v5489_v55 = vld [vmem:[%s8001_s29 + $0x438] sm:$0xff] }
 0x4f6   :  { %2048 = vmatpush.msrb.mxu3 %v2022_v38  ;;  %2318 = vmatpush.bf16.msrb.mxu0 %v5459_v46 }
 0x4f8   :  { %2049 = vmatpush.msrb.mxu3 %v2021_v43  ;;  %2335 = vmatpush.bf16.msrb.mxu1 %v5469_v40  ;;  %v5475_v40 = vld [vmem:[%s8001_s29 + $0x3c8] sm:$0xff] }
 0x4fa   :  { %2050 = vmatpush.msrb.mxu3 %v2020_v61  ;;  %2319 = vmatpush.bf16.msrb.mxu0 %v5458_v6 }
 0x4fc   :  { %2051 = vmatpush.msrb.mxu3 %v2019_v47  ;;  %2336 = vmatpush.bf16.msrb.mxu1 %v5468_v10 }
 0x4fe   :  { %2052 = vmatpush.msrb.mxu3 %v2018_v50  ;;  %v5497_v50 = vld [vmem:[%s8001_s29 + $0x478] sm:$0xff] }
 0x4ff   :  { %2640 = vmatpush.bf16.msra.mxu0 %v5497_v50 }
 0x500   :  { %2053 = vmatpush.msrb.mxu3 %v2017_v62  ;;  %2337 = vmatpush.bf16.msrb.mxu1 %v5467_v32  ;;  %v5496_v62 = vld [vmem:[%s8001_s29 + $0x470] sm:$0xff] }
 0x502   :  { %2054 = vmatpush.msrb.mxu3 %v2016_v19  ;;  %v5481_v19 = vld [vmem:[%s8001_s29 + $0x3f8] sm:$0xff] }
 0x503   :  { %2641 = vmatpush.bf16.msra.mxu0 %v5496_v62  ;;  %2602 = vmatpush.bf16.msra.mxu2 %v5481_v19  ;;  %v2372_v19 = vpop.permute.xlu2 %2371 }
 0x504   :  { %2055 = vmatpush.msrb.mxu3 %v2015_v54  ;;  %2338 = vmatpush.bf16.msrb.mxu1 %v5466_v22  ;;  %v5495_v54 = vld [vmem:[%s8001_s29 + $0x468] sm:$0xff] }
 0x505   :  { %4528 = vmatmul.msk.f32.vlgmr.msrb.gmra.mxu3 %vm2027_vm2, %v2023_v49  ;;  %v5484_v49 = vld [vmem:[%s8001_s29 + $0x410] sm:$0xff] }
 0x506   :  { %2293 = vmatpush.bf16.msra.mxu3 %v5457_v21  ;;  %v5480_v21 = vld [vmem:[%s8001_s29 + $0x3f0] sm:$0xff] }
 0x507   :  { %2642 = vmatpush.bf16.msra.mxu0 %v5495_v54  ;;  %2603 = vmatpush.bf16.msra.mxu2 %v5480_v21 }
 0x50a   :  { %2294 = vmatpush.bf16.msra.mxu3 %v5456_v2  ;;  %v5490_v2 = vld [vmem:[%s8001_s29 + $0x440] sm:$0xff] }
 0x50d   :  { %4529 = vmatmul.msk.f32.gmra.mxu3 %vm2027_vm2, %v2024_v27  ;;  %v5494_v27 = vld [vmem:[%s8001_s29 + $0x460] sm:$0xff] }
 0x50e   :  { %2295 = vmatpush.bf16.msra.mxu3 %v5455_v39  ;;  %2643 = vmatpush.bf16.msra.mxu0 %v5494_v27 }
 0x512   :  { %2296 = vmatpush.bf16.msra.mxu3 %v5454_v11  ;;  %2644 = vmatpush.bf16.msra.mxu0 %v5493_v51  ;;  %v5474_v11 = vld [vmem:[%s8001_s29 + $0x3c0] sm:$0xff] }
 0x515   :  { %4530 = vmatmul.msk.f32.gmra.mxu3 %vm2027_vm2, %v2025_v29  ;;  %v5483_v29 = vld [vmem:[%s8001_s29 + $0x408] sm:$0xff] }
 0x516   :  { %2297 = vmatpush.bf16.msra.mxu3 %v5453_v23  ;;  %2645 = vmatpush.bf16.msra.mxu0 %v5492_v16 }
 0x51a   :  { %2298 = vmatpush.bf16.msra.mxu3 %v5452_v26  ;;  %2646 = vmatpush.bf16.msra.mxu0 %v5491_v15 }
 0x51d   :  { %4531 = vmatmul.msk.f32.gmra.mxu3 %vm2027_vm2, %v2026_v45  ;;  %v5479_v45 = vld [vmem:[%s8001_s29 + $0x3e8] sm:$0xff] }
 0x51e   :  { %2299 = vmatpush.bf16.msra.mxu3 %v5451_v34  ;;  %2604 = vmatpush.bf16.msra.mxu2 %v5479_v45 }
 0x51f   :  { %2647 = vmatpush.bf16.msra.mxu0 %v5490_v2 }
 0x522   :  { %2300 = vmatpush.bf16.msra.mxu3 %v5450_v60  ;;  %2605 = vmatpush.bf16.msra.mxu2 %v5478_v36 }
 0x526   :  { %2621 = vmatpush.bf16.msrb.mxu3 %v5489_v55  ;;  %2606 = vmatpush.bf16.msra.mxu2 %v5477_v41  ;;  %v7189_v55 = vpop.permute.xlu0 %2356 }
 0x52a   :  { %2622 = vmatpush.bf16.msrb.mxu3 %v5488_v63  ;;  %2607 = vmatpush.bf16.msra.mxu2 %v5476_v9 }
 0x52e   :  { %2623 = vmatpush.bf16.msrb.mxu3 %v5487_v14  ;;  %2608 = vmatpush.bf16.msra.mxu2 %v5475_v40 }
 0x532   :  { %2624 = vmatpush.bf16.msrb.mxu3 %v5486_v35  ;;  %2609 = vmatpush.bf16.msra.mxu2 %v5474_v11 }
 0x536   :  { %2625 = vmatpush.bf16.msrb.mxu3 %v5485_v12 }
 0x53a   :  { %2626 = vmatpush.bf16.msrb.mxu3 %v5484_v49 }
 0x53e   :  { %2627 = vmatpush.bf16.msrb.mxu3 %v5483_v29 }
 0x542   :  { %2628 = vmatpush.bf16.msrb.mxu3 %v5482_v13 }
 0x588   :  { %v7078_v25 = vpop.f32.mrf.mxu3 }
 0x589   :  { %v2081_v33 = vrot.slane %v7078_v25, 1  ;;  %v2073_v8 = vrot.slane %v7078_v25, 7 }
 0x590   :  { %v7080_v58 = vpop.f32.mrf.mxu3 }
 0x591   :  { %v2090_v57 = vpack.c.bf16 %v7080_v58, %v7078_v25  ;;  %v2082_v4 = vrot.slane %v7080_v58, 1  ;;  %v2074_v0 = vrot.slane %v7080_v58, 7 }
 0x593   :  { %2320 = vmatmul.bf16.vlgmr.msrb.gmra.mxu0 %v2090_v57  ;;  %v2087_v52 = vsel %vm155_vm1, %v2081_v33, %v2082_v4  ;;  %v2079_v37 = vsel %vm122_vm0, %v2073_v8, %v2074_v0 }
 0x594   :  { %2989 = vmatpush.bf16.msrb.mxu0 %v5505_v44 }
 0x598   :  { %v7088_v7 = vpop.f32.mrf.mxu3 }
 0x599   :  { %v2083_v3 = vrot.slane %v7088_v7, 1  ;;  %v2075_v28 = vrot.slane %v7088_v7, 7 }
 0x59b   :  { %v2086_v18 = vsel %vm155_vm1, %v2082_v4, %v2083_v3  ;;  %v2078_v47 = vsel %vm122_vm0, %v2074_v0, %v2075_v28  ;;  %v7191_v4 = vpop.permute.xlu1 %2361 }
 0x59c   :  { %v2091_v5 = vpack.c.bf16 %v2086_v18, %v2087_v52 }
 0x59e   :  { %2339 = vmatmul.bf16.vlgmr.msrb.gmra.mxu1 %v2091_v5 }
 0x5a0   :  { %v7100_v17 = vpop.f32.mrf.mxu3 }
 0x5a1   :  { %v2076_v38 = vrot.slane %v7100_v17, 7  ;;  %v2093_v31 = vpack.c.bf16 %v7100_v17, %v7088_v7  ;;  %v2084_v48 = vrot.slane %v7100_v17, 1 }
 0x5a3   :  { %v2080_v53 = vsel %vm122_vm0, %v2076_v38, %v2073_v8  ;;  %2325 = vmatmul.bf16.gmra.mxu0 %v2093_v31  ;;  %v2085_v59 = vsel %vm155_vm1, %v2083_v3, %v2084_v48  ;;  %v2088_v42 = vsel %vm155_vm1, %v2084_v48, %v2081_v33  ;;  %v2077_v1 = vsel %vm122_vm0, %v2075_v28, %v2076_v38  ;;  %v7203_v48 = vpop.permute.xlu0 %2366 }
 0x5a4   :  { %v2089_v43 = vpack.c.bf16 %v2079_v37, %v2080_v53  ;;  %v2094_v61 = vpack.c.bf16 %v2088_v42, %v2085_v59  ;;  %v2092_v24 = vpack.c.bf16 %v2077_v1, %v2078_v47 }
 0x5a6   :  { %2301 = vmatmul.bf16.vlgmr.msra.gmra.mxu3 %v2089_v43 }
 0x5ae   :  { %2344 = vmatmul.bf16.gmra.mxu1 %v2094_v61 }
 0x5b6   :  { %2306 = vmatmul.bf16.gmra.mxu3 %v2092_v24 }
 0x610   :  { %v2321_v56 = vpop.f32.mrf.mxu0 }
 0x618   :  { %v2323_v10 = vpop.f32.mrf.mxu0 }
 0x61b   :  { %v2340_v20 = vpop.f32.mrf.mxu1 }
 0x620   :  { %v2326_v52 = vpop.f32.mrf.mxu0 }
 0x623   :  { %v2342_v26 = vpop.f32.mrf.mxu1 }
 0x628   :  { %v2328_v28 = vpop.f32.mrf.mxu0 }
 0x629   :  { %v2302_v46 = vpop.f32.mrf.mxu3 }
 0x62a   :  { %v2303_v39 = vadd.f32 %v5636_v30, %v2302_v46 }
 0x62b   :  { %v2345_v0 = vpop.f32.mrf.mxu1 }
 0x62c   :  { %v2322_v6 = vadd.f32 %v2321_v56, %v2303_v39 }
 0x62e   :  { %v2341_v23 = vadd.f32 %v2340_v20, %v2322_v6 }
 0x630   :  { %v2350_v34 = vmax.f32 %v2341_v23, 0.0 }
 0x631   :  { %v2304_v32 = vpop.f32.mrf.mxu3 }
 0x632   :  { %v2305_v22 = vadd.f32 %v5636_v30, %v2304_v32  ;;  %v2374_v63 = vmul.f32 %v7189_v55, %v2350_v34 }
 0x633   :  { %v2347_v47 = vpop.f32.mrf.mxu1 }
 0x634   :  { %v2324_v60 = vadd.f32 %v2323_v10, %v2305_v22  ;;  %v7196_v8 = vadd.f32 %v2374_v63, %v7078_v25  ;;  %v5637_v10 = vld [vmem:[%s8007_s23 + $0x5] ss:$0 sm:$0xff] }
 0x636   :  { %v2343_v57 = vadd.f32 %v2342_v26, %v2324_v60  ;;  %v2390_v24 = vrot.slane %v7196_v8, 1  ;;  %v2382_v27 = vrot.slane %v7196_v8, 7 }
 0x638   :  { %v2351_v33 = vmax.f32 %v2343_v57, 0.0 }
 0x639   :  { %v2307_v3 = vpop.f32.mrf.mxu3 }
 0x63a   :  { %v2375_v18 = vmul.f32 %v7191_v4, %v2351_v33  ;;  %v2308_v5 = vadd.f32 %v5636_v30, %v2307_v3 }
 0x63c   :  { %v7199_v38 = vadd.f32 %v2375_v18, %v7080_v58  ;;  %v2327_v31 = vadd.f32 %v2326_v52, %v2308_v5 }
 0x63e   :  { %v2346_v37 = vadd.f32 %v2345_v0, %v2327_v31  ;;  %v2399_v53 = vpack.c.bf16 %v7199_v38, %v7196_v8  ;;  %v2391_v25 = vrot.slane %v7199_v38, 1 }
 0x640   :  { %v2352_v43 = vmax.f32 %v2346_v37, 0.0  ;;  %2629 = vmatmul.bf16.vlgmr.msrb.gmra.mxu3 %v2399_v53  ;;  %v2396_v12 = vsel %vm155_vm1, %v2390_v24, %v2391_v25 }
 0x641   :  { %v2309_v59 = vpop.f32.mrf.mxu3 }
 0x642   :  { %v2376_v42 = vmul.f32 %v7203_v48, %v2352_v43  ;;  %v2310_v61 = vadd.f32 %v5636_v30, %v2309_v59 }
 0x644   :  { %v7208_v1 = vadd.f32 %v2376_v42, %v7088_v7  ;;  %v2329_v58 = vadd.f32 %v2328_v28, %v2310_v61  ;;  %v2383_v7 = vrot.slane %v7199_v38, 7 }
 0x646   :  { %v2392_v14 = vrot.slane %v7208_v1, 1  ;;  %v2348_v50 = vadd.f32 %v2347_v47, %v2329_v58  ;;  %v2388_v51 = vsel %vm122_vm0, %v2382_v27, %v2383_v7  ;;  %v2384_v56 = vrot.slane %v7208_v1, 7 }
 0x648   :  { %v2353_v35 = vmax.f32 %v2348_v50, 0.0  ;;  %v2395_v62 = vsel %vm155_vm1, %v2391_v25, %v2392_v14  ;;  %v2387_v9 = vsel %vm122_vm0, %v2383_v7, %v2384_v56 }
 0x649   :  { %v2400_v54 = vpack.c.bf16 %v2395_v62, %v2396_v12 }
 0x64a   :  { %v2377_v49 = vmul.f32 %v2372_v19, %v2353_v35 }
 0x64b   :  { %2648 = vmatmul.bf16.vlgmr.msra.gmra.mxu0 %v2400_v54 }
 0x64c   :  { %v2381_v21 = vadd.f32 %v2377_v49, %v7100_v17 }
 0x64e   :  { %v2385_v29 = vrot.slane %v2381_v21, 7  ;;  %v2402_v45 = vpack.c.bf16 %v2381_v21, %v7208_v1  ;;  %v2393_v16 = vrot.slane %v2381_v21, 1 }
 0x650   :  { %2634 = vmatmul.bf16.gmra.mxu3 %v2402_v45  ;;  %v2389_v13 = vsel %vm122_vm0, %v2385_v29, %v2382_v27  ;;  %v2394_v41 = vsel %vm155_vm1, %v2392_v14, %v2393_v16  ;;  %v2397_v17 = vsel %vm155_vm1, %v2393_v16, %v2390_v24  ;;  %v2386_v30 = vsel %vm122_vm0, %v2384_v56, %v2385_v29  ;;  %v2683_v27 = vld [vmem:[%s7950_s7] sm:$0xff]  ;;  %v2684_v29 = vld [vmem:[%s7950_s7 + $0x8] sm:$0xff]  ;;  %v5513_v45 = vld [vmem:[%s7951_s11 + $0x78] sm:$0xff] }
 0x651   :  { %v2398_v36 = vpack.c.bf16 %v2388_v51, %v2389_v13  ;;  %v2403_v15 = vpack.c.bf16 %v2397_v17, %v2394_v41  ;;  %v2401_v2 = vpack.c.bf16 %v2386_v30, %v2387_v9  ;;  %v5504_v51 = vld [vmem:[%s7951_s11 + $0x30] sm:$0xff]  ;;  %v5511_v16 = vld [vmem:[%s7951_s11 + $0x68] sm:$0xff]  ;;  %v5502_v41 = vld [vmem:[%s7951_s11 + $0x20] sm:$0xff] }
 0x652   :  { %v5512_v13 = vld [vmem:[%s7951_s11 + $0x70] sm:$0xff]  ;;  %2990 = vmatpush.bf16.msrb.mxu0 %v5504_v51  ;;  %v5510_v17 = vld [vmem:[%s7951_s11 + $0x60] sm:$0xff]  ;;  %v5501_v56 = vld [vmem:[%s7951_s11 + $0x18] sm:$0xff] }
 0x653   :  { %2610 = vmatmul.bf16.vlgmr.msra.gmra.mxu2 %v2398_v36  ;;  %v5503_v36 = vld [vmem:[%s7951_s11 + $0x28] sm:$0xff]  ;;  %v5509_v30 = vld [vmem:[%s7951_s11 + $0x58] sm:$0xff]  ;;  %v5500_v9 = vld [vmem:[%s7951_s11 + $0x10] sm:$0xff] }
 0x654   :  { %v5529_v51 = vld [vmem:[%s7953_s13 + $0x34] sm:$0xf0] }
 0x656   :  { %2991 = vmatpush.bf16.msrb.mxu0 %v5503_v36  ;;  %v4953_v36 = vld [vmem:[%s7953_s13 + $0x38] sm:$0xf0] }
 0x65a   :  { %2992 = vmatpush.bf16.msrb.mxu0 %v5502_v41 }
 0x65b   :  { %2653 = vmatmul.bf16.gmra.mxu0 %v2403_v15 }
 0x65e   :  { %2993 = vmatpush.bf16.msrb.mxu0 %v5501_v56  ;;  %v4935_v56 = vld [vmem:[%s7953_s13 + $0x8] sm:$0xf] }
 0x662   :  { %2994 = vmatpush.bf16.msrb.mxu0 %v5500_v9  ;;  %v5523_v9 = vld [vmem:[%s7953_s13 + $0xc] sm:$0xf] }
 0x663   :  { %2615 = vmatmul.bf16.gmra.mxu2 %v2401_v2  ;;  %v5508_v2 = vld [vmem:[%s7951_s11 + $0x50] sm:$0xff] }
 0x6c3   :  { %v2630_v20 = vpop.f32.mrf.mxu3 }
 0x6c8   :  { %v2649_v46 = vpop.f32.mrf.mxu0 }
 0x6cb   :  { %v2632_v40 = vpop.f32.mrf.mxu3 }
 0x6d0   :  { %v2651_v6 = vpop.f32.mrf.mxu0 }
 0x6d3   :  { %v2635_v26 = vpop.f32.mrf.mxu3 }
 0x6d6   :  { %v2611_v39 = vpop.f32.mrf.mxu2 }
 0x6d7   :  { %v2612_v23 = vadd.f32 %v5637_v10, %v2611_v39  ;;  %v4825_v39 = vld [vmem:[%s7952_s8 + $0x4] sm:$0xf] }
 0x6d8   :  { %v2654_v57 = vpop.f32.mrf.mxu0 }
 0x6d9   :  { %v2631_v34 = vadd.f32 %v2630_v20, %v2612_v23 }
 0x6db   :  { %v2650_v3 = vadd.f32 %v2649_v46, %v2631_v34  ;;  %v2637_v53 = vpop.f32.mrf.mxu3  ;;  %v2715_v46 = vld [vmem:[%s7952_s8] sm:$0xf] }
 0x6dd   :  { %v2659_v0 = vmax.f32 %v2650_v3, 0.0  ;;  %v5524_v3 = vld [vmem:[%s7953_s13 + $0xc] sm:$0xf0] }
 0x6de   :  { %v2613_v11 = vpop.f32.mrf.mxu2 }
 0x6df   :  { %v2614_v32 = vadd.f32 %v5637_v10, %v2613_v11  ;;  %v2663_v61 = vmul.f32 %v2659_v0, %v7189_v55  ;;  %v5499_v11 = vld [vmem:[%s7951_s11 + $0x8] sm:$0xff]  ;;  %v3029_v0 = vld [vmem:[%s7954_s1] sm:$0xf] }
 0x6e0   :  { %v2656_v42 = vpop.f32.mrf.mxu0  ;;  %2995 = vmatpush.bf16.msrb.mxu0 %v5499_v11 }
 0x6e1   :  { %v2633_v63 = vadd.f32 %v2632_v40, %v2614_v32  ;;  %v2667_v24 = vadd.f32 %v2663_v61, %v7196_v8  ;;  %v4975_v40 = vld [vmem:[%s7953_s13 + $0x60] sm:$0xf]  ;;  %v4945_v61 = vld [vmem:[%s7953_s13 + $0x30] sm:$0xf0] }
 0x6e2   :  { %v4959_v32 = vld [vmem:[%s7953_s13 + $0x40] sm:$0xf] }
 0x6e3   :  { %v2652_v18 = vadd.f32 %v2651_v6, %v2633_v63  ;;  %v2671_v12 = vrot.slane %v2667_v24, 1  ;;  %v5536_v6 = vld [vmem:[%s7953_s13 + $0x6c] sm:$0xf0] }
 0x6e4   :  { %v4976_v23 = vor.u32 %v5536_v6, %v4975_v40  ;;  %v5553_v40 = vld [vmem:[%s7956_s15 + $0x74] sm:$0xf0]  ;;  %v5115_v6 = vld [vmem:[%s7956_s15 + $0xf0] sm:$0xf] }
 0x6e5   :  { %v2660_v43 = vmax.f32 %v2652_v18, 0.0  ;;  %v4977_v18 = vld [vmem:[%s7953_s13 + $0x70] sm:$0xf0] }
 0x6e6   :  { %v2616_v22 = vpop.f32.mrf.mxu2 }
 0x6e7   :  { %v2617_v60 = vadd.f32 %v5637_v10, %v2616_v22  ;;  %v2664_v58 = vmul.f32 %v2660_v43, %v7191_v4  ;;  %v4827_v22 = vld [vmem:[%s7952_s8 + $0x8] sm:$0xf]  ;;  %v7351_v43 = vpack.c.bf16 %v3029_v0, %v3029_v0  ;;  %v5027_v0 = vld [vmem:[%s7956_s15 + $0x40] sm:$0xf] }
 0x6e9   :  { %v2636_v33 = vadd.f32 %v2635_v26, %v2617_v60  ;;  %v2668_v62 = vadd.f32 %v2664_v58, %v7199_v38  ;;  %v5532_v26 = vld [vmem:[%s7953_s13 + $0x4c] sm:$0xf0]  ;;  %v4943_v60 = vld [vmem:[%s7953_s13 + $0x20] sm:$0xf]  ;;  %v4929_v58 = vld [vmem:[%s7953_s13 + $0x10] sm:$0xf0] }
 0x6ea   :  { %v4960_v34 = vor.u32 %v5532_v26, %v4959_v32  ;;  %v5551_v32 = vld [vmem:[%s7956_s15 + $0x64] sm:$0xf0] }
 0x6eb   :  { %v2655_v52 = vadd.f32 %v2654_v57, %v2636_v33  ;;  %v2672_v7 = vrot.slane %v2668_v62, 1  ;;  %v5528_v57 = vld [vmem:[%s7953_s13 + $0x2c] sm:$0xf0]  ;;  %v4927_v33 = vld [vmem:[%s7953_s13] sm:$0xf] }
 0x6ec   :  { %v4944_v63 = vor.u32 %v5528_v57, %v4943_v60 }
 0x6ed   :  { %v2661_v31 = vmax.f32 %v2655_v52, 0.0  ;;  %v5534_v52 = vld [vmem:[%s7953_s13 + $0x64] sm:$0xf] }
 0x6ee   :  { %v2618_v5 = vpop.f32.mrf.mxu2 }
 0x6ef   :  { %v2619_v37 = vadd.f32 %v5637_v10, %v2618_v5  ;;  %v2665_v28 = vmul.f32 %v2661_v31, %v7203_v48  ;;  %v5507_v10 = vld [vmem:[%s7951_s11 + $0x48] sm:$0xff]  ;;  %v4928_v5 = vor.u32 %v5524_v3, %v4927_v33  ;;  %v4980_v31 = vor.u32 %v5534_v52, %v4977_v18  ;;  %v5549_v33 = vld [vmem:[%s7956_s15 + $0x54] sm:$0xf0]  ;;  %v5099_v3 = vld [vmem:[%s7956_s15 + $0xd0] sm:$0xf] }
 0x6f0   :  { %v5565_v52 = vld [vmem:[%s7956_s15 + $0xd4] sm:$0xf0] }
 0x6f1   :  { %v2638_v59 = vadd.f32 %v2637_v53, %v2619_v37  ;;  %v2669_v50 = vadd.f32 %v2665_v28, %v7208_v1  ;;  %v2677_v1 = vsel %vm155_vm1, %v2671_v12, %v2672_v7  ;;  %v5530_v37 = vld [vmem:[%s7953_s13 + $0x44] sm:$0xf]  ;;  %v4961_v53 = vld [vmem:[%s7953_s13 + $0x50] sm:$0xf0] }
 0x6f3   :  { %v2657_v25 = vadd.f32 %v2656_v42, %v2638_v59  ;;  %v2673_v49 = vrot.slane %v2669_v50, 1  ;;  %v4964_v59 = vor.u32 %v5530_v37, %v4961_v53  ;;  %v5526_v42 = vld [vmem:[%s7953_s13 + $0x24] sm:$0xf]  ;;  %v5179_v37 = vld [vmem:[%s7956_s15 + $0x170] sm:$0xf] }
 0x6f4   :  { %v4948_v28 = vor.u32 %v5526_v42, %v4945_v61  ;;  %v5585_v53 = vld [vmem:[%s7956_s15 + $0x174] sm:$0xf0] }
 0x6f5   :  { %v2662_v47 = vmax.f32 %v2657_v25, 0.0  ;;  %v2676_v8 = vsel %vm155_vm1, %v2672_v7, %v2673_v49  ;;  %v5522_v25 = vld [vmem:[%s7953_s13 + $0x4] sm:$0xf]  ;;  %v5535_v7 = vld [vmem:[%s7953_s13 + $0x6c] sm:$0xf] }
 0x6f6   :  { %v2680_v38 = vmax.f32 %v2668_v62, %v2676_v8  ;;  %v5517_v62 = vld [vmem:[%s7951_s11 + $0x98] sm:$0xff] }
 0x6f7   :  { %v2666_v14 = vmul.f32 %v2662_v47, %v2372_v19  ;;  %v4932_v47 = vor.u32 %v5522_v25, %v4929_v58  ;;  %v4985_v8 = vld [vmem:[%s7953_s13 + $0x78] sm:$0xf0]  ;;  %v5601_v42 = vld [vmem:[%s7956_s15 + $0x1f4] sm:$0xf0]  ;;  %v5563_v25 = vld [vmem:[%s7956_s15 + $0xc4] sm:$0xf0] }
 0x6f8   :  { %v5019_v58 = vld [vmem:[%s7956_s15 + $0x30] sm:$0xf] }
 0x6f9   :  { %v2670_v35 = vadd.f32 %v2666_v14, %v2381_v21  ;;  %v2679_v21 = vmax.f32 %v2667_v24, %v2677_v1  ;;  %v5521_v24 = vld [vmem:[%s7951_s11 + $0xb8] sm:$0xff]  ;;  %v5520_v14 = vld [vmem:[%s7951_s11 + $0xb0] sm:$0xff] }
 0x6fa   :  { %v5533_v1 = vld [vmem:[%s7953_s13 + $0x54] sm:$0xf0] }
 0x6fb   :  { %v2674_v54 = vrot.slane %v2670_v35, 1 }
 0x6fd   :  { %v2678_v55 = vsel %vm155_vm1, %v2674_v54, %v2671_v12  ;;  %v2675_v48 = vsel %vm155_vm1, %v2673_v49, %v2674_v54  ;;  %v5498_v12 = vld [vmem:[%s7951_s11] sm:$0xff]  ;;  %v5516_v49 = vld [vmem:[%s7951_s11 + $0x90] sm:$0xff] }
 0x6fe   :  { %v2682_v4 = vmax.f32 %v2670_v35, %v2678_v55  ;;  %v2681_v19 = vmax.f32 %v2669_v50, %v2675_v48  ;;  %v5519_v50 = vld [vmem:[%s7951_s11 + $0xa8] sm:$0xff]  ;;  %v5518_v35 = vld [vmem:[%s7951_s11 + $0xa0] sm:$0xff]  ;;  %2996 = vmatpush.bf16.msrb.mxu0 %v5498_v12  ;;  %v5537_v48 = vld [vmem:[%s7953_s13 + $0x74] sm:$0xf0] }
 0x6ff   :  { %v5506_v54 = vld [vmem:[%s7951_s11 + $0x40] sm:$0xff]  ;;  %v4983_v55 = vld [vmem:[%s7953_s13 + $0x68] sm:$0xf] }
 0x700   :  { %2704 = vmatpush.msra.mxu1 %v2682_v4  ;;  %v4984_v4 = vor.u32 %v5537_v48, %v4983_v55  ;;  %v5583_v55 = vld [vmem:[%s7956_s15 + $0x164] sm:$0xf0]  ;;  %v5235_v48 = vld [vmem:[%s7956_s15 + $0x1e0] sm:$0xf] }
 0x702   :  { %2705 = vmatpush.msra.mxu1 %v2681_v19  ;;  %v4967_v19 = vld [vmem:[%s7953_s13 + $0x48] sm:$0xf]  ;;  %3170 = vmatpush.bf16.msra.mxu0 %v4984_v4 }
 0x704   :  { %2706 = vmatpush.msra.mxu1 %v2680_v38  ;;  %v4988_v38 = vor.u32 %v5535_v7, %v4985_v8  ;;  %v5599_v7 = vld [vmem:[%s7956_s15 + $0x1e4] sm:$0xf0]  ;;  %v5083_v8 = vld [vmem:[%s7956_s15 + $0xb0] sm:$0xf] }
 0x706   :  { %2707 = vmatpush.msra.mxu1 %v2679_v21  ;;  %v5531_v21 = vld [vmem:[%s7953_s13 + $0x4c] sm:$0xf] }
 0x707   :  { %4822 = vmatmul.msk.f32.vlgmr.msra.gmra.mxu1 %vm2685_vm3, %v2683_v27  ;;  %v4969_v27 = vld [vmem:[%s7953_s13 + $0x58] sm:$0xf0] }
 0x708   :  { %3002 = vmatpush.bf16.msrb.mxu1 %v5513_v45  ;;  %v4972_v44 = vor.u32 %v5531_v21, %v4969_v27  ;;  %v4951_v45 = vld [vmem:[%s7953_s13 + $0x28] sm:$0xf]  ;;  %v5236_v27 = vor.u32 %v5599_v7, %v5235_v48  ;;  %v5568_v7 = vld [vmem:[%s7956_s15 + $0xf4] sm:$0xf] }
 0x709   :  { %v4952_v41 = vor.u32 %v5529_v51, %v4951_v45  ;;  %v5581_v45 = vld [vmem:[%s7956_s15 + $0x154] sm:$0xf0]  ;;  %v5227_v51 = vld [vmem:[%s7956_s15 + $0x1d0] sm:$0xf] }
 0x70c   :  { %3003 = vmatpush.bf16.msrb.mxu1 %v5512_v13  ;;  %v5527_v13 = vld [vmem:[%s7953_s13 + $0x2c] sm:$0xf] }
 0x70f   :  { %4823 = vmatmul.msk.f32.gmra.mxu1 %vm2685_vm3, %v2684_v29  ;;  %v4968_v29 = vor.u32 %v5533_v1, %v4967_v19  ;;  %v5561_v19 = vld [vmem:[%s7956_s15 + $0xb4] sm:$0xf0]  ;;  %v5011_v1 = vld [vmem:[%s7956_s15 + $0x20] sm:$0xf] }
 0x710   :  { %3004 = vmatpush.bf16.msrb.mxu1 %v5511_v16  ;;  %v5515_v16 = vld [vmem:[%s7951_s11 + $0x88] sm:$0xff] }
 0x711   :  { %3171 = vmatpush.bf16.msra.mxu0 %v4968_v29  ;;  %v5163_v29 = vld [vmem:[%s7956_s15 + $0x150] sm:$0xf] }
 0x714   :  { %3005 = vmatpush.bf16.msrb.mxu1 %v5510_v17  ;;  %v5514_v17 = vld [vmem:[%s7951_s11 + $0x80] sm:$0xff] }
 0x715   :  { %3172 = vmatpush.bf16.msra.mxu0 %v4952_v41  ;;  %v5559_v41 = vld [vmem:[%s7956_s15 + $0xa4] sm:$0xf0] }
 0x718   :  { %3006 = vmatpush.bf16.msrb.mxu1 %v5509_v30  ;;  %v5525_v30 = vld [vmem:[%s7953_s13 + $0x14] sm:$0xf0] }
 0x71c   :  { %3007 = vmatpush.bf16.msrb.mxu1 %v5508_v2  ;;  %v4937_v2 = vld [vmem:[%s7953_s13 + $0x18] sm:$0xf0] }
 0x720   :  { %3008 = vmatpush.bf16.msrb.mxu1 %v5507_v10  ;;  %v5569_v10 = vld [vmem:[%s7956_s15 + $0xf4] sm:$0xf0] }
 0x721   :  { %v5116_v26 = vor.u32 %v5569_v10, %v5115_v6  ;;  %v5595_v6 = vld [vmem:[%s7956_s15 + $0x1c4] sm:$0xf0]  ;;  %v5067_v10 = vld [vmem:[%s7956_s15 + $0x90] sm:$0xf] }
 0x724   :  { %3009 = vmatpush.bf16.msrb.mxu1 %v5506_v54 }
 0x728   :  { %3183 = vmatpush.bf16.msra.mxu1 %v4988_v38  ;;  %v5543_v38 = vld [vmem:[%s7956_s15 + $0x24] sm:$0xf0] }
 0x72c   :  { %3184 = vmatpush.bf16.msra.mxu1 %v4972_v44  ;;  %v5084_v44 = vor.u32 %v5561_v19, %v5083_v8  ;;  %v5546_v19 = vld [vmem:[%s7956_s15 + $0x44] sm:$0xf] }
 0x784   :  { %v2709_v15 = vpop.f32.mrf.mxu1 }
 0x78c   :  { %v2712_v20 = vpop.f32.mrf.mxu1 }
 0x78d   :  { %2734 = vmatpush.msrb.mxu2 %v2712_v20  ;;  %2759 = vmatpush.msra.mxu3 %v2712_v20 }
 0x78f   :  { %2735 = vmatpush.msrb.mxu2 %v2709_v15  ;;  %2760 = vmatpush.msra.mxu3 %v2709_v15 }
 0x790   :  { %4824 = vmatmul.msk.f32.vlgmr.msrb.gmra.mxu2 %vm2716_vm4, %v2715_v46  ;;  %4826 = vmatmul.msk.f32.vlgmr.msra.gmra.mxu3 %vm2716_vm4, %v4825_v39  ;;  %v4940_v46 = vor.u32 %v5523_v9, %v4937_v2  ;;  %v5051_v39 = vld [vmem:[%s7956_s15 + $0x70] sm:$0xf]  ;;  %v5155_v2 = vld [vmem:[%s7956_s15 + $0x140] sm:$0xf] }
 0x791   :  { %2784 = vmatpush.msra.mxu2 %v2712_v20  ;;  %3015 = vmatpush.bf16.msrb.mxu3 %v5521_v24  ;;  %v4936_v20 = vor.u32 %v5525_v30, %v4935_v56  ;;  %v5052_v11 = vor.u32 %v5553_v40, %v5051_v39  ;;  %v5164_v30 = vor.u32 %v5581_v45, %v5163_v29  ;;  %v5579_v39 = vld [vmem:[%s7956_s15 + $0x144] sm:$0xf0]  ;;  %v5219_v40 = vld [vmem:[%s7956_s15 + $0x1c0] sm:$0xf]  ;;  %v5021_v45 = vld [vmem:[%s7956_s15 + $0x38] sm:$0xf0] }
 0x793   :  { %2785 = vmatpush.msra.mxu2 %v2709_v15  ;;  %v4956_v15 = vor.u32 %v5527_v13, %v4953_v36  ;;  %3173 = vmatpush.bf16.msra.mxu0 %v4936_v20  ;;  %v5597_v13 = vld [vmem:[%s7956_s15 + $0x1d4] sm:$0xf0]  ;;  %v5012_v36 = vor.u32 %v5543_v38, %v5011_v1  ;;  %v5029_v1 = vld [vmem:[%s7956_s15 + $0x48] sm:$0xf0] }
 0x794   :  { %v5228_v9 = vor.u32 %v5597_v13, %v5227_v51  ;;  %v5032_v38 = vor.u32 %v5546_v19, %v5029_v1  ;;  %v5564_v13 = vld [vmem:[%s7956_s15 + $0xd4] sm:$0xf]  ;;  %v5582_v19 = vld [vmem:[%s7956_s15 + $0x164] sm:$0xf]  ;;  %v5173_v1 = vld [vmem:[%s7956_s15 + $0x168] sm:$0xf0] }
 0x795   :  { %3144 = vmatpush.bf16.msrb.mxu2 %v4976_v23  ;;  %3016 = vmatpush.bf16.msrb.mxu3 %v5520_v14  ;;  %v5043_v23 = vld [vmem:[%s7956_s15 + $0x60] sm:$0xf] }
 0x796   :  { %3185 = vmatpush.bf16.msra.mxu1 %v4956_v15  ;;  %v5044_v60 = vor.u32 %v5551_v32, %v5043_v23  ;;  %v5541_v15 = vld [vmem:[%s7956_s15 + $0x14] sm:$0xf0]  ;;  %v4995_v32 = vld [vmem:[%s7956_s15] sm:$0xf] }
 0x797   :  { %v5557_v23 = vld [vmem:[%s7956_s15 + $0x94] sm:$0xf0] }
 0x798   :  { %4828 = vmatmul.msk.f32.vlgmr.msra.gmra.mxu2 %vm2716_vm4, %v4827_v22  ;;  %v5107_v22 = vld [vmem:[%s7956_s15 + $0xe0] sm:$0xf] }
 0x799   :  { %3145 = vmatpush.bf16.msrb.mxu2 %v4960_v34  ;;  %3017 = vmatpush.bf16.msrb.mxu3 %v5519_v50  ;;  %v5567_v34 = vld [vmem:[%s7956_s15 + $0xe4] sm:$0xf0]  ;;  %v5180_v50 = vor.u32 %v5585_v53, %v5179_v37 }
 0x79a   :  { %3186 = vmatpush.bf16.msra.mxu1 %v4940_v46  ;;  %v5108_v57 = vor.u32 %v5567_v34, %v5107_v22  ;;  %v5156_v22 = vor.u32 %v5579_v39, %v5155_v2  ;;  %v7588_v34 = vld [vmem:[%s7957_s14] sm:$0xf]  ;;  %v5555_v37 = vld [vmem:[%s7956_s15 + $0x84] sm:$0xf0]  ;;  %v5562_v2 = vld [vmem:[%s7956_s15 + $0xc4] sm:$0xf] }
 0x79d   :  { %3146 = vmatpush.bf16.msrb.mxu2 %v4944_v63  ;;  %3018 = vmatpush.bf16.msrb.mxu3 %v5518_v35  ;;  %v5035_v63 = vld [vmem:[%s7956_s15 + $0x50] sm:$0xf] }
 0x79e   :  { %v5036_v18 = vor.u32 %v5549_v33, %v5035_v63  ;;  %v5577_v63 = vld [vmem:[%s7956_s15 + $0x134] sm:$0xf0]  ;;  %v5068_v33 = vor.u32 %v5557_v23, %v5067_v10  ;;  %v5560_v23 = vld [vmem:[%s7956_s15 + $0xb4] sm:$0xf] }
 0x7a1   :  { %3147 = vmatpush.bf16.msrb.mxu2 %v4928_v5  ;;  %3019 = vmatpush.bf16.msrb.mxu3 %v5517_v62  ;;  %v5100_v5 = vor.u32 %v5565_v52, %v5099_v3  ;;  %v5171_v62 = vld [vmem:[%s7956_s15 + $0x160] sm:$0xf]  ;;  %v5211_v3 = vld [vmem:[%s7956_s15 + $0x1b0] sm:$0xf]  ;;  %v5593_v52 = vld [vmem:[%s7956_s15 + $0x1b4] sm:$0xf0] }
 0x7a2   :  { %v5172_v21 = vor.u32 %v5583_v55, %v5171_v62  ;;  %v5037_v55 = vld [vmem:[%s7956_s15 + $0x58] sm:$0xf0] }
 0x7a4   :  { %4989 = vmatmul.msk.bf16.vlgmr.msrb.gmra.mxu2 %vm2027_vm2, %v7351_v43 }
 0x7a5   :  { %3157 = vmatpush.bf16.msra.mxu2 %v4980_v31  ;;  %3020 = vmatpush.bf16.msrb.mxu3 %v5516_v49  ;;  %v5547_v31 = vld [vmem:[%s7956_s15 + $0x44] sm:$0xf0] }
 0x7a6   :  { %v5028_v61 = vor.u32 %v5547_v31, %v5027_v0  ;;  %v5053_v0 = vld [vmem:[%s7956_s15 + $0x78] sm:$0xf0]  ;;  %v5059_v31 = vld [vmem:[%s7956_s15 + $0x80] sm:$0xf] }
 0x7a9   :  { %3158 = vmatpush.bf16.msra.mxu2 %v4964_v59  ;;  %3021 = vmatpush.bf16.msrb.mxu3 %v5515_v16  ;;  %v5243_v59 = vld [vmem:[%s7956_s15 + $0x1f0] sm:$0xf]  ;;  %v5075_v16 = vld [vmem:[%s7956_s15 + $0xa0] sm:$0xf] }
 0x7aa   :  { %v5244_v35 = vor.u32 %v5601_v42, %v5243_v59  ;;  %v5076_v46 = vor.u32 %v5559_v41, %v5075_v16  ;;  %v5212_v59 = vor.u32 %v5593_v52, %v5211_v3  ;;  %v3049_v42 = vperm.slane %v7588_v34, 0  ;;  %v5077_v3 = vld [vmem:[%s7956_s15 + $0xa8] sm:$0xf0] }
 0x7ab   :  { %v3050_v41 = vperm.slane %v7588_v34, 1 }
 0x7ad   :  { %3159 = vmatpush.bf16.msra.mxu2 %v4948_v28  ;;  %3022 = vmatpush.bf16.msrb.mxu3 %v5514_v17  ;;  %v5091_v28 = vld [vmem:[%s7956_s15 + $0xc0] sm:$0xf]  ;;  %v5003_v17 = vld [vmem:[%s7956_s15 + $0x10] sm:$0xf] }
 0x7ae   :  { %v5092_v49 = vor.u32 %v5563_v25, %v5091_v28  ;;  %v5060_v28 = vor.u32 %v5555_v37, %v5059_v31  ;;  %v5139_v25 = vld [vmem:[%s7956_s15 + $0x120] sm:$0xf]  ;;  %v5554_v31 = vld [vmem:[%s7956_s15 + $0x84] sm:$0xf]  ;;  %v5061_v37 = vld [vmem:[%s7956_s15 + $0x88] sm:$0xf0] }
 0x7b1   :  { %3160 = vmatpush.bf16.msra.mxu2 %v4932_v47  ;;  %3590 = vmatpush.bf16.msra.mxu3 %v5052_v11  ;;  %v5545_v47 = vld [vmem:[%s7956_s15 + $0x34] sm:$0xf0]  ;;  %v5004_v11 = vor.u32 %v5541_v15, %v5003_v17  ;;  %v5542_v17 = vld [vmem:[%s7956_s15 + $0x24] sm:$0xf]  ;;  %v5013_v15 = vld [vmem:[%s7956_s15 + $0x28] sm:$0xf0] }
 0x7b2   :  { %v5020_v4 = vor.u32 %v5545_v47, %v5019_v58  ;;  %v5575_v58 = vld [vmem:[%s7956_s15 + $0x124] sm:$0xf0] }
 0x7b4   :  { %4990 = vmatmul.msk.bf16.vlgmr.msra.gmra.mxu2 %vm2027_vm2, %v7351_v43 }
 0x7b5   :  { %3603 = vmatpush.bf16.msrb.mxu2 %v5116_v26  ;;  %3591 = vmatpush.bf16.msra.mxu3 %v5044_v60  ;;  %v5539_v26 = vld [vmem:[%s7956_s15 + $0x4] sm:$0xf0]  ;;  %v5220_v60 = vor.u32 %v5595_v6, %v5219_v40  ;;  %v5540_v40 = vld [vmem:[%s7956_s15 + $0x14] sm:$0xf]  ;;  %v5005_v6 = vld [vmem:[%s7956_s15 + $0x18] sm:$0xf0] }
 0x7b9   :  { %3604 = vmatpush.bf16.msrb.mxu2 %v5108_v57  ;;  %3592 = vmatpush.bf16.msra.mxu3 %v5036_v18  ;;  %v5147_v57 = vld [vmem:[%s7956_s15 + $0x130] sm:$0xf]  ;;  %v5552_v18 = vld [vmem:[%s7956_s15 + $0x74] sm:$0xf] }
 0x7ba   :  { %v5148_v53 = vor.u32 %v5577_v63, %v5147_v57 }
 0x7bd   :  { %3605 = vmatpush.bf16.msrb.mxu2 %v5100_v5  ;;  %3593 = vmatpush.bf16.msra.mxu3 %v5028_v61  ;;  %v4996_v5 = vor.u32 %v5539_v26, %v4995_v32  ;;  %v5056_v61 = vor.u32 %v5552_v18, %v5053_v0  ;;  %v5085_v32 = vld [vmem:[%s7956_s15 + $0xb8] sm:$0xf0]  ;;  %v5556_v18 = vld [vmem:[%s7956_s15 + $0x94] sm:$0xf] }
 0x7be   :  { %v5088_v26 = vor.u32 %v5560_v23, %v5085_v32  ;;  %v5590_v23 = vld [vmem:[%s7956_s15 + $0x1a4] sm:$0xf]  ;;  %v5205_v32 = vld [vmem:[%s7956_s15 + $0x1a8] sm:$0xf0] }
 0x7c1   :  { %3606 = vmatpush.bf16.msrb.mxu2 %v5092_v49  ;;  %3594 = vmatpush.bf16.msra.mxu3 %v5020_v4  ;;  %v5548_v49 = vld [vmem:[%s7956_s15 + $0x54] sm:$0xf]  ;;  %v5117_v4 = vld [vmem:[%s7956_s15 + $0xf8] sm:$0xf0] }
 0x7c2   :  { %v5040_v48 = vor.u32 %v5548_v49, %v5037_v55  ;;  %v5120_v8 = vor.u32 %v5568_v7, %v5117_v4  ;;  %v5181_v49 = vld [vmem:[%s7956_s15 + $0x178] sm:$0xf0] }
 0x7c3   :  { %v5245_v4 = vld [vmem:[%s7956_s15 + $0x1f8] sm:$0xf0] }
 0x7c5   :  { %3607 = vmatpush.bf16.msrb.mxu2 %v5084_v44  ;;  %3595 = vmatpush.bf16.msra.mxu3 %v5012_v36  ;;  %v5544_v44 = vld [vmem:[%s7956_s15 + $0x34] sm:$0xf]  ;;  %v5101_v36 = vld [vmem:[%s7956_s15 + $0xd8] sm:$0xf0] }
 0x7c6   :  { %v5024_v51 = vor.u32 %v5544_v44, %v5021_v45  ;;  %v5104_v16 = vor.u32 %v5564_v13, %v5101_v36  ;;  %v5580_v44 = vld [vmem:[%s7956_s15 + $0x154] sm:$0xf]  ;;  %v5165_v45 = vld [vmem:[%s7956_s15 + $0x158] sm:$0xf0] }
 0x7c7   :  { %v5168_v13 = vor.u32 %v5580_v44, %v5165_v45  ;;  %v5229_v36 = vld [vmem:[%s7956_s15 + $0x1d8] sm:$0xf0] }
 0x7c9   :  { %3608 = vmatpush.bf16.msrb.mxu2 %v5076_v46  ;;  %3596 = vmatpush.bf16.msra.mxu3 %v5004_v11  ;;  %v5008_v11 = vor.u32 %v5540_v40, %v5005_v6  ;;  %v5213_v40 = vld [vmem:[%s7956_s15 + $0x1b8] sm:$0xf0]  ;;  %v5574_v6 = vld [vmem:[%s7956_s15 + $0x124] sm:$0xf] }
 0x7cd   :  { %3609 = vmatpush.bf16.msrb.mxu2 %v5068_v33  ;;  %3597 = vmatpush.bf16.msra.mxu3 %v4996_v5  ;;  %v5558_v33 = vld [vmem:[%s7956_s15 + $0xa4] sm:$0xf]  ;;  %v5069_v5 = vld [vmem:[%s7956_s15 + $0x98] sm:$0xf0] }
 0x7ce   :  { %v5080_v52 = vor.u32 %v5558_v33, %v5077_v3  ;;  %v5072_v0 = vor.u32 %v5556_v18, %v5069_v5  ;;  %v5197_v33 = vld [vmem:[%s7956_s15 + $0x198] sm:$0xf0]  ;;  %v5570_v18 = vld [vmem:[%s7956_s15 + $0x104] sm:$0xf]  ;;  %v5125_v5 = vld [vmem:[%s7956_s15 + $0x108] sm:$0xf0] }
 0x7d1   :  { %3610 = vmatpush.bf16.msrb.mxu2 %v5060_v28  ;;  %v5131_v28 = vld [vmem:[%s7956_s15 + $0x110] sm:$0xf] }
 0x7d5   :  { %3655 = vmatpush.bf16.msra.mxu2 %v5120_v8 }
 0x813   :  { %v2737_v24 = vpop.f32.mrf.mxu2  ;;  %v2762_v14 = vpop.f32.mrf.mxu3 }
 0x814   :  { %v2790_v12 = vpack.c.bf16 %v2737_v24, %v2737_v24  ;;  %v2791_v54 = vpack.c.bf16 %v2762_v14, %v2762_v14  ;;  %v5140_v24 = vor.u32 %v5575_v58, %v5139_v25  ;;  %v5573_v25 = vld [vmem:[%s7956_s15 + $0x114] sm:$0xf0]  ;;  %v5195_v58 = vld [vmem:[%s7956_s15 + $0x190] sm:$0xf] }
 0x816   :  { %2997 = vmatmul.bf16.vlgmr.msrb.gmra.mxu0 %v2790_v12  ;;  %3010 = vmatmul.bf16.vlgmr.msrb.gmra.mxu1 %v2791_v54  ;;  %v5550_v12 = vld [vmem:[%s7956_s15 + $0x64] sm:$0xf] }
 0x817   :  { %3616 = vmatpush.bf16.msrb.mxu0 %v5180_v50  ;;  %3629 = vmatpush.bf16.msrb.mxu1 %v5244_v35 }
 0x81b   :  { %v2787_v56 = vpop.f32.mrf.mxu2  ;;  %3617 = vmatpush.bf16.msrb.mxu0 %v5172_v21  ;;  %3630 = vmatpush.bf16.msrb.mxu1 %v5236_v27  ;;  %v5566_v21 = vld [vmem:[%s7956_s15 + $0xe4] sm:$0xf]  ;;  %v5109_v27 = vld [vmem:[%s7956_s15 + $0xe8] sm:$0xf0] }
 0x81c   :  { %v2792_v20 = vpack.c.bf16 %v2787_v56, %v2787_v56  ;;  %v5112_v29 = vor.u32 %v5566_v21, %v5109_v27  ;;  %v5176_v21 = vor.u32 %v5582_v19, %v5173_v1  ;;  %v5237_v27 = vld [vmem:[%s7956_s15 + $0x1e8] sm:$0xf0]  ;;  %v5638_v1 = vld [vmem:[%s7955_s12] ss:$0 sm:$0xff] }
 0x81e   :  { %3023 = vmatmul.bf16.vlgmr.msrb.gmra.mxu3 %v2792_v20  ;;  %3656 = vmatpush.bf16.msra.mxu2 %v5112_v29  ;;  %v5093_v20 = vld [vmem:[%s7956_s15 + $0xc8] sm:$0xf0] }
 0x81f   :  { %3618 = vmatpush.bf16.msrb.mxu0 %v5164_v30  ;;  %3631 = vmatpush.bf16.msrb.mxu1 %v5228_v9  ;;  %v5016_v30 = vor.u32 %v5542_v17, %v5013_v15  ;;  %v5096_v46 = vor.u32 %v5562_v2, %v5093_v20  ;;  %v5157_v17 = vld [vmem:[%s7956_s15 + $0x148] sm:$0xf0]  ;;  %v5594_v15 = vld [vmem:[%s7956_s15 + $0x1c4] sm:$0xf]  ;;  %v5576_v2 = vld [vmem:[%s7956_s15 + $0x134] sm:$0xf] }
 0x820   :  { %3642 = vmatpush.bf16.msrb.mxu3 %v5056_v61  ;;  %v5149_v20 = vld [vmem:[%s7956_s15 + $0x138] sm:$0xf0] }
 0x822   :  { %3657 = vmatpush.bf16.msra.mxu2 %v5104_v16 }
 0x823   :  { %3619 = vmatpush.bf16.msrb.mxu0 %v5156_v22  ;;  %3632 = vmatpush.bf16.msrb.mxu1 %v5220_v60  ;;  %v5538_v22 = vld [vmem:[%s7956_s15 + $0x4] sm:$0xf]  ;;  %v4997_v60 = vld [vmem:[%s7956_s15 + $0x8] sm:$0xf0] }
 0x824   :  { %v5000_v57 = vor.u32 %v5538_v22, %v4997_v60  ;;  %v5208_v22 = vor.u32 %v5590_v23, %v5205_v32  ;;  %v5572_v60 = vld [vmem:[%s7956_s15 + $0x114] sm:$0xf]  ;;  %v5613_v23 = vld [vmem:[%s7959_s18 + $0x48] sm:$0xff]  ;;  %v3264_v32 = vld [vmem:[%s7960_s16] sm:$0x3] }
 0x826   :  { %4991 = vmatmul.msk.bf16.vlgmr.msra.gmra.mxu0 %vm2027_vm2, %v7351_v43  ;;  %4992 = vmatmul.msk.bf16.vlgmr.msra.gmra.mxu1 %vm2027_vm2, %v7351_v43  ;;  %v5045_v43 = vld [vmem:[%s7956_s15 + $0x68] sm:$0xf0] }
 0x827   :  { %v3149_v47 = vpop.f32.mrf.mxu2  ;;  %3620 = vmatpush.bf16.msrb.mxu0 %v5148_v53  ;;  %3633 = vmatpush.bf16.msrb.mxu1 %v5212_v59  ;;  %v5048_v54 = vor.u32 %v5550_v12, %v5045_v43  ;;  %v5203_v53 = vld [vmem:[%s7956_s15 + $0x1a0] sm:$0xf]  ;;  %v5591_v59 = vld [vmem:[%s7956_s15 + $0x1a4] sm:$0xf0] }
 0x828   :  { %v3150_v14 = vadd.f32 %v3149_v47, %v3049_v42  ;;  %3658 = vmatpush.bf16.msra.mxu2 %v5096_v46  ;;  %v5064_v42 = vor.u32 %v5554_v31, %v5061_v37  ;;  %v5204_v61 = vor.u32 %v5591_v59, %v5203_v53  ;;  %v5132_v47 = vor.u32 %v5573_v25, %v5131_v28  ;;  %v5187_v12 = vld [vmem:[%s7956_s15 + $0x180] sm:$0xf]  ;;  %v5587_v43 = vld [vmem:[%s7956_s15 + $0x184] sm:$0xf0]  ;;  %v5592_v46 = vld [vmem:[%s7956_s15 + $0x1b4] sm:$0xf] }
 0x829   :  { %3643 = vmatpush.bf16.msrb.mxu3 %v5048_v54  ;;  %v5584_v54 = vld [vmem:[%s7956_s15 + $0x174] sm:$0xf]  ;;  %v5188_v55 = vor.u32 %v5587_v43, %v5187_v12  ;;  %v5189_v31 = vld [vmem:[%s7956_s15 + $0x188] sm:$0xf0]  ;;  %v5128_v59 = vor.u32 %v5570_v18, %v5125_v5  ;;  %v3051_v25 = vperm.slane %v7588_v34, 2 }
 0x82a   :  { %v3192_v50 = vmax.f32 %v3150_v14, 0.0  ;;  %v5184_v7 = vor.u32 %v5584_v54, %v5181_v49  ;;  %v5603_v43 = vld [vmem:[%s7958_s17 + $0x8] sm:$0xff] }
 0x82b   :  { %3621 = vmatpush.bf16.msrb.mxu0 %v5140_v24  ;;  %3634 = vmatpush.bf16.msrb.mxu1 %v5204_v61  ;;  %v5589_v24 = vld [vmem:[%s7956_s15 + $0x194] sm:$0xf0] }
 0x82c   :  { %v7625_v35 = vpack.c.bf16 %v3192_v50, %v3192_v50  ;;  %3659 = vmatpush.bf16.msra.mxu2 %v5088_v26  ;;  %v5196_v14 = vor.u32 %v5589_v24, %v5195_v58  ;;  %v5123_v50 = vld [vmem:[%s7956_s15 + $0x100] sm:$0xf]  ;;  %v3052_v58 = vperm.slane %v7588_v34, 3  ;;  %v5611_v34 = vld [vmem:[%s7959_s18 + $0x38] sm:$0xff] }
 0x82d   :  { %3644 = vmatpush.bf16.msrb.mxu3 %v5040_v48  ;;  %v5600_v48 = vld [vmem:[%s7956_s15 + $0x1f4] sm:$0xf] }
 0x82e   :  { %3598 = vmatmul.bf16.vlgmr.msra.gmra.mxu3 %v7625_v35  ;;  %v5248_v8 = vor.u32 %v5600_v48, %v5245_v4  ;;  %v5619_v48 = vld [vmem:[%s7959_s18 + $0x78] sm:$0xff] }
 0x82f   :  { %v3151_v62 = vpop.f32.mrf.mxu2  ;;  %3622 = vmatpush.bf16.msrb.mxu0 %v5132_v47  ;;  %3635 = vmatpush.bf16.msrb.mxu1 %v5196_v14 }
 0x830   :  { %3660 = vmatpush.bf16.msra.mxu2 %v5080_v52 }
 0x831   :  { %3645 = vmatpush.bf16.msrb.mxu3 %v5032_v38  ;;  %v5598_v38 = vld [vmem:[%s7956_s15 + $0x1e4] sm:$0xf] }
 0x832   :  { %v5240_v29 = vor.u32 %v5598_v38, %v5237_v27 }
 0x833   :  { %3636 = vmatpush.bf16.msrb.mxu1 %v5188_v55 }
 0x834   :  { %3661 = vmatpush.bf16.msra.mxu2 %v5072_v0  ;;  %v5586_v0 = vld [vmem:[%s7956_s15 + $0x184] sm:$0xf] }
 0x835   :  { %3646 = vmatpush.bf16.msrb.mxu3 %v5024_v51  ;;  %v5596_v51 = vld [vmem:[%s7956_s15 + $0x1d4] sm:$0xf] }
 0x836   :  { %v5232_v16 = vor.u32 %v5596_v51, %v5229_v36  ;;  %v5610_v51 = vld [vmem:[%s7959_s18 + $0x30] sm:$0xff] }
 0x837   :  { %v3162_v56 = vpop.f32.mrf.mxu2  ;;  %3681 = vmatpush.bf16.msra.mxu1 %v5248_v8 }
 0x838   :  { %v3163_v9 = vadd.f32 %v3162_v56, %v3050_v41  ;;  %3662 = vmatpush.bf16.msra.mxu2 %v5064_v42  ;;  %v5578_v41 = vld [vmem:[%s7956_s15 + $0x144] sm:$0xf]  ;;  %v5192_v42 = vor.u32 %v5586_v0, %v5189_v31  ;;  %v3267_v0 = vperm.slane %v3264_v32, 1 }
 0x839   :  { %3647 = vmatpush.bf16.msrb.mxu3 %v5016_v30  ;;  %v5160_v56 = vor.u32 %v5578_v41, %v5157_v17  ;;  %v5221_v30 = vld [vmem:[%s7956_s15 + $0x1c8] sm:$0xf0] }
 0x83a   :  { %v3193_v39 = vmax.f32 %v3163_v9, 0.0  ;;  %v5224_v9 = vor.u32 %v5594_v15, %v5221_v30  ;;  %v5609_v15 = vld [vmem:[%s7959_s18 + $0x28] sm:$0xff]  ;;  %v5608_v30 = vld [vmem:[%s7959_s18 + $0x20] sm:$0xff] }
 0x83b   :  { %3682 = vmatpush.bf16.msra.mxu1 %v5240_v29 }
 0x83c   :  { %v3197_v10 = vpack.c.bf16 %v3193_v39, %v3193_v39  ;;  %v5152_v39 = vor.u32 %v5576_v2, %v5149_v20  ;;  %v5606_v20 = vld [vmem:[%s7959_s18 + $0x10] sm:$0xff] }
 0x83d   :  { %3648 = vmatpush.bf16.msrb.mxu3 %v5008_v11  ;;  %v5141_v11 = vld [vmem:[%s7956_s15 + $0x128] sm:$0xf0] }
 0x83e   :  { %3611 = vmatmul.bf16.vlgmr.msrb.gmra.mxu2 %v3197_v10  ;;  %v5144_v26 = vor.u32 %v5574_v6, %v5141_v11  ;;  %v5604_v6 = vld [vmem:[%s7959_s18] sm:$0xff]  ;;  %v5615_v11 = vld [vmem:[%s7959_s18 + $0x58] sm:$0xff] }
 0x83f   :  { %v3164_v63 = vpop.f32.mrf.mxu2  ;;  %3683 = vmatpush.bf16.msra.mxu1 %v5232_v16  ;;  %3844 = vmatpush.bf16.msrb.mxu2 %v5619_v48  ;;  %v5620_v48 = vld [vmem:[%s7961_s20] sm:$0xff] }
 0x840   :  { %v5588_v63 = vld [vmem:[%s7956_s15 + $0x194] sm:$0xf] }
 0x841   :  { %3649 = vmatpush.bf16.msrb.mxu3 %v5000_v57  ;;  %v5133_v57 = vld [vmem:[%s7956_s15 + $0x118] sm:$0xf0]  ;;  %v5200_v52 = vor.u32 %v5588_v63, %v5197_v33 }
 0x842   :  { %v5136_v3 = vor.u32 %v5572_v60, %v5133_v57 }
 0x843   :  { %3684 = vmatpush.bf16.msra.mxu1 %v5224_v9  ;;  %v5607_v9 = vld [vmem:[%s7959_s18 + $0x18] sm:$0xff] }
 0x844   :  { %3650 = vmatmul.bf16.vlgmr.msrb.gmra.mxu3 %v7625_v35  ;;  %v5571_v35 = vld [vmem:[%s7956_s15 + $0x104] sm:$0xf0] }
 0x845   :  { %v5124_v62 = vor.u32 %v5571_v35, %v5123_v50  ;;  %3831 = vmatpush.bf16.msra.mxu3 %v5611_v34  ;;  %v5621_v34 = vld [vmem:[%s7961_s20 + $0x8] sm:$0xff] }
 0x847   :  { %3623 = vmatpush.bf16.msrb.mxu0 %v5124_v62 }
 0x849   :  { %3832 = vmatpush.bf16.msra.mxu3 %v5610_v51 }
 0x84b   :  { %3668 = vmatpush.bf16.msra.mxu0 %v5184_v7  ;;  %v5602_v7 = vld [vmem:[%s7958_s17] sm:$0xff] }
 0x84d   :  { %3833 = vmatpush.bf16.msra.mxu3 %v5609_v15 }
 0x84e   :  { %3663 = vmatmul.bf16.vlgmr.msra.gmra.mxu2 %v3197_v10  ;;  %v5216_v10 = vor.u32 %v5592_v46, %v5213_v40  ;;  %v5617_v46 = vld [vmem:[%s7959_s18 + $0x68] sm:$0xff]  ;;  %v5616_v40 = vld [vmem:[%s7959_s18 + $0x60] sm:$0xff] }
 0x84f   :  { %3669 = vmatpush.bf16.msra.mxu0 %v5176_v21 }
 0x850   :  { %3685 = vmatpush.bf16.msra.mxu1 %v5216_v10  ;;  %v5614_v10 = vld [vmem:[%s7959_s18 + $0x50] sm:$0xff] }
 0x851   :  { %3834 = vmatpush.bf16.msra.mxu3 %v5608_v30 }
 0x853   :  { %3670 = vmatpush.bf16.msra.mxu0 %v5168_v13  ;;  %v5618_v13 = vld [vmem:[%s7959_s18 + $0x70] sm:$0xff] }
 0x854   :  { %3686 = vmatpush.bf16.msra.mxu1 %v5208_v22  ;;  %3845 = vmatpush.bf16.msrb.mxu2 %v5618_v13  ;;  %v3266_v22 = vperm.slane %v3264_v32, 0 }
 0x855   :  { %3835 = vmatpush.bf16.msra.mxu3 %v5607_v9 }
 0x857   :  { %3671 = vmatpush.bf16.msra.mxu0 %v5160_v56 }
 0x858   :  { %3687 = vmatpush.bf16.msra.mxu1 %v5200_v52  ;;  %3846 = vmatpush.bf16.msrb.mxu2 %v5617_v46 }
 0x859   :  { %3836 = vmatpush.bf16.msra.mxu3 %v5606_v20 }
 0x85b   :  { %3672 = vmatpush.bf16.msra.mxu0 %v5152_v39  ;;  %v5605_v39 = vld [vmem:[%s7959_s18 + $0x8] sm:$0xff] }
 0x85c   :  { %3688 = vmatpush.bf16.msra.mxu1 %v5192_v42  ;;  %3847 = vmatpush.bf16.msrb.mxu2 %v5616_v40 }
 0x85d   :  { %3837 = vmatpush.bf16.msra.mxu3 %v5605_v39 }
 0x85f   :  { %3673 = vmatpush.bf16.msra.mxu0 %v5144_v26  ;;  %v5612_v26 = vld [vmem:[%s7959_s18 + $0x40] sm:$0xff] }
 0x860   :  { %3848 = vmatpush.bf16.msrb.mxu2 %v5615_v11 }
 0x861   :  { %3838 = vmatpush.bf16.msra.mxu3 %v5604_v6 }
 0x863   :  { %3674 = vmatpush.bf16.msra.mxu0 %v5136_v3 }
 0x864   :  { %3849 = vmatpush.bf16.msrb.mxu2 %v5614_v10 }
 0x867   :  { %3675 = vmatpush.bf16.msra.mxu0 %v5128_v59  ;;  %v5626_v59 = vld [vmem:[%s7961_s20 + $0x30] sm:$0xff] }
 0x868   :  { %3850 = vmatpush.bf16.msrb.mxu2 %v5613_v23 }
 0x86c   :  { %3851 = vmatpush.bf16.msrb.mxu2 %v5612_v26 }
 0x893   :  { %v2998_v37 = vpop.f32.mrf.mxu0  ;;  %v3011_v53 = vpop.f32.mrf.mxu1 }
 0x894   :  { %v2999_v21 = vadd.f32 %v5638_v1, %v2998_v37  ;;  %v5639_v1 = vld [vmem:[%s7962_s19] ss:$0 sm:$0xff] }
 0x896   :  { %v3012_v27 = vadd.f32 %v3011_v53, %v2999_v21  ;;  %v5627_v53 = vld [vmem:[%s7961_s20 + $0x38] sm:$0xff] }
 0x89b   :  { %v3000_v61 = vpop.f32.mrf.mxu0  ;;  %v3013_v28 = vpop.f32.mrf.mxu1 }
 0x89c   :  { %v5625_v61 = vld [vmem:[%s7961_s20 + $0x28] sm:$0xff] }
 0x8a1   :  { %v3024_v47 = vpop.f32.mrf.mxu3 }
 0x8a2   :  { %v3025_v29 = vadd.f32 %v3024_v47, %v3012_v27 }
 0x8a3   :  { %v3175_v24 = vpop.f32.mrf.mxu0  ;;  %v3188_v14 = vpop.f32.mrf.mxu1 }
 0x8a4   :  { %v3176_v50 = vadd.f32 %v3175_v24, %v3051_v25  ;;  %v3189_v35 = vadd.f32 %v3188_v14, %v3052_v58  ;;  %v3028_v44 = vmax.f32 %v3025_v29, 0.0  ;;  %v5624_v24 = vld [vmem:[%s7961_s20 + $0x20] sm:$0xff] }
 0x8a6   :  { %v3194_v62 = vmax.f32 %v3176_v50, 0.0  ;;  %v3195_v12 = vmax.f32 %v3189_v35, 0.0  ;;  %v3696_v45 = vpack.c.bf16 %v3028_v44, %v3028_v44  ;;  %v5623_v35 = vld [vmem:[%s7961_s20 + $0x18] sm:$0xff] }
 0x8a8   :  { %v3198_v54 = vpack.c.bf16 %v3194_v62, %v3194_v62  ;;  %v3199_v49 = vpack.c.bf16 %v3195_v12, %v3195_v12 }
 0x8a9   :  { %v3026_v55 = vpop.f32.mrf.mxu3 }
 0x8aa   :  { %3624 = vmatmul.bf16.vlgmr.msrb.gmra.mxu0 %v3198_v54  ;;  %3637 = vmatmul.bf16.vlgmr.msrb.gmra.mxu1 %v3199_v49  ;;  %v5622_v55 = vld [vmem:[%s7961_s20 + $0x10] sm:$0xff] }
 0x8ab   :  { %3878 = vmatpush.bf16.msrb.mxu0 %v5603_v43  ;;  %v3177_v4 = vpop.f32.mrf.mxu0  ;;  %v3190_v8 = vpop.f32.mrf.mxu1  ;;  %3960 = vmatpush.bf16.msrb.mxu1 %v5627_v53 }
 0x8af   :  { %3879 = vmatpush.bf16.msrb.mxu0 %v5602_v7  ;;  %3961 = vmatpush.bf16.msrb.mxu1 %v5626_v59 }
 0x8b1   :  { %v3599_v19 = vpop.f32.mrf.mxu3 }
 0x8b2   :  { %v3600_v60 = vadd.f32 %v3599_v19, %v3266_v22 }
 0x8b3   :  { %3962 = vmatpush.bf16.msrb.mxu1 %v5625_v61 }
 0x8b7   :  { %3963 = vmatpush.bf16.msrb.mxu1 %v5624_v24 }
 0x8b9   :  { %v3601_v38 = vpop.f32.mrf.mxu3 }
 0x8ba   :  { %3676 = vmatmul.bf16.vlgmr.msra.gmra.mxu0 %v3198_v54  ;;  %3689 = vmatmul.bf16.vlgmr.msra.gmra.mxu1 %v3199_v49 }
 0x8bb   :  { %3964 = vmatpush.bf16.msrb.mxu1 %v5623_v35 }
 0x8bf   :  { %3965 = vmatpush.bf16.msrb.mxu1 %v5622_v55 }
 0x8c1   :  { %v3612_v36 = vpop.f32.mrf.mxu2 }
 0x8c2   :  { %v3613_v57 = vadd.f32 %v3612_v36, %v3600_v60 }
 0x8c3   :  { %3966 = vmatpush.bf16.msrb.mxu1 %v5621_v34 }
 0x8c7   :  { %v3651_v16 = vpop.f32.mrf.mxu3  ;;  %3967 = vmatpush.bf16.msrb.mxu1 %v5620_v48 }
 0x8c8   :  { %v3652_v42 = vadd.f32 %v3651_v16, %v3267_v0 }
 0x8c9   :  { %v3614_v41 = vpop.f32.mrf.mxu2 }
 0x8ca   :  { %5321 = vmatmul.msk.bf16.vlgmr.msrb.gmra.mxu0 %vm2685_vm3, %v3696_v45  ;;  %v5640_v45 = vld [vmem:[%s7963_s21] ss:$0 sm:$0xff] }
 0x8cf   :  { %v3653_v17 = vpop.f32.mrf.mxu3 }
 0x8d1   :  { %v3664_v56 = vpop.f32.mrf.mxu2 }
 0x8d2   :  { %v3665_v28 = vadd.f32 %v3664_v56, %v3652_v42 }
 0x8d9   :  { %v3666_v2 = vpop.f32.mrf.mxu2 }
 0x927   :  { %v3625_v63 = vpop.f32.mrf.mxu0  ;;  %v3638_v33 = vpop.f32.mrf.mxu1 }
 0x928   :  { %v3626_v3 = vadd.f32 %v3625_v63, %v3613_v57 }
 0x92a   :  { %v3639_v52 = vadd.f32 %v3638_v33, %v3626_v3 }
 0x92c   :  { %v3694_v18 = vmax.f32 %v3639_v52, 0.0 }
 0x92e   :  { %v3701_v5 = vpack.c.bf16 %v3694_v18, %v3694_v18 }
 0x92f   :  { %v3627_v31 = vpop.f32.mrf.mxu0  ;;  %v3640_v37 = vpop.f32.mrf.mxu1 }
 0x930   :  { %3839 = vmatmul.bf16.vlgmr.msra.gmra.mxu3 %v3701_v5 }
 0x937   :  { %v3677_v25 = vpop.f32.mrf.mxu0  ;;  %v3690_v58 = vpop.f32.mrf.mxu1 }
 0x938   :  { %v3678_v47 = vadd.f32 %v3677_v25, %v3665_v28 }
 0x93a   :  { %v3691_v14 = vadd.f32 %v3690_v58, %v3678_v47 }
 0x93c   :  { %v3695_v50 = vmax.f32 %v3691_v14, 0.0 }
 0x93e   :  { %v3702_v62 = vpack.c.bf16 %v3695_v50, %v3695_v50 }
 0x93f   :  { %v3679_v12 = vpop.f32.mrf.mxu0  ;;  %v3692_v43 = vpop.f32.mrf.mxu1 }
 0x940   :  { %3852 = vmatmul.bf16.vlgmr.msrb.gmra.mxu2 %v3702_v62 }
 0x947   :  { %v3881_v54 = vpop.f32.mrf.mxu0 }
 0x94f   :  { %v3883_v49 = vpop.f32.mrf.mxu0 }
 0x9b3   :  { %v3840_v7 = vpop.f32.mrf.mxu3 }
 0x9bb   :  { %v3842_v4 = vpop.f32.mrf.mxu3 }
 0x9c3   :  { %v3853_v8 = vpop.f32.mrf.mxu2 }
 0x9c4   :  { %v3854_v19 = vadd.f32 %v3853_v8, %v3840_v7 }
 0x9c6   :  { %v3882_v38 = vadd.f32 %v3881_v54, %v3854_v19 }
 0x9c8   :  { %v3889_v21 = vadd.f32 %v5639_v1, %v3882_v38 }
 0x9ca   :  { %v3890_v27 = vmax.f32 %v3889_v21, 0.0 }
 0x9cb   :  { %v3855_v29 = vpop.f32.mrf.mxu2 }
 0x9cc   :  { %v3891_v44 = vpack.c.bf16 %v3890_v27, %v3890_v27 }
 0x9ce   :  { %3968 = vmatmul.bf16.vlgmr.msrb.gmra.mxu1 %v3891_v44 }
 0xa4b   :  { %v3969_v51 = vpop.f32.mrf.mxu1 }
 0xa4c   :  { %v3970_v13 = vadd.f32 %v5640_v45, %v3969_v51 }
 0xa4e   :  { %v3973_v36 = vsub.f32 0.0, %v3970_v13 }
 0xa50   :  { %v3974_v16 = vmul.f32 1.442695, %v3973_v36 }
 0xa52   :  { %5641 = vpow2.f32 %v3974_v16 }
 0xa53   :  { %v3971_v41 = vpop.f32.mrf.mxu1 }
 0xa58   :  { %v5642_v17 = vpop.eup %5641 }
 0xa59   :  { %v3976_v15 = vadd.f32 1.0, %v5642_v17 }
 0xa5b   :  { %5643 = vrcp.f32 %v3976_v15  ;;  %v3988_v2 = vand.u32 2147483648, %v3976_v15  ;;  %v3986_v46 = vand.u32 2147483647, %v3976_v15  ;;  %vm3982_vm6 = vweird.f32 %v3976_v15 }
 0xa5d   :  { %v3989_v40 = vor.u32 1.1754944e-38, %v3988_v2  ;;  %vm3987_vm8 = vcmp.eq.f32.partialorder %v3986_v46, 8.507059e+37 }
 0xa61   :  { %v5644_v56 = vpop.eup %5643 }
 0xa62   :  { %v3978_v30 = vmul.f32 %v5644_v56, %v3976_v15  ;;  %vm3983_vm5 = vweird.f32 %v5644_v56 }
 0xa63   :  { %vm3984_vm7 = vmor %vm3982_vm6, %vm3983_vm5 }
 0xa64   :  { %v3979_v9 = vsub.f32 1.0, %v3978_v30 }
 0xa66   :  { %v3980_v20 = vmul.f32 %v5644_v56, %v3979_v9 }
 0xa68   :  { %v3981_v39 = vadd.f32 %v5644_v56, %v3980_v20 }
 0xa6a   :  { %v3985_v6 = vsel %vm3984_vm7, %v5644_v56, %v3981_v39 }
 0xa6b   :  { %v3990_v11 = vsel %vm3987_vm8, %v3989_v40, %v3985_v6 }
 0xa6c   :  { %3992 = vst [vmem:[%s7964_s22] sm:$0xf] %v3990_v11 }

</bundles_post_ra>
